<compile_context>
chip_gen: v6e
topology: v6e:2x2x1
jax: 0.10.0
libtpu: 0.0.40
codegen_flags: <defaults>
</compile_context>

<pallas_src>
import numpy as np

import jax
import jax.numpy as jnp
from jax import lax
from jax.experimental import pallas as pl
from jax.experimental.pallas import tpu as pltpu


_LANE = 128


def _round_up(x, m):
    return ((x + m - 1) // m) * m


def decoder_kernel(x_ref, wih1_ref, whh1_ref, b1_ref,
                   w2ih_ref, w2hh_ref, b2_ref, wout_ref, bout_ref,
                   out_ref):
    """Whole decoder forward for one batch tile, everything VMEM-resident.

    x_ref    : (Bt, D)   f32   raw input tile (unpadded feature width)
    wih1_ref : (D, 4*Dp)  bf16  gate blocks lane-aligned; i/f/o blocks * 0.5
    whh1_ref : (Dp, 4*Dp) bf16
    b1_ref   : (1, 4*Dp)  f32   (b_ih1 + b_hh1), i/f/o blocks * 0.5
    w2ih_ref : (Dp, 4*Hp) bf16  W_ih2.T  (rows D: are zero)
    w2hh_ref : (Hp, 4*Hp) bf16  W_hh2.T  (rows H: are zero)
    b2_ref   : (1, 4*Hp)  f32   (b_ih2 + b_hh2), i/f/o blocks * 0.5
    wout_ref : (Hp, nf)   bf16  W_out.T, zero padded rows
    bout_ref : (1, nf)    f32
    out_ref  : (S*Bt, nf) f32   time-major rows within the tile (t*Bt + b)
    """
    B = x_ref.shape[0]
    Dp = whh1_ref.shape[0]
    Hp = w2hh_ref.shape[0]
    G2 = w2hh_ref.shape[1]
    S = out_ref.shape[0] // B
    f32 = jnp.float32
    bf16 = jnp.bfloat16

    # ---- loop-invariant work, hoisted off the recurrence critical path ----
    # x is fed unchanged at every timestep -> x @ W_ih1 + b1 computed once.
    xw1 = (jnp.dot(x_ref[...].astype(bf16), wih1_ref[...],
                   preferred_element_type=f32) + b1_ref[...])     # (B, 4*Dp)
    b2 = jnp.broadcast_to(b2_ref[...], (B, G2))                   # hoisted bcast

    h1 = jnp.zeros((B, Dp), f32)
    c1 = jnp.zeros((B, Dp), f32)
    h2 = jnp.zeros((B, Hp), f32)
    c2 = jnp.zeros((B, Hp), f32)
    h2_steps = []

    # Fully unrolled recurrence (S is small & static).  i/f/o gate weights are
    # pre-scaled by 0.5 in pack_params so sigmoid(z) = 0.5*tanh(0.5*z)+0.5
    # becomes a single full-width tanh per LSTM per step plus scalar-immediate
    # per-gate fixups.
    for t in range(S):
        # LSTM2's h2-half matmul depends only on h2 from the previous step:
        # issue it first so it can overlap the whole of LSTM1 on the MXU.
        g2h = jnp.dot(h2.astype(bf16), w2hh_ref[...],
                      preferred_element_type=f32)                  # (B, 4*Hp)

        # ---- LSTM1 (D -> D) ----
        g1 = xw1 + jnp.dot(h1.astype(bf16), whh1_ref[...],
                           preferred_element_type=f32)
        a1 = jnp.tanh(g1)
        i1 = 0.5 * a1[:, 0 * Dp:1 * Dp] + 0.5
        f1 = 0.5 * a1[:, 1 * Dp:2 * Dp] + 0.5
        gg1 = a1[:, 2 * Dp:3 * Dp]
        o1 = 0.5 * a1[:, 3 * Dp:4 * Dp] + 0.5
        c1 = f1 * c1 + i1 * gg1
        h1 = o1 * jnp.tanh(c1)

        # ---- LSTM2 (D -> 2D): add the h1 half, which is the only part that
        # had to wait for LSTM1 of this step ----
        g2 = g2h + jnp.dot(h1.astype(bf16), w2ih_ref[...],
                           preferred_element_type=f32) + b2
        a2 = jnp.tanh(g2)
        i2 = 0.5 * a2[:, 0 * Hp:1 * Hp] + 0.5
        f2 = 0.5 * a2[:, 1 * Hp:2 * Hp] + 0.5
        gg2 = a2[:, 2 * Hp:3 * Hp]
        o2 = 0.5 * a2[:, 3 * Hp:4 * Hp] + 0.5
        c2 = f2 * c2 + i2 * gg2
        h2 = o2 * jnp.tanh(c2)
        h2_steps.append(h2)

    # ---- output Linear hoisted out of the loop: one matmul + one dense store.
    # Each h2 snapshot is a full (8,128) f32 tile, so the concat is cheap and
    # there are no per-step sublane-masked stores.
    h2_all = jnp.concatenate(h2_steps, axis=0).astype(bf16)       # (S*B, Hp)
    out_ref[...] = (jnp.dot(h2_all, wout_ref[...],
                            preferred_element_type=f32)
                    + bout_ref[...]).astype(out_ref.dtype)


def decoder_forward(x, kparams, seq_len, *, batch_tile=None):
    B, D = x.shape
    Hp, nf = kparams["wout"].shape
    Bt = batch_tile if batch_tile is not None else min(B, 8)
    assert B % Bt == 0, "batch must be divisible by batch_tile"
    nb = B // Bt

    weight_names = ("wih1", "whh1", "b1", "w2ih", "w2hh", "b2", "wout", "bout")

    def const_map(i):
        return (0, 0)

    in_specs = [pl.BlockSpec((Bt, D), lambda i: (i, 0))]
    in_specs += [pl.BlockSpec(kparams[name].shape, const_map)
                 for name in weight_names]

    out = pl.pallas_call(
        decoder_kernel,
        out_shape=jax.ShapeDtypeStruct((B * seq_len, nf), jnp.float32),
        grid=(nb,),
        in_specs=in_specs,
        out_specs=pl.BlockSpec((seq_len * Bt, nf), lambda i: (i, 0)),
        compiler_params=pltpu.CompilerParams(
            dimension_semantics=("parallel",)),
    )(x, *[kparams[name] for name in weight_names])

    # rows inside each batch tile are time-major (t*Bt + b); tiles stacked by i
    out = out.reshape(nb, seq_len, Bt, nf).transpose(0, 2, 1, 3)
    return out.reshape(B, seq_len, nf)


def make_raw_params(key, input_dim, n_features):
    """PyTorch-layout parameters (nn.LSTM / nn.Linear shapes), deterministic."""
    D = input_dim
    H = 2 * input_dim
    ks = jax.random.split(key, 10)
    s1 = 1.0 / jnp.sqrt(D)
    s2 = 1.0 / jnp.sqrt(H)

    def u(k, shape, s):
        return jax.random.uniform(k, shape, jnp.float32, -s, s)

    return {
        "w_ih1": u(ks[0], (4 * D, D), s1), "w_hh1": u(ks[1], (4 * D, D), s1),
        "b_ih1": u(ks[2], (4 * D,), s1), "b_hh1": u(ks[3], (4 * D,), s1),
        "w_ih2": u(ks[4], (4 * H, D), s2), "w_hh2": u(ks[5], (4 * H, H), s2),
        "b_ih2": u(ks[6], (4 * H,), s2), "b_hh2": u(ks[7], (4 * H,), s2),
        "w_out": u(ks[8], (n_features, H), s2), "b_out": u(ks[9], (n_features,), s2),
    }


def pack_params(raw, dtype=jnp.bfloat16):
    """Repack PyTorch-layout weights into the kernel's lane-aligned layout.

    * Each gate block is placed at a 128-lane-aligned column (cheap vreg slices
      on the recurrence critical path).
    * i/f/o gate blocks (and their biases) are pre-scaled by 0.5, so the kernel
      only needs one full-width tanh per LSTM per step.
    * Weights are stored in bf16 (MXU-native, halves HBM->VMEM DMA); biases in
      f32.  All padding is exactly zero (required by the kernel's invariant
      that padded h/c lanes stay zero).
    """
    D = raw["w_ih1"].shape[1]
    H = raw["w_hh2"].shape[1]
    nf = raw["w_out"].shape[0]
    Dp = _round_up(D, _LANE)
    Hp = _round_up(H, _LANE)

    gate_scale = np.array([0.5, 0.5, 1.0, 0.5], np.float32)   # [i, f, g, o]

    def gate_cols(w_pt, hid, hid_pad, n_rows):
        """w_pt: PyTorch (4*hid, in).  Returns (n_rows, 4*hid_pad) with W.T
        placed from row 0, each gate block 128-lane aligned and pre-scaled."""
        w_t = np.asarray(w_pt, np.float32).T                  # (in, 4*hid)
        n_in = w_t.shape[0]
        out = np.zeros((n_rows, 4 * hid_pad), np.float32)
        for k in range(4):
            out[:n_in, k * hid_pad:k * hid_pad + hid] = \
                gate_scale[k] * w_t[:, k * hid:(k + 1) * hid]
        return out

    def gate_bias(b_ih, b_hh, hid, hid_pad):
        b = np.asarray(b_ih, np.float32) + np.asarray(b_hh, np.float32)
        out = np.zeros((1, 4 * hid_pad), np.float32)
        for k in range(4):
            out[0, k * hid_pad:k * hid_pad + hid] = \
                gate_scale[k] * b[k * hid:(k + 1) * hid]
        return out

    wih1 = gate_cols(raw["w_ih1"], D, Dp, D)       # (D,  4*Dp)
    whh1 = gate_cols(raw["w_hh1"], D, Dp, Dp)      # (Dp, 4*Dp), rows D: zero
    b1 = gate_bias(raw["b_ih1"], raw["b_hh1"], D, Dp)
    w2ih = gate_cols(raw["w_ih2"], H, Hp, Dp)      # (Dp, 4*Hp), rows D: zero
    w2hh = gate_cols(raw["w_hh2"], H, Hp, Hp)      # (Hp, 4*Hp), rows H: zero
    b2 = gate_bias(raw["b_ih2"], raw["b_hh2"], H, Hp)

    wout = np.zeros((Hp, nf), np.float32)
    wout[:H, :] = np.asarray(raw["w_out"], np.float32).T
    bout = np.asarray(raw["b_out"], np.float32)[None, :]

    return {
        "wih1": jnp.asarray(wih1, dtype), "whh1": jnp.asarray(whh1, dtype),
        "b1": jnp.asarray(b1, jnp.float32),
        "w2ih": jnp.asarray(w2ih, dtype), "w2hh": jnp.asarray(w2hh, dtype),
        "b2": jnp.asarray(b2, jnp.float32),
        "wout": jnp.asarray(wout, dtype), "bout": jnp.asarray(bout, jnp.float32),
    }


def decoder_reference(x, raw, seq_len, matmul_dtype=jnp.float32):
    """Pure-JAX reference replicating the PyTorch forward.

    matmul_dtype=bf16 mirrors the kernel's intentional MXU input precision
    (weights and matmul LHS rounded to bf16, f32 accumulation, all other math
    f32); matmul_dtype=f32 is the exact PyTorch-equivalent forward.
    """
    md = matmul_dtype
    D = raw["w_ih1"].shape[1]
    H = raw["w_hh2"].shape[1]
    B = x.shape[0]
    f32 = jnp.float32

    def W(a):
        return a.T.astype(md)

    def mm(a, w):
        return jnp.dot(a.astype(md), w, preferred_element_type=f32)

    wih1_t, whh1_t = W(raw["w_ih1"]), W(raw["w_hh1"])
    b1 = raw["b_ih1"] + raw["b_hh1"]
    wih2_t, whh2_t = W(raw["w_ih2"]), W(raw["w_hh2"])
    b2 = raw["b_ih2"] + raw["b_hh2"]
    wout_t, bout = W(raw["w_out"]), raw["b_out"]

    xw1 = mm(x, wih1_t) + b1

    def gates(g, hid, c):
        i = jax.nn.sigmoid(g[:, 0 * hid:1 * hid])
        f = jax.nn.sigmoid(g[:, 1 * hid:2 * hid])
        gg = jnp.tanh(g[:, 2 * hid:3 * hid])
        o = jax.nn.sigmoid(g[:, 3 * hid:4 * hid])
        c = f * c + i * gg
        return o * jnp.tanh(c), c

    def step(carry, _):
        h1, c1, h2, c2 = carry
        h1, c1 = gates(xw1 + mm(h1, whh1_t), D, c1)
        h2, c2 = gates(mm(h1, wih2_t) + mm(h2, whh2_t) + b2, H, c2)
        y = mm(h2, wout_t) + bout
        return (h1, c1, h2, c2), y

    init = (jnp.zeros((B, D)), jnp.zeros((B, D)),
            jnp.zeros((B, H)), jnp.zeros((B, H)))
    _, ys = lax.scan(step, init, None, length=seq_len)
    return jnp.transpose(ys, (1, 0, 2))


if __name__ == "__main__":
    seq_len = 8
    input_dim = 32
    n_features = 1
    batch = 16          # 2 batch tiles of 8 -> exercises the parallel grid

    key = jax.random.PRNGKey(0)
    k_param, k_x = jax.random.split(key)
    raw = make_raw_params(k_param, input_dim, n_features)
    kparams = pack_params(raw)
    x = jax.random.normal(k_x, (batch, input_dim), jnp.float32)

    y = jax.block_until_ready(decoder_forward(x, kparams, seq_len))
    assert y.shape == (batch, seq_len, n_features), y.shape

    # Tight check: reference mirrors the kernel's intentional bf16 matmul-input
    # precision (validates packing, gate order, recurrence, fusion, layout).
    y_bf = jax.block_until_ready(decoder_reference(x, raw, seq_len, jnp.bfloat16))
    assert jnp.allclose(y, y_bf, rtol=1e-3, atol=1e-3), (
        float(jnp.max(jnp.abs(y - y_bf))))

    # Loose check vs. the exact f32 PyTorch-equivalent forward (bounds the
    # bf16 weight-quantization error).
    y_f32 = jax.block_until_ready(decoder_reference(x, raw, seq_len, jnp.float32))
    assert jnp.allclose(y, y_f32, rtol=3e-2, atol=3e-2), (
        float(jnp.max(jnp.abs(y - y_f32))))

    print("KERNEL_OK")
</pallas_src>

<mosaic_0001>
module attributes {stable_mosaic.version = 11 : i64} {
  func.func @decoder_kernel(%arg0: i32, %arg1: memref<8x32xf32, #tpu.memory_space<vmem>>, %arg2: memref<32x512xbf16, #tpu.memory_space<vmem>>, %arg3: memref<128x512xbf16, #tpu.memory_space<vmem>>, %arg4: memref<1x512xf32, #tpu.memory_space<vmem>>, %arg5: memref<128x512xbf16, #tpu.memory_space<vmem>>, %arg6: memref<128x512xbf16, #tpu.memory_space<vmem>>, %arg7: memref<1x512xf32, #tpu.memory_space<vmem>>, %arg8: memref<128x1xbf16, #tpu.memory_space<vmem>>, %arg9: memref<1x1xf32, #tpu.memory_space<vmem>>, %arg10: memref<64x1xf32, #tpu.memory_space<vmem>>) attributes {dimension_semantics = [#tpu.dimension_semantics<parallel>], iteration_bounds = array<i64: 2>, scalar_prefetch = 0 : i64, scratch_operands = 0 : i64, tpu.core_type = #tpu.core_type<tc>, window_params = [{transform_indices = @transform_0, window_bounds = array<i64: 8, 32>}, {pipeline_mode = #tpu.pipeline_mode<synchronous>, transform_indices = @transform_1, window_bounds = array<i64: 32, 512>}, {pipeline_mode = #tpu.pipeline_mode<synchronous>, transform_indices = @transform_2, window_bounds = array<i64: 128, 512>}, {pipeline_mode = #tpu.pipeline_mode<synchronous>, transform_indices = @transform_3, window_bounds = array<i64: 1, 512>}, {pipeline_mode = #tpu.pipeline_mode<synchronous>, transform_indices = @transform_4, window_bounds = array<i64: 128, 512>}, {pipeline_mode = #tpu.pipeline_mode<synchronous>, transform_indices = @transform_5, window_bounds = array<i64: 128, 512>}, {pipeline_mode = #tpu.pipeline_mode<synchronous>, transform_indices = @transform_6, window_bounds = array<i64: 1, 512>}, {pipeline_mode = #tpu.pipeline_mode<synchronous>, transform_indices = @transform_7, window_bounds = array<i64: 128, 1>}, {pipeline_mode = #tpu.pipeline_mode<synchronous>, transform_indices = @transform_8, window_bounds = array<i64: 1, 1>}, {transform_indices = @transform_9, window_bounds = array<i64: 64, 1>}]} {
    %c0 = arith.constant 0 : index
    %c0_0 = arith.constant 0 : index
    %0 = vector.load %arg1[%c0, %c0_0] : memref<8x32xf32, #tpu.memory_space<vmem>>, vector<8x32xf32>
    %1 = arith.truncf %0 : vector<8x32xf32> to vector<8x32xbf16>
    %c0_1 = arith.constant 0 : index
    %c0_2 = arith.constant 0 : index
    %2 = vector.load %arg2[%c0_1, %c0_2] : memref<32x512xbf16, #tpu.memory_space<vmem>>, vector<32x512xbf16>
    %cst = arith.constant dense<0.000000e+00> : vector<8x512xf32>
    %3 = tpu.matmul %1, %2, %cst {dimension_numbers = #tpu.dot_dimension_numbers<[1], [0], [0], [1], [0, 0, 1, 1], [], []>} : vector<8x32xbf16>, vector<32x512xbf16>, vector<8x512xf32> -> vector<8x512xf32>
    %c0_3 = arith.constant 0 : index
    %c0_4 = arith.constant 0 : index
    %4 = vector.load %arg4[%c0_3, %c0_4] : memref<1x512xf32, #tpu.memory_space<vmem>>, vector<1x512xf32>
    %5 = vector.broadcast %4 : vector<1x512xf32> to vector<8x512xf32>
    %6 = arith.addf %3, %5 : vector<8x512xf32>
    %c0_5 = arith.constant 0 : index
    %c0_6 = arith.constant 0 : index
    %7 = vector.load %arg7[%c0_5, %c0_6] : memref<1x512xf32, #tpu.memory_space<vmem>>, vector<1x512xf32>
    %8 = vector.shape_cast %7 : vector<1x512xf32> to vector<1x512xf32>
    %9 = vector.broadcast %8 : vector<1x512xf32> to vector<8x512xf32>
    %cst_7 = arith.constant 0.000000e+00 : f32
    %10 = vector.broadcast %cst_7 : f32 to vector<8x128xf32>
    %cst_8 = arith.constant 0.000000e+00 : f32
    %11 = vector.broadcast %cst_8 : f32 to vector<8x128xf32>
    %cst_9 = arith.constant 0.000000e+00 : f32
    %12 = vector.broadcast %cst_9 : f32 to vector<8x128xf32>
    %cst_10 = arith.constant 0.000000e+00 : f32
    %13 = vector.broadcast %cst_10 : f32 to vector<8x128xf32>
    %14 = arith.truncf %12 : vector<8x128xf32> to vector<8x128xbf16>
    %c0_11 = arith.constant 0 : index
    %c0_12 = arith.constant 0 : index
    %15 = vector.load %arg6[%c0_11, %c0_12] : memref<128x512xbf16, #tpu.memory_space<vmem>>, vector<128x512xbf16>
    %cst_13 = arith.constant dense<0.000000e+00> : vector<8x512xf32>
    %16 = tpu.matmul %14, %15, %cst_13 {dimension_numbers = #tpu.dot_dimension_numbers<[1], [0], [0], [1], [0, 0, 1, 1], [], []>} : vector<8x128xbf16>, vector<128x512xbf16>, vector<8x512xf32> -> vector<8x512xf32>
    %17 = arith.truncf %10 : vector<8x128xf32> to vector<8x128xbf16>
    %c0_14 = arith.constant 0 : index
    %c0_15 = arith.constant 0 : index
    %18 = vector.load %arg3[%c0_14, %c0_15] : memref<128x512xbf16, #tpu.memory_space<vmem>>, vector<128x512xbf16>
    %cst_16 = arith.constant dense<0.000000e+00> : vector<8x512xf32>
    %19 = tpu.matmul %17, %18, %cst_16 {dimension_numbers = #tpu.dot_dimension_numbers<[1], [0], [0], [1], [0, 0, 1, 1], [], []>} : vector<8x128xbf16>, vector<128x512xbf16>, vector<8x512xf32> -> vector<8x512xf32>
    %20 = arith.addf %6, %19 : vector<8x512xf32>
    %21 = math.tanh %20 : vector<8x512xf32>
    %22 = vector.extract_strided_slice %21 {offsets = [0, 0], sizes = [8, 128], strides = [1, 1]} : vector<8x512xf32> to vector<8x128xf32>
    %cst_17 = arith.constant 5.000000e-01 : f32
    %23 = vector.broadcast %cst_17 : f32 to vector<8x128xf32>
    %24 = arith.mulf %23, %22 : vector<8x128xf32>
    %cst_18 = arith.constant 5.000000e-01 : f32
    %25 = vector.broadcast %cst_18 : f32 to vector<8x128xf32>
    %26 = arith.addf %24, %25 : vector<8x128xf32>
    %27 = vector.extract_strided_slice %21 {offsets = [0, 128], sizes = [8, 128], strides = [1, 1]} : vector<8x512xf32> to vector<8x128xf32>
    %cst_19 = arith.constant 5.000000e-01 : f32
    %28 = vector.broadcast %cst_19 : f32 to vector<8x128xf32>
    %29 = arith.mulf %28, %27 : vector<8x128xf32>
    %cst_20 = arith.constant 5.000000e-01 : f32
    %30 = vector.broadcast %cst_20 : f32 to vector<8x128xf32>
    %31 = arith.addf %29, %30 : vector<8x128xf32>
    %32 = vector.extract_strided_slice %21 {offsets = [0, 256], sizes = [8, 128], strides = [1, 1]} : vector<8x512xf32> to vector<8x128xf32>
    %33 = vector.extract_strided_slice %21 {offsets = [0, 384], sizes = [8, 128], strides = [1, 1]} : vector<8x512xf32> to vector<8x128xf32>
    %cst_21 = arith.constant 5.000000e-01 : f32
    %34 = vector.broadcast %cst_21 : f32 to vector<8x128xf32>
    %35 = arith.mulf %34, %33 : vector<8x128xf32>
    %cst_22 = arith.constant 5.000000e-01 : f32
    %36 = vector.broadcast %cst_22 : f32 to vector<8x128xf32>
    %37 = arith.addf %35, %36 : vector<8x128xf32>
    %38 = arith.mulf %31, %11 : vector<8x128xf32>
    %39 = arith.mulf %26, %32 : vector<8x128xf32>
    %40 = arith.addf %38, %39 : vector<8x128xf32>
    %41 = math.tanh %40 : vector<8x128xf32>
    %42 = arith.mulf %37, %41 : vector<8x128xf32>
    %43 = arith.truncf %42 : vector<8x128xf32> to vector<8x128xbf16>
    %c0_23 = arith.constant 0 : index
    %c0_24 = arith.constant 0 : index
    %44 = vector.load %arg5[%c0_23, %c0_24] : memref<128x512xbf16, #tpu.memory_space<vmem>>, vector<128x512xbf16>
    %cst_25 = arith.constant dense<0.000000e+00> : vector<8x512xf32>
    %45 = tpu.matmul %43, %44, %cst_25 {dimension_numbers = #tpu.dot_dimension_numbers<[1], [0], [0], [1], [0, 0, 1, 1], [], []>} : vector<8x128xbf16>, vector<128x512xbf16>, vector<8x512xf32> -> vector<8x512xf32>
    %46 = arith.addf %16, %45 : vector<8x512xf32>
    %47 = arith.addf %46, %9 : vector<8x512xf32>
    %48 = math.tanh %47 : vector<8x512xf32>
    %49 = vector.extract_strided_slice %48 {offsets = [0, 0], sizes = [8, 128], strides = [1, 1]} : vector<8x512xf32> to vector<8x128xf32>
    %cst_26 = arith.constant 5.000000e-01 : f32
    %50 = vector.broadcast %cst_26 : f32 to vector<8x128xf32>
    %51 = arith.mulf %50, %49 : vector<8x128xf32>
    %cst_27 = arith.constant 5.000000e-01 : f32
    %52 = vector.broadcast %cst_27 : f32 to vector<8x128xf32>
    %53 = arith.addf %51, %52 : vector<8x128xf32>
    %54 = vector.extract_strided_slice %48 {offsets = [0, 128], sizes = [8, 128], strides = [1, 1]} : vector<8x512xf32> to vector<8x128xf32>
    %cst_28 = arith.constant 5.000000e-01 : f32
    %55 = vector.broadcast %cst_28 : f32 to vector<8x128xf32>
    %56 = arith.mulf %55, %54 : vector<8x128xf32>
    %cst_29 = arith.constant 5.000000e-01 : f32
    %57 = vector.broadcast %cst_29 : f32 to vector<8x128xf32>
    %58 = arith.addf %56, %57 : vector<8x128xf32>
    %59 = vector.extract_strided_slice %48 {offsets = [0, 256], sizes = [8, 128], strides = [1, 1]} : vector<8x512xf32> to vector<8x128xf32>
    %60 = vector.extract_strided_slice %48 {offsets = [0, 384], sizes = [8, 128], strides = [1, 1]} : vector<8x512xf32> to vector<8x128xf32>
    %cst_30 = arith.constant 5.000000e-01 : f32
    %61 = vector.broadcast %cst_30 : f32 to vector<8x128xf32>
    %62 = arith.mulf %61, %60 : vector<8x128xf32>
    %cst_31 = arith.constant 5.000000e-01 : f32
    %63 = vector.broadcast %cst_31 : f32 to vector<8x128xf32>
    %64 = arith.addf %62, %63 : vector<8x128xf32>
    %65 = arith.mulf %58, %13 : vector<8x128xf32>
    %66 = arith.mulf %53, %59 : vector<8x128xf32>
    %67 = arith.addf %65, %66 : vector<8x128xf32>
    %68 = math.tanh %67 : vector<8x128xf32>
    %69 = arith.mulf %64, %68 : vector<8x128xf32>
    %70 = arith.truncf %69 : vector<8x128xf32> to vector<8x128xbf16>
    %c0_32 = arith.constant 0 : index
    %c0_33 = arith.constant 0 : index
    %71 = vector.load %arg6[%c0_32, %c0_33] : memref<128x512xbf16, #tpu.memory_space<vmem>>, vector<128x512xbf16>
    %cst_34 = arith.constant dense<0.000000e+00> : vector<8x512xf32>
    %72 = tpu.matmul %70, %71, %cst_34 {dimension_numbers = #tpu.dot_dimension_numbers<[1], [0], [0], [1], [0, 0, 1, 1], [], []>} : vector<8x128xbf16>, vector<128x512xbf16>, vector<8x512xf32> -> vector<8x512xf32>
    %73 = arith.truncf %42 : vector<8x128xf32> to vector<8x128xbf16>
    %c0_35 = arith.constant 0 : index
    %c0_36 = arith.constant 0 : index
    %74 = vector.load %arg3[%c0_35, %c0_36] : memref<128x512xbf16, #tpu.memory_space<vmem>>, vector<128x512xbf16>
    %cst_37 = arith.constant dense<0.000000e+00> : vector<8x512xf32>
    %75 = tpu.matmul %73, %74, %cst_37 {dimension_numbers = #tpu.dot_dimension_numbers<[1], [0], [0], [1], [0, 0, 1, 1], [], []>} : vector<8x128xbf16>, vector<128x512xbf16>, vector<8x512xf32> -> vector<8x512xf32>
    %76 = arith.addf %6, %75 : vector<8x512xf32>
    %77 = math.tanh %76 : vector<8x512xf32>
    %78 = vector.extract_strided_slice %77 {offsets = [0, 0], sizes = [8, 128], strides = [1, 1]} : vector<8x512xf32> to vector<8x128xf32>
    %cst_38 = arith.constant 5.000000e-01 : f32
    %79 = vector.broadcast %cst_38 : f32 to vector<8x128xf32>
    %80 = arith.mulf %79, %78 : vector<8x128xf32>
    %cst_39 = arith.constant 5.000000e-01 : f32
    %81 = vector.broadcast %cst_39 : f32 to vector<8x128xf32>
    %82 = arith.addf %80, %81 : vector<8x128xf32>
    %83 = vector.extract_strided_slice %77 {offsets = [0, 128], sizes = [8, 128], strides = [1, 1]} : vector<8x512xf32> to vector<8x128xf32>
    %cst_40 = arith.constant 5.000000e-01 : f32
    %84 = vector.broadcast %cst_40 : f32 to vector<8x128xf32>
    %85 = arith.mulf %84, %83 : vector<8x128xf32>
    %cst_41 = arith.constant 5.000000e-01 : f32
    %86 = vector.broadcast %cst_41 : f32 to vector<8x128xf32>
    %87 = arith.addf %85, %86 : vector<8x128xf32>
    %88 = vector.extract_strided_slice %77 {offsets = [0, 256], sizes = [8, 128], strides = [1, 1]} : vector<8x512xf32> to vector<8x128xf32>
    %89 = vector.extract_strided_slice %77 {offsets = [0, 384], sizes = [8, 128], strides = [1, 1]} : vector<8x512xf32> to vector<8x128xf32>
    %cst_42 = arith.constant 5.000000e-01 : f32
    %90 = vector.broadcast %cst_42 : f32 to vector<8x128xf32>
    %91 = arith.mulf %90, %89 : vector<8x128xf32>
    %cst_43 = arith.constant 5.000000e-01 : f32
    %92 = vector.broadcast %cst_43 : f32 to vector<8x128xf32>
    %93 = arith.addf %91, %92 : vector<8x128xf32>
    %94 = arith.mulf %87, %40 : vector<8x128xf32>
    %95 = arith.mulf %82, %88 : vector<8x128xf32>
    %96 = arith.addf %94, %95 : vector<8x128xf32>
    %97 = math.tanh %96 : vector<8x128xf32>
    %98 = arith.mulf %93, %97 : vector<8x128xf32>
    %99 = arith.truncf %98 : vector<8x128xf32> to vector<8x128xbf16>
    %c0_44 = arith.constant 0 : index
    %c0_45 = arith.constant 0 : index
    %100 = vector.load %arg5[%c0_44, %c0_45] : memref<128x512xbf16, #tpu.memory_space<vmem>>, vector<128x512xbf16>
    %cst_46 = arith.constant dense<0.000000e+00> : vector<8x512xf32>
    %101 = tpu.matmul %99, %100, %cst_46 {dimension_numbers = #tpu.dot_dimension_numbers<[1], [0], [0], [1], [0, 0, 1, 1], [], []>} : vector<8x128xbf16>, vector<128x512xbf16>, vector<8x512xf32> -> vector<8x512xf32>
    %102 = arith.addf %72, %101 : vector<8x512xf32>
    %103 = arith.addf %102, %9 : vector<8x512xf32>
    %104 = math.tanh %103 : vector<8x512xf32>
    %105 = vector.extract_strided_slice %104 {offsets = [0, 0], sizes = [8, 128], strides = [1, 1]} : vector<8x512xf32> to vector<8x128xf32>
    %cst_47 = arith.constant 5.000000e-01 : f32
    %106 = vector.broadcast %cst_47 : f32 to vector<8x128xf32>
    %107 = arith.mulf %106, %105 : vector<8x128xf32>
    %cst_48 = arith.constant 5.000000e-01 : f32
    %108 = vector.broadcast %cst_48 : f32 to vector<8x128xf32>
    %109 = arith.addf %107, %108 : vector<8x128xf32>
    %110 = vector.extract_strided_slice %104 {offsets = [0, 128], sizes = [8, 128], strides = [1, 1]} : vector<8x512xf32> to vector<8x128xf32>
    %cst_49 = arith.constant 5.000000e-01 : f32
    %111 = vector.broadcast %cst_49 : f32 to vector<8x128xf32>
    %112 = arith.mulf %111, %110 : vector<8x128xf32>
    %cst_50 = arith.constant 5.000000e-01 : f32
    %113 = vector.broadcast %cst_50 : f32 to vector<8x128xf32>
    %114 = arith.addf %112, %113 : vector<8x128xf32>
    %115 = vector.extract_strided_slice %104 {offsets = [0, 256], sizes = [8, 128], strides = [1, 1]} : vector<8x512xf32> to vector<8x128xf32>
    %116 = vector.extract_strided_slice %104 {offsets = [0, 384], sizes = [8, 128], strides = [1, 1]} : vector<8x512xf32> to vector<8x128xf32>
    %cst_51 = arith.constant 5.000000e-01 : f32
    %117 = vector.broadcast %cst_51 : f32 to vector<8x128xf32>
    %118 = arith.mulf %117, %116 : vector<8x128xf32>
    %cst_52 = arith.constant 5.000000e-01 : f32
    %119 = vector.broadcast %cst_52 : f32 to vector<8x128xf32>
    %120 = arith.addf %118, %119 : vector<8x128xf32>
    %121 = arith.mulf %114, %67 : vector<8x128xf32>
    %122 = arith.mulf %109, %115 : vector<8x128xf32>
    %123 = arith.addf %121, %122 : vector<8x128xf32>
    %124 = math.tanh %123 : vector<8x128xf32>
    %125 = arith.mulf %120, %124 : vector<8x128xf32>
    %126 = arith.truncf %125 : vector<8x128xf32> to vector<8x128xbf16>
    %c0_53 = arith.constant 0 : index
    %c0_54 = arith.constant 0 : index
    %127 = vector.load %arg6[%c0_53, %c0_54] : memref<128x512xbf16, #tpu.memory_space<vmem>>, vector<128x512xbf16>
    %cst_55 = arith.constant dense<0.000000e+00> : vector<8x512xf32>
    %128 = tpu.matmul %126, %127, %cst_55 {dimension_numbers = #tpu.dot_dimension_numbers<[1], [0], [0], [1], [0, 0, 1, 1], [], []>} : vector<8x128xbf16>, vector<128x512xbf16>, vector<8x512xf32> -> vector<8x512xf32>
    %129 = arith.truncf %98 : vector<8x128xf32> to vector<8x128xbf16>
    %c0_56 = arith.constant 0 : index
    %c0_57 = arith.constant 0 : index
    %130 = vector.load %arg3[%c0_56, %c0_57] : memref<128x512xbf16, #tpu.memory_space<vmem>>, vector<128x512xbf16>
    %cst_58 = arith.constant dense<0.000000e+00> : vector<8x512xf32>
    %131 = tpu.matmul %129, %130, %cst_58 {dimension_numbers = #tpu.dot_dimension_numbers<[1], [0], [0], [1], [0, 0, 1, 1], [], []>} : vector<8x128xbf16>, vector<128x512xbf16>, vector<8x512xf32> -> vector<8x512xf32>
    %132 = arith.addf %6, %131 : vector<8x512xf32>
    %133 = math.tanh %132 : vector<8x512xf32>
    %134 = vector.extract_strided_slice %133 {offsets = [0, 0], sizes = [8, 128], strides = [1, 1]} : vector<8x512xf32> to vector<8x128xf32>
    %cst_59 = arith.constant 5.000000e-01 : f32
    %135 = vector.broadcast %cst_59 : f32 to vector<8x128xf32>
    %136 = arith.mulf %135, %134 : vector<8x128xf32>
    %cst_60 = arith.constant 5.000000e-01 : f32
    %137 = vector.broadcast %cst_60 : f32 to vector<8x128xf32>
    %138 = arith.addf %136, %137 : vector<8x128xf32>
    %139 = vector.extract_strided_slice %133 {offsets = [0, 128], sizes = [8, 128], strides = [1, 1]} : vector<8x512xf32> to vector<8x128xf32>
    %cst_61 = arith.constant 5.000000e-01 : f32
    %140 = vector.broadcast %cst_61 : f32 to vector<8x128xf32>
    %141 = arith.mulf %140, %139 : vector<8x128xf32>
    %cst_62 = arith.constant 5.000000e-01 : f32
    %142 = vector.broadcast %cst_62 : f32 to vector<8x128xf32>
    %143 = arith.addf %141, %142 : vector<8x128xf32>
    %144 = vector.extract_strided_slice %133 {offsets = [0, 256], sizes = [8, 128], strides = [1, 1]} : vector<8x512xf32> to vector<8x128xf32>
    %145 = vector.extract_strided_slice %133 {offsets = [0, 384], sizes = [8, 128], strides = [1, 1]} : vector<8x512xf32> to vector<8x128xf32>
    %cst_63 = arith.constant 5.000000e-01 : f32
    %146 = vector.broadcast %cst_63 : f32 to vector<8x128xf32>
    %147 = arith.mulf %146, %145 : vector<8x128xf32>
    %cst_64 = arith.constant 5.000000e-01 : f32
    %148 = vector.broadcast %cst_64 : f32 to vector<8x128xf32>
    %149 = arith.addf %147, %148 : vector<8x128xf32>
    %150 = arith.mulf %143, %96 : vector<8x128xf32>
    %151 = arith.mulf %138, %144 : vector<8x128xf32>
    %152 = arith.addf %150, %151 : vector<8x128xf32>
    %153 = math.tanh %152 : vector<8x128xf32>
    %154 = arith.mulf %149, %153 : vector<8x128xf32>
    %155 = arith.truncf %154 : vector<8x128xf32> to vector<8x128xbf16>
    %c0_65 = arith.constant 0 : index
    %c0_66 = arith.constant 0 : index
    %156 = vector.load %arg5[%c0_65, %c0_66] : memref<128x512xbf16, #tpu.memory_space<vmem>>, vector<128x512xbf16>
    %cst_67 = arith.constant dense<0.000000e+00> : vector<8x512xf32>
    %157 = tpu.matmul %155, %156, %cst_67 {dimension_numbers = #tpu.dot_dimension_numbers<[1], [0], [0], [1], [0, 0, 1, 1], [], []>} : vector<8x128xbf16>, vector<128x512xbf16>, vector<8x512xf32> -> vector<8x512xf32>
    %158 = arith.addf %128, %157 : vector<8x512xf32>
    %159 = arith.addf %158, %9 : vector<8x512xf32>
    %160 = math.tanh %159 : vector<8x512xf32>
    %161 = vector.extract_strided_slice %160 {offsets = [0, 0], sizes = [8, 128], strides = [1, 1]} : vector<8x512xf32> to vector<8x128xf32>
    %cst_68 = arith.constant 5.000000e-01 : f32
    %162 = vector.broadcast %cst_68 : f32 to vector<8x128xf32>
    %163 = arith.mulf %162, %161 : vector<8x128xf32>
    %cst_69 = arith.constant 5.000000e-01 : f32
    %164 = vector.broadcast %cst_69 : f32 to vector<8x128xf32>
    %165 = arith.addf %163, %164 : vector<8x128xf32>
    %166 = vector.extract_strided_slice %160 {offsets = [0, 128], sizes = [8, 128], strides = [1, 1]} : vector<8x512xf32> to vector<8x128xf32>
    %cst_70 = arith.constant 5.000000e-01 : f32
    %167 = vector.broadcast %cst_70 : f32 to vector<8x128xf32>
    %168 = arith.mulf %167, %166 : vector<8x128xf32>
    %cst_71 = arith.constant 5.000000e-01 : f32
    %169 = vector.broadcast %cst_71 : f32 to vector<8x128xf32>
    %170 = arith.addf %168, %169 : vector<8x128xf32>
    %171 = vector.extract_strided_slice %160 {offsets = [0, 256], sizes = [8, 128], strides = [1, 1]} : vector<8x512xf32> to vector<8x128xf32>
    %172 = vector.extract_strided_slice %160 {offsets = [0, 384], sizes = [8, 128], strides = [1, 1]} : vector<8x512xf32> to vector<8x128xf32>
    %cst_72 = arith.constant 5.000000e-01 : f32
    %173 = vector.broadcast %cst_72 : f32 to vector<8x128xf32>
    %174 = arith.mulf %173, %172 : vector<8x128xf32>
    %cst_73 = arith.constant 5.000000e-01 : f32
    %175 = vector.broadcast %cst_73 : f32 to vector<8x128xf32>
    %176 = arith.addf %174, %175 : vector<8x128xf32>
    %177 = arith.mulf %170, %123 : vector<8x128xf32>
    %178 = arith.mulf %165, %171 : vector<8x128xf32>
    %179 = arith.addf %177, %178 : vector<8x128xf32>
    %180 = math.tanh %179 : vector<8x128xf32>
    %181 = arith.mulf %176, %180 : vector<8x128xf32>
    %182 = arith.truncf %181 : vector<8x128xf32> to vector<8x128xbf16>
    %c0_74 = arith.constant 0 : index
    %c0_75 = arith.constant 0 : index
    %183 = vector.load %arg6[%c0_74, %c0_75] : memref<128x512xbf16, #tpu.memory_space<vmem>>, vector<128x512xbf16>
    %cst_76 = arith.constant dense<0.000000e+00> : vector<8x512xf32>
    %184 = tpu.matmul %182, %183, %cst_76 {dimension_numbers = #tpu.dot_dimension_numbers<[1], [0], [0], [1], [0, 0, 1, 1], [], []>} : vector<8x128xbf16>, vector<128x512xbf16>, vector<8x512xf32> -> vector<8x512xf32>
    %185 = arith.truncf %154 : vector<8x128xf32> to vector<8x128xbf16>
    %c0_77 = arith.constant 0 : index
    %c0_78 = arith.constant 0 : index
    %186 = vector.load %arg3[%c0_77, %c0_78] : memref<128x512xbf16, #tpu.memory_space<vmem>>, vector<128x512xbf16>
    %cst_79 = arith.constant dense<0.000000e+00> : vector<8x512xf32>
    %187 = tpu.matmul %185, %186, %cst_79 {dimension_numbers = #tpu.dot_dimension_numbers<[1], [0], [0], [1], [0, 0, 1, 1], [], []>} : vector<8x128xbf16>, vector<128x512xbf16>, vector<8x512xf32> -> vector<8x512xf32>
    %188 = arith.addf %6, %187 : vector<8x512xf32>
    %189 = math.tanh %188 : vector<8x512xf32>
    %190 = vector.extract_strided_slice %189 {offsets = [0, 0], sizes = [8, 128], strides = [1, 1]} : vector<8x512xf32> to vector<8x128xf32>
    %cst_80 = arith.constant 5.000000e-01 : f32
    %191 = vector.broadcast %cst_80 : f32 to vector<8x128xf32>
    %192 = arith.mulf %191, %190 : vector<8x128xf32>
    %cst_81 = arith.constant 5.000000e-01 : f32
    %193 = vector.broadcast %cst_81 : f32 to vector<8x128xf32>
    %194 = arith.addf %192, %193 : vector<8x128xf32>
    %195 = vector.extract_strided_slice %189 {offsets = [0, 128], sizes = [8, 128], strides = [1, 1]} : vector<8x512xf32> to vector<8x128xf32>
    %cst_82 = arith.constant 5.000000e-01 : f32
    %196 = vector.broadcast %cst_82 : f32 to vector<8x128xf32>
    %197 = arith.mulf %196, %195 : vector<8x128xf32>
    %cst_83 = arith.constant 5.000000e-01 : f32
    %198 = vector.broadcast %cst_83 : f32 to vector<8x128xf32>
    %199 = arith.addf %197, %198 : vector<8x128xf32>
    %200 = vector.extract_strided_slice %189 {offsets = [0, 256], sizes = [8, 128], strides = [1, 1]} : vector<8x512xf32> to vector<8x128xf32>
    %201 = vector.extract_strided_slice %189 {offsets = [0, 384], sizes = [8, 128], strides = [1, 1]} : vector<8x512xf32> to vector<8x128xf32>
    %cst_84 = arith.constant 5.000000e-01 : f32
    %202 = vector.broadcast %cst_84 : f32 to vector<8x128xf32>
    %203 = arith.mulf %202, %201 : vector<8x128xf32>
    %cst_85 = arith.constant 5.000000e-01 : f32
    %204 = vector.broadcast %cst_85 : f32 to vector<8x128xf32>
    %205 = arith.addf %203, %204 : vector<8x128xf32>
    %206 = arith.mulf %199, %152 : vector<8x128xf32>
    %207 = arith.mulf %194, %200 : vector<8x128xf32>
    %208 = arith.addf %206, %207 : vector<8x128xf32>
    %209 = math.tanh %208 : vector<8x128xf32>
    %210 = arith.mulf %205, %209 : vector<8x128xf32>
    %211 = arith.truncf %210 : vector<8x128xf32> to vector<8x128xbf16>
    %c0_86 = arith.constant 0 : index
    %c0_87 = arith.constant 0 : index
    %212 = vector.load %arg5[%c0_86, %c0_87] : memref<128x512xbf16, #tpu.memory_space<vmem>>, vector<128x512xbf16>
    %cst_88 = arith.constant dense<0.000000e+00> : vector<8x512xf32>
    %213 = tpu.matmul %211, %212, %cst_88 {dimension_numbers = #tpu.dot_dimension_numbers<[1], [0], [0], [1], [0, 0, 1, 1], [], []>} : vector<8x128xbf16>, vector<128x512xbf16>, vector<8x512xf32> -> vector<8x512xf32>
    %214 = arith.addf %184, %213 : vector<8x512xf32>
    %215 = arith.addf %214, %9 : vector<8x512xf32>
    %216 = math.tanh %215 : vector<8x512xf32>
    %217 = vector.extract_strided_slice %216 {offsets = [0, 0], sizes = [8, 128], strides = [1, 1]} : vector<8x512xf32> to vector<8x128xf32>
    %cst_89 = arith.constant 5.000000e-01 : f32
    %218 = vector.broadcast %cst_89 : f32 to vector<8x128xf32>
    %219 = arith.mulf %218, %217 : vector<8x128xf32>
    %cst_90 = arith.constant 5.000000e-01 : f32
    %220 = vector.broadcast %cst_90 : f32 to vector<8x128xf32>
    %221 = arith.addf %219, %220 : vector<8x128xf32>
    %222 = vector.extract_strided_slice %216 {offsets = [0, 128], sizes = [8, 128], strides = [1, 1]} : vector<8x512xf32> to vector<8x128xf32>
    %cst_91 = arith.constant 5.000000e-01 : f32
    %223 = vector.broadcast %cst_91 : f32 to vector<8x128xf32>
    %224 = arith.mulf %223, %222 : vector<8x128xf32>
    %cst_92 = arith.constant 5.000000e-01 : f32
    %225 = vector.broadcast %cst_92 : f32 to vector<8x128xf32>
    %226 = arith.addf %224, %225 : vector<8x128xf32>
    %227 = vector.extract_strided_slice %216 {offsets = [0, 256], sizes = [8, 128], strides = [1, 1]} : vector<8x512xf32> to vector<8x128xf32>
    %228 = vector.extract_strided_slice %216 {offsets = [0, 384], sizes = [8, 128], strides = [1, 1]} : vector<8x512xf32> to vector<8x128xf32>
    %cst_93 = arith.constant 5.000000e-01 : f32
    %229 = vector.broadcast %cst_93 : f32 to vector<8x128xf32>
    %230 = arith.mulf %229, %228 : vector<8x128xf32>
    %cst_94 = arith.constant 5.000000e-01 : f32
    %231 = vector.broadcast %cst_94 : f32 to vector<8x128xf32>
    %232 = arith.addf %230, %231 : vector<8x128xf32>
    %233 = arith.mulf %226, %179 : vector<8x128xf32>
    %234 = arith.mulf %221, %227 : vector<8x128xf32>
    %235 = arith.addf %233, %234 : vector<8x128xf32>
    %236 = math.tanh %235 : vector<8x128xf32>
    %237 = arith.mulf %232, %236 : vector<8x128xf32>
    %238 = arith.truncf %237 : vector<8x128xf32> to vector<8x128xbf16>
    %c0_95 = arith.constant 0 : index
    %c0_96 = arith.constant 0 : index
    %239 = vector.load %arg6[%c0_95, %c0_96] : memref<128x512xbf16, #tpu.memory_space<vmem>>, vector<128x512xbf16>
    %cst_97 = arith.constant dense<0.000000e+00> : vector<8x512xf32>
    %240 = tpu.matmul %238, %239, %cst_97 {dimension_numbers = #tpu.dot_dimension_numbers<[1], [0], [0], [1], [0, 0, 1, 1], [], []>} : vector<8x128xbf16>, vector<128x512xbf16>, vector<8x512xf32> -> vector<8x512xf32>
    %241 = arith.truncf %210 : vector<8x128xf32> to vector<8x128xbf16>
    %c0_98 = arith.constant 0 : index
    %c0_99 = arith.constant 0 : index
    %242 = vector.load %arg3[%c0_98, %c0_99] : memref<128x512xbf16, #tpu.memory_space<vmem>>, vector<128x512xbf16>
    %cst_100 = arith.constant dense<0.000000e+00> : vector<8x512xf32>
    %243 = tpu.matmul %241, %242, %cst_100 {dimension_numbers = #tpu.dot_dimension_numbers<[1], [0], [0], [1], [0, 0, 1, 1], [], []>} : vector<8x128xbf16>, vector<128x512xbf16>, vector<8x512xf32> -> vector<8x512xf32>
    %244 = arith.addf %6, %243 : vector<8x512xf32>
    %245 = math.tanh %244 : vector<8x512xf32>
    %246 = vector.extract_strided_slice %245 {offsets = [0, 0], sizes = [8, 128], strides = [1, 1]} : vector<8x512xf32> to vector<8x128xf32>
    %cst_101 = arith.constant 5.000000e-01 : f32
    %247 = vector.broadcast %cst_101 : f32 to vector<8x128xf32>
    %248 = arith.mulf %247, %246 : vector<8x128xf32>
    %cst_102 = arith.constant 5.000000e-01 : f32
    %249 = vector.broadcast %cst_102 : f32 to vector<8x128xf32>
    %250 = arith.addf %248, %249 : vector<8x128xf32>
    %251 = vector.extract_strided_slice %245 {offsets = [0, 128], sizes = [8, 128], strides = [1, 1]} : vector<8x512xf32> to vector<8x128xf32>
    %cst_103 = arith.constant 5.000000e-01 : f32
    %252 = vector.broadcast %cst_103 : f32 to vector<8x128xf32>
    %253 = arith.mulf %252, %251 : vector<8x128xf32>
    %cst_104 = arith.constant 5.000000e-01 : f32
    %254 = vector.broadcast %cst_104 : f32 to vector<8x128xf32>
    %255 = arith.addf %253, %254 : vector<8x128xf32>
    %256 = vector.extract_strided_slice %245 {offsets = [0, 256], sizes = [8, 128], strides = [1, 1]} : vector<8x512xf32> to vector<8x128xf32>
    %257 = vector.extract_strided_slice %245 {offsets = [0, 384], sizes = [8, 128], strides = [1, 1]} : vector<8x512xf32> to vector<8x128xf32>
    %cst_105 = arith.constant 5.000000e-01 : f32
    %258 = vector.broadcast %cst_105 : f32 to vector<8x128xf32>
    %259 = arith.mulf %258, %257 : vector<8x128xf32>
    %cst_106 = arith.constant 5.000000e-01 : f32
    %260 = vector.broadcast %cst_106 : f32 to vector<8x128xf32>
    %261 = arith.addf %259, %260 : vector<8x128xf32>
    %262 = arith.mulf %255, %208 : vector<8x128xf32>
    %263 = arith.mulf %250, %256 : vector<8x128xf32>
    %264 = arith.addf %262, %263 : vector<8x128xf32>
    %265 = math.tanh %264 : vector<8x128xf32>
    %266 = arith.mulf %261, %265 : vector<8x128xf32>
    %267 = arith.truncf %266 : vector<8x128xf32> to vector<8x128xbf16>
    %c0_107 = arith.constant 0 : index
    %c0_108 = arith.constant 0 : index
    %268 = vector.load %arg5[%c0_107, %c0_108] : memref<128x512xbf16, #tpu.memory_space<vmem>>, vector<128x512xbf16>
    %cst_109 = arith.constant dense<0.000000e+00> : vector<8x512xf32>
    %269 = tpu.matmul %267, %268, %cst_109 {dimension_numbers = #tpu.dot_dimension_numbers<[1], [0], [0], [1], [0, 0, 1, 1], [], []>} : vector<8x128xbf16>, vector<128x512xbf16>, vector<8x512xf32> -> vector<8x512xf32>
    %270 = arith.addf %240, %269 : vector<8x512xf32>
    %271 = arith.addf %270, %9 : vector<8x512xf32>
    %272 = math.tanh %271 : vector<8x512xf32>
    %273 = vector.extract_strided_slice %272 {offsets = [0, 0], sizes = [8, 128], strides = [1, 1]} : vector<8x512xf32> to vector<8x128xf32>
    %cst_110 = arith.constant 5.000000e-01 : f32
    %274 = vector.broadcast %cst_110 : f32 to vector<8x128xf32>
    %275 = arith.mulf %274, %273 : vector<8x128xf32>
    %cst_111 = arith.constant 5.000000e-01 : f32
    %276 = vector.broadcast %cst_111 : f32 to vector<8x128xf32>
    %277 = arith.addf %275, %276 : vector<8x128xf32>
    %278 = vector.extract_strided_slice %272 {offsets = [0, 128], sizes = [8, 128], strides = [1, 1]} : vector<8x512xf32> to vector<8x128xf32>
    %cst_112 = arith.constant 5.000000e-01 : f32
    %279 = vector.broadcast %cst_112 : f32 to vector<8x128xf32>
    %280 = arith.mulf %279, %278 : vector<8x128xf32>
    %cst_113 = arith.constant 5.000000e-01 : f32
    %281 = vector.broadcast %cst_113 : f32 to vector<8x128xf32>
    %282 = arith.addf %280, %281 : vector<8x128xf32>
    %283 = vector.extract_strided_slice %272 {offsets = [0, 256], sizes = [8, 128], strides = [1, 1]} : vector<8x512xf32> to vector<8x128xf32>
    %284 = vector.extract_strided_slice %272 {offsets = [0, 384], sizes = [8, 128], strides = [1, 1]} : vector<8x512xf32> to vector<8x128xf32>
    %cst_114 = arith.constant 5.000000e-01 : f32
    %285 = vector.broadcast %cst_114 : f32 to vector<8x128xf32>
    %286 = arith.mulf %285, %284 : vector<8x128xf32>
    %cst_115 = arith.constant 5.000000e-01 : f32
    %287 = vector.broadcast %cst_115 : f32 to vector<8x128xf32>
    %288 = arith.addf %286, %287 : vector<8x128xf32>
    %289 = arith.mulf %282, %235 : vector<8x128xf32>
    %290 = arith.mulf %277, %283 : vector<8x128xf32>
    %291 = arith.addf %289, %290 : vector<8x128xf32>
    %292 = math.tanh %291 : vector<8x128xf32>
    %293 = arith.mulf %288, %292 : vector<8x128xf32>
    %294 = arith.truncf %293 : vector<8x128xf32> to vector<8x128xbf16>
    %c0_116 = arith.constant 0 : index
    %c0_117 = arith.constant 0 : index
    %295 = vector.load %arg6[%c0_116, %c0_117] : memref<128x512xbf16, #tpu.memory_space<vmem>>, vector<128x512xbf16>
    %cst_118 = arith.constant dense<0.000000e+00> : vector<8x512xf32>
    %296 = tpu.matmul %294, %295, %cst_118 {dimension_numbers = #tpu.dot_dimension_numbers<[1], [0], [0], [1], [0, 0, 1, 1], [], []>} : vector<8x128xbf16>, vector<128x512xbf16>, vector<8x512xf32> -> vector<8x512xf32>
    %297 = arith.truncf %266 : vector<8x128xf32> to vector<8x128xbf16>
    %c0_119 = arith.constant 0 : index
    %c0_120 = arith.constant 0 : index
    %298 = vector.load %arg3[%c0_119, %c0_120] : memref<128x512xbf16, #tpu.memory_space<vmem>>, vector<128x512xbf16>
    %cst_121 = arith.constant dense<0.000000e+00> : vector<8x512xf32>
    %299 = tpu.matmul %297, %298, %cst_121 {dimension_numbers = #tpu.dot_dimension_numbers<[1], [0], [0], [1], [0, 0, 1, 1], [], []>} : vector<8x128xbf16>, vector<128x512xbf16>, vector<8x512xf32> -> vector<8x512xf32>
    %300 = arith.addf %6, %299 : vector<8x512xf32>
    %301 = math.tanh %300 : vector<8x512xf32>
    %302 = vector.extract_strided_slice %301 {offsets = [0, 0], sizes = [8, 128], strides = [1, 1]} : vector<8x512xf32> to vector<8x128xf32>
    %cst_122 = arith.constant 5.000000e-01 : f32
    %303 = vector.broadcast %cst_122 : f32 to vector<8x128xf32>
    %304 = arith.mulf %303, %302 : vector<8x128xf32>
    %cst_123 = arith.constant 5.000000e-01 : f32
    %305 = vector.broadcast %cst_123 : f32 to vector<8x128xf32>
    %306 = arith.addf %304, %305 : vector<8x128xf32>
    %307 = vector.extract_strided_slice %301 {offsets = [0, 128], sizes = [8, 128], strides = [1, 1]} : vector<8x512xf32> to vector<8x128xf32>
    %cst_124 = arith.constant 5.000000e-01 : f32
    %308 = vector.broadcast %cst_124 : f32 to vector<8x128xf32>
    %309 = arith.mulf %308, %307 : vector<8x128xf32>
    %cst_125 = arith.constant 5.000000e-01 : f32
    %310 = vector.broadcast %cst_125 : f32 to vector<8x128xf32>
    %311 = arith.addf %309, %310 : vector<8x128xf32>
    %312 = vector.extract_strided_slice %301 {offsets = [0, 256], sizes = [8, 128], strides = [1, 1]} : vector<8x512xf32> to vector<8x128xf32>
    %313 = vector.extract_strided_slice %301 {offsets = [0, 384], sizes = [8, 128], strides = [1, 1]} : vector<8x512xf32> to vector<8x128xf32>
    %cst_126 = arith.constant 5.000000e-01 : f32
    %314 = vector.broadcast %cst_126 : f32 to vector<8x128xf32>
    %315 = arith.mulf %314, %313 : vector<8x128xf32>
    %cst_127 = arith.constant 5.000000e-01 : f32
    %316 = vector.broadcast %cst_127 : f32 to vector<8x128xf32>
    %317 = arith.addf %315, %316 : vector<8x128xf32>
    %318 = arith.mulf %311, %264 : vector<8x128xf32>
    %319 = arith.mulf %306, %312 : vector<8x128xf32>
    %320 = arith.addf %318, %319 : vector<8x128xf32>
    %321 = math.tanh %320 : vector<8x128xf32>
    %322 = arith.mulf %317, %321 : vector<8x128xf32>
    %323 = arith.truncf %322 : vector<8x128xf32> to vector<8x128xbf16>
    %c0_128 = arith.constant 0 : index
    %c0_129 = arith.constant 0 : index
    %324 = vector.load %arg5[%c0_128, %c0_129] : memref<128x512xbf16, #tpu.memory_space<vmem>>, vector<128x512xbf16>
    %cst_130 = arith.constant dense<0.000000e+00> : vector<8x512xf32>
    %325 = tpu.matmul %323, %324, %cst_130 {dimension_numbers = #tpu.dot_dimension_numbers<[1], [0], [0], [1], [0, 0, 1, 1], [], []>} : vector<8x128xbf16>, vector<128x512xbf16>, vector<8x512xf32> -> vector<8x512xf32>
    %326 = arith.addf %296, %325 : vector<8x512xf32>
    %327 = arith.addf %326, %9 : vector<8x512xf32>
    %328 = math.tanh %327 : vector<8x512xf32>
    %329 = vector.extract_strided_slice %328 {offsets = [0, 0], sizes = [8, 128], strides = [1, 1]} : vector<8x512xf32> to vector<8x128xf32>
    %cst_131 = arith.constant 5.000000e-01 : f32
    %330 = vector.broadcast %cst_131 : f32 to vector<8x128xf32>
    %331 = arith.mulf %330, %329 : vector<8x128xf32>
    %cst_132 = arith.constant 5.000000e-01 : f32
    %332 = vector.broadcast %cst_132 : f32 to vector<8x128xf32>
    %333 = arith.addf %331, %332 : vector<8x128xf32>
    %334 = vector.extract_strided_slice %328 {offsets = [0, 128], sizes = [8, 128], strides = [1, 1]} : vector<8x512xf32> to vector<8x128xf32>
    %cst_133 = arith.constant 5.000000e-01 : f32
    %335 = vector.broadcast %cst_133 : f32 to vector<8x128xf32>
    %336 = arith.mulf %335, %334 : vector<8x128xf32>
    %cst_134 = arith.constant 5.000000e-01 : f32
    %337 = vector.broadcast %cst_134 : f32 to vector<8x128xf32>
    %338 = arith.addf %336, %337 : vector<8x128xf32>
    %339 = vector.extract_strided_slice %328 {offsets = [0, 256], sizes = [8, 128], strides = [1, 1]} : vector<8x512xf32> to vector<8x128xf32>
    %340 = vector.extract_strided_slice %328 {offsets = [0, 384], sizes = [8, 128], strides = [1, 1]} : vector<8x512xf32> to vector<8x128xf32>
    %cst_135 = arith.constant 5.000000e-01 : f32
    %341 = vector.broadcast %cst_135 : f32 to vector<8x128xf32>
    %342 = arith.mulf %341, %340 : vector<8x128xf32>
    %cst_136 = arith.constant 5.000000e-01 : f32
    %343 = vector.broadcast %cst_136 : f32 to vector<8x128xf32>
    %344 = arith.addf %342, %343 : vector<8x128xf32>
    %345 = arith.mulf %338, %291 : vector<8x128xf32>
    %346 = arith.mulf %333, %339 : vector<8x128xf32>
    %347 = arith.addf %345, %346 : vector<8x128xf32>
    %348 = math.tanh %347 : vector<8x128xf32>
    %349 = arith.mulf %344, %348 : vector<8x128xf32>
    %350 = arith.truncf %349 : vector<8x128xf32> to vector<8x128xbf16>
    %c0_137 = arith.constant 0 : index
    %c0_138 = arith.constant 0 : index
    %351 = vector.load %arg6[%c0_137, %c0_138] : memref<128x512xbf16, #tpu.memory_space<vmem>>, vector<128x512xbf16>
    %cst_139 = arith.constant dense<0.000000e+00> : vector<8x512xf32>
    %352 = tpu.matmul %350, %351, %cst_139 {dimension_numbers = #tpu.dot_dimension_numbers<[1], [0], [0], [1], [0, 0, 1, 1], [], []>} : vector<8x128xbf16>, vector<128x512xbf16>, vector<8x512xf32> -> vector<8x512xf32>
    %353 = arith.truncf %322 : vector<8x128xf32> to vector<8x128xbf16>
    %c0_140 = arith.constant 0 : index
    %c0_141 = arith.constant 0 : index
    %354 = vector.load %arg3[%c0_140, %c0_141] : memref<128x512xbf16, #tpu.memory_space<vmem>>, vector<128x512xbf16>
    %cst_142 = arith.constant dense<0.000000e+00> : vector<8x512xf32>
    %355 = tpu.matmul %353, %354, %cst_142 {dimension_numbers = #tpu.dot_dimension_numbers<[1], [0], [0], [1], [0, 0, 1, 1], [], []>} : vector<8x128xbf16>, vector<128x512xbf16>, vector<8x512xf32> -> vector<8x512xf32>
    %356 = arith.addf %6, %355 : vector<8x512xf32>
    %357 = math.tanh %356 : vector<8x512xf32>
    %358 = vector.extract_strided_slice %357 {offsets = [0, 0], sizes = [8, 128], strides = [1, 1]} : vector<8x512xf32> to vector<8x128xf32>
    %cst_143 = arith.constant 5.000000e-01 : f32
    %359 = vector.broadcast %cst_143 : f32 to vector<8x128xf32>
    %360 = arith.mulf %359, %358 : vector<8x128xf32>
    %cst_144 = arith.constant 5.000000e-01 : f32
    %361 = vector.broadcast %cst_144 : f32 to vector<8x128xf32>
    %362 = arith.addf %360, %361 : vector<8x128xf32>
    %363 = vector.extract_strided_slice %357 {offsets = [0, 128], sizes = [8, 128], strides = [1, 1]} : vector<8x512xf32> to vector<8x128xf32>
    %cst_145 = arith.constant 5.000000e-01 : f32
    %364 = vector.broadcast %cst_145 : f32 to vector<8x128xf32>
    %365 = arith.mulf %364, %363 : vector<8x128xf32>
    %cst_146 = arith.constant 5.000000e-01 : f32
    %366 = vector.broadcast %cst_146 : f32 to vector<8x128xf32>
    %367 = arith.addf %365, %366 : vector<8x128xf32>
    %368 = vector.extract_strided_slice %357 {offsets = [0, 256], sizes = [8, 128], strides = [1, 1]} : vector<8x512xf32> to vector<8x128xf32>
    %369 = vector.extract_strided_slice %357 {offsets = [0, 384], sizes = [8, 128], strides = [1, 1]} : vector<8x512xf32> to vector<8x128xf32>
    %cst_147 = arith.constant 5.000000e-01 : f32
    %370 = vector.broadcast %cst_147 : f32 to vector<8x128xf32>
    %371 = arith.mulf %370, %369 : vector<8x128xf32>
    %cst_148 = arith.constant 5.000000e-01 : f32
    %372 = vector.broadcast %cst_148 : f32 to vector<8x128xf32>
    %373 = arith.addf %371, %372 : vector<8x128xf32>
    %374 = arith.mulf %367, %320 : vector<8x128xf32>
    %375 = arith.mulf %362, %368 : vector<8x128xf32>
    %376 = arith.addf %374, %375 : vector<8x128xf32>
    %377 = math.tanh %376 : vector<8x128xf32>
    %378 = arith.mulf %373, %377 : vector<8x128xf32>
    %379 = arith.truncf %378 : vector<8x128xf32> to vector<8x128xbf16>
    %c0_149 = arith.constant 0 : index
    %c0_150 = arith.constant 0 : index
    %380 = vector.load %arg5[%c0_149, %c0_150] : memref<128x512xbf16, #tpu.memory_space<vmem>>, vector<128x512xbf16>
    %cst_151 = arith.constant dense<0.000000e+00> : vector<8x512xf32>
    %381 = tpu.matmul %379, %380, %cst_151 {dimension_numbers = #tpu.dot_dimension_numbers<[1], [0], [0], [1], [0, 0, 1, 1], [], []>} : vector<8x128xbf16>, vector<128x512xbf16>, vector<8x512xf32> -> vector<8x512xf32>
    %382 = arith.addf %352, %381 : vector<8x512xf32>
    %383 = arith.addf %382, %9 : vector<8x512xf32>
    %384 = math.tanh %383 : vector<8x512xf32>
    %385 = vector.extract_strided_slice %384 {offsets = [0, 0], sizes = [8, 128], strides = [1, 1]} : vector<8x512xf32> to vector<8x128xf32>
    %cst_152 = arith.constant 5.000000e-01 : f32
    %386 = vector.broadcast %cst_152 : f32 to vector<8x128xf32>
    %387 = arith.mulf %386, %385 : vector<8x128xf32>
    %cst_153 = arith.constant 5.000000e-01 : f32
    %388 = vector.broadcast %cst_153 : f32 to vector<8x128xf32>
    %389 = arith.addf %387, %388 : vector<8x128xf32>
    %390 = vector.extract_strided_slice %384 {offsets = [0, 128], sizes = [8, 128], strides = [1, 1]} : vector<8x512xf32> to vector<8x128xf32>
    %cst_154 = arith.constant 5.000000e-01 : f32
    %391 = vector.broadcast %cst_154 : f32 to vector<8x128xf32>
    %392 = arith.mulf %391, %390 : vector<8x128xf32>
    %cst_155 = arith.constant 5.000000e-01 : f32
    %393 = vector.broadcast %cst_155 : f32 to vector<8x128xf32>
    %394 = arith.addf %392, %393 : vector<8x128xf32>
    %395 = vector.extract_strided_slice %384 {offsets = [0, 256], sizes = [8, 128], strides = [1, 1]} : vector<8x512xf32> to vector<8x128xf32>
    %396 = vector.extract_strided_slice %384 {offsets = [0, 384], sizes = [8, 128], strides = [1, 1]} : vector<8x512xf32> to vector<8x128xf32>
    %cst_156 = arith.constant 5.000000e-01 : f32
    %397 = vector.broadcast %cst_156 : f32 to vector<8x128xf32>
    %398 = arith.mulf %397, %396 : vector<8x128xf32>
    %cst_157 = arith.constant 5.000000e-01 : f32
    %399 = vector.broadcast %cst_157 : f32 to vector<8x128xf32>
    %400 = arith.addf %398, %399 : vector<8x128xf32>
    %401 = arith.mulf %394, %347 : vector<8x128xf32>
    %402 = arith.mulf %389, %395 : vector<8x128xf32>
    %403 = arith.addf %401, %402 : vector<8x128xf32>
    %404 = math.tanh %403 : vector<8x128xf32>
    %405 = arith.mulf %400, %404 : vector<8x128xf32>
    %406 = arith.truncf %405 : vector<8x128xf32> to vector<8x128xbf16>
    %c0_158 = arith.constant 0 : index
    %c0_159 = arith.constant 0 : index
    %407 = vector.load %arg6[%c0_158, %c0_159] : memref<128x512xbf16, #tpu.memory_space<vmem>>, vector<128x512xbf16>
    %cst_160 = arith.constant dense<0.000000e+00> : vector<8x512xf32>
    %408 = tpu.matmul %406, %407, %cst_160 {dimension_numbers = #tpu.dot_dimension_numbers<[1], [0], [0], [1], [0, 0, 1, 1], [], []>} : vector<8x128xbf16>, vector<128x512xbf16>, vector<8x512xf32> -> vector<8x512xf32>
    %409 = arith.truncf %378 : vector<8x128xf32> to vector<8x128xbf16>
    %c0_161 = arith.constant 0 : index
    %c0_162 = arith.constant 0 : index
    %410 = vector.load %arg3[%c0_161, %c0_162] : memref<128x512xbf16, #tpu.memory_space<vmem>>, vector<128x512xbf16>
    %cst_163 = arith.constant dense<0.000000e+00> : vector<8x512xf32>
    %411 = tpu.matmul %409, %410, %cst_163 {dimension_numbers = #tpu.dot_dimension_numbers<[1], [0], [0], [1], [0, 0, 1, 1], [], []>} : vector<8x128xbf16>, vector<128x512xbf16>, vector<8x512xf32> -> vector<8x512xf32>
    %412 = arith.addf %6, %411 : vector<8x512xf32>
    %413 = math.tanh %412 : vector<8x512xf32>
    %414 = vector.extract_strided_slice %413 {offsets = [0, 0], sizes = [8, 128], strides = [1, 1]} : vector<8x512xf32> to vector<8x128xf32>
    %cst_164 = arith.constant 5.000000e-01 : f32
    %415 = vector.broadcast %cst_164 : f32 to vector<8x128xf32>
    %416 = arith.mulf %415, %414 : vector<8x128xf32>
    %cst_165 = arith.constant 5.000000e-01 : f32
    %417 = vector.broadcast %cst_165 : f32 to vector<8x128xf32>
    %418 = arith.addf %416, %417 : vector<8x128xf32>
    %419 = vector.extract_strided_slice %413 {offsets = [0, 128], sizes = [8, 128], strides = [1, 1]} : vector<8x512xf32> to vector<8x128xf32>
    %cst_166 = arith.constant 5.000000e-01 : f32
    %420 = vector.broadcast %cst_166 : f32 to vector<8x128xf32>
    %421 = arith.mulf %420, %419 : vector<8x128xf32>
    %cst_167 = arith.constant 5.000000e-01 : f32
    %422 = vector.broadcast %cst_167 : f32 to vector<8x128xf32>
    %423 = arith.addf %421, %422 : vector<8x128xf32>
    %424 = vector.extract_strided_slice %413 {offsets = [0, 256], sizes = [8, 128], strides = [1, 1]} : vector<8x512xf32> to vector<8x128xf32>
    %425 = vector.extract_strided_slice %413 {offsets = [0, 384], sizes = [8, 128], strides = [1, 1]} : vector<8x512xf32> to vector<8x128xf32>
    %cst_168 = arith.constant 5.000000e-01 : f32
    %426 = vector.broadcast %cst_168 : f32 to vector<8x128xf32>
    %427 = arith.mulf %426, %425 : vector<8x128xf32>
    %cst_169 = arith.constant 5.000000e-01 : f32
    %428 = vector.broadcast %cst_169 : f32 to vector<8x128xf32>
    %429 = arith.addf %427, %428 : vector<8x128xf32>
    %430 = arith.mulf %423, %376 : vector<8x128xf32>
    %431 = arith.mulf %418, %424 : vector<8x128xf32>
    %432 = arith.addf %430, %431 : vector<8x128xf32>
    %433 = math.tanh %432 : vector<8x128xf32>
    %434 = arith.mulf %429, %433 : vector<8x128xf32>
    %435 = arith.truncf %434 : vector<8x128xf32> to vector<8x128xbf16>
    %c0_170 = arith.constant 0 : index
    %c0_171 = arith.constant 0 : index
    %436 = vector.load %arg5[%c0_170, %c0_171] : memref<128x512xbf16, #tpu.memory_space<vmem>>, vector<128x512xbf16>
    %cst_172 = arith.constant dense<0.000000e+00> : vector<8x512xf32>
    %437 = tpu.matmul %435, %436, %cst_172 {dimension_numbers = #tpu.dot_dimension_numbers<[1], [0], [0], [1], [0, 0, 1, 1], [], []>} : vector<8x128xbf16>, vector<128x512xbf16>, vector<8x512xf32> -> vector<8x512xf32>
    %438 = arith.addf %408, %437 : vector<8x512xf32>
    %439 = arith.addf %438, %9 : vector<8x512xf32>
    %440 = math.tanh %439 : vector<8x512xf32>
    %441 = vector.extract_strided_slice %440 {offsets = [0, 0], sizes = [8, 128], strides = [1, 1]} : vector<8x512xf32> to vector<8x128xf32>
    %cst_173 = arith.constant 5.000000e-01 : f32
    %442 = vector.broadcast %cst_173 : f32 to vector<8x128xf32>
    %443 = arith.mulf %442, %441 : vector<8x128xf32>
    %cst_174 = arith.constant 5.000000e-01 : f32
    %444 = vector.broadcast %cst_174 : f32 to vector<8x128xf32>
    %445 = arith.addf %443, %444 : vector<8x128xf32>
    %446 = vector.extract_strided_slice %440 {offsets = [0, 128], sizes = [8, 128], strides = [1, 1]} : vector<8x512xf32> to vector<8x128xf32>
    %cst_175 = arith.constant 5.000000e-01 : f32
    %447 = vector.broadcast %cst_175 : f32 to vector<8x128xf32>
    %448 = arith.mulf %447, %446 : vector<8x128xf32>
    %cst_176 = arith.constant 5.000000e-01 : f32
    %449 = vector.broadcast %cst_176 : f32 to vector<8x128xf32>
    %450 = arith.addf %448, %449 : vector<8x128xf32>
    %451 = vector.extract_strided_slice %440 {offsets = [0, 256], sizes = [8, 128], strides = [1, 1]} : vector<8x512xf32> to vector<8x128xf32>
    %452 = vector.extract_strided_slice %440 {offsets = [0, 384], sizes = [8, 128], strides = [1, 1]} : vector<8x512xf32> to vector<8x128xf32>
    %cst_177 = arith.constant 5.000000e-01 : f32
    %453 = vector.broadcast %cst_177 : f32 to vector<8x128xf32>
    %454 = arith.mulf %453, %452 : vector<8x128xf32>
    %cst_178 = arith.constant 5.000000e-01 : f32
    %455 = vector.broadcast %cst_178 : f32 to vector<8x128xf32>
    %456 = arith.addf %454, %455 : vector<8x128xf32>
    %457 = arith.mulf %450, %403 : vector<8x128xf32>
    %458 = arith.mulf %445, %451 : vector<8x128xf32>
    %459 = arith.addf %457, %458 : vector<8x128xf32>
    %460 = math.tanh %459 : vector<8x128xf32>
    %461 = arith.mulf %456, %460 : vector<8x128xf32>
    %462 = tpu.concatenate %69, %125, %181, %237, %293, %349, %405, %461 in 0 : vector<8x128xf32>, vector<8x128xf32>, vector<8x128xf32>, vector<8x128xf32>, vector<8x128xf32>, vector<8x128xf32>, vector<8x128xf32>, vector<8x128xf32> -> vector<64x128xf32>
    %463 = arith.truncf %462 : vector<64x128xf32> to vector<64x128xbf16>
    %c0_179 = arith.constant 0 : index
    %c0_180 = arith.constant 0 : index
    %464 = vector.load %arg8[%c0_179, %c0_180] : memref<128x1xbf16, #tpu.memory_space<vmem>>, vector<128x1xbf16>
    %cst_181 = arith.constant dense<0.000000e+00> : vector<64x1xf32>
    %465 = tpu.matmul %463, %464, %cst_181 {dimension_numbers = #tpu.dot_dimension_numbers<[1], [0], [0], [1], [0, 0, 1, 1], [], []>} : vector<64x128xbf16>, vector<128x1xbf16>, vector<64x1xf32> -> vector<64x1xf32>
    %c0_182 = arith.constant 0 : index
    %c0_183 = arith.constant 0 : index
    %466 = vector.load %arg9[%c0_182, %c0_183] : memref<1x1xf32, #tpu.memory_space<vmem>>, vector<1x1xf32>
    %467 = vector.broadcast %466 : vector<1x1xf32> to vector<64x1xf32>
    %468 = arith.addf %465, %467 : vector<64x1xf32>
    %c0_184 = arith.constant 0 : index
    %c0_185 = arith.constant 0 : index
    %469 = vector.load %arg10[%c0_184, %c0_185] : memref<64x1xf32, #tpu.memory_space<vmem>>, vector<64x1xf32>
    tpu.vector_store %arg10[%c0_184, %c0_185], %468 {strides = array<i32>} : memref<64x1xf32, #tpu.memory_space<vmem>>, vector<64x1xf32>,
    return
  }
  func.func @transform_0(%arg0: i32) -> (i32, i32) {
    %c0_i32 = arith.constant 0 : i32
    %c0_i32_0 = arith.constant 0 : i32
    return %arg0, %c0_i32 : i32, i32
  }
  func.func @transform_1(%arg0: i32) -> (i32, i32) {
    %c0_i32 = arith.constant 0 : i32
    %c0_i32_0 = arith.constant 0 : i32
    %c0_i32_1 = arith.constant 0 : i32
    return %c0_i32, %c0_i32_0 : i32, i32
  }
  func.func @transform_2(%arg0: i32) -> (i32, i32) {
    %c0_i32 = arith.constant 0 : i32
    %c0_i32_0 = arith.constant 0 : i32
    %c0_i32_1 = arith.constant 0 : i32
    return %c0_i32, %c0_i32_0 : i32, i32
  }
  func.func @transform_3(%arg0: i32) -> (i32, i32) {
    %c0_i32 = arith.constant 0 : i32
    %c0_i32_0 = arith.constant 0 : i32
    %c0_i32_1 = arith.constant 0 : i32
    return %c0_i32, %c0_i32_0 : i32, i32
  }
  func.func @transform_4(%arg0: i32) -> (i32, i32) {
    %c0_i32 = arith.constant 0 : i32
    %c0_i32_0 = arith.constant 0 : i32
    %c0_i32_1 = arith.constant 0 : i32
    return %c0_i32, %c0_i32_0 : i32, i32
  }
  func.func @transform_5(%arg0: i32) -> (i32, i32) {
    %c0_i32 = arith.constant 0 : i32
    %c0_i32_0 = arith.constant 0 : i32
    %c0_i32_1 = arith.constant 0 : i32
    return %c0_i32, %c0_i32_0 : i32, i32
  }
  func.func @transform_6(%arg0: i32) -> (i32, i32) {
    %c0_i32 = arith.constant 0 : i32
    %c0_i32_0 = arith.constant 0 : i32
    %c0_i32_1 = arith.constant 0 : i32
    return %c0_i32, %c0_i32_0 : i32, i32
  }
  func.func @transform_7(%arg0: i32) -> (i32, i32) {
    %c0_i32 = arith.constant 0 : i32
    %c0_i32_0 = arith.constant 0 : i32
    %c0_i32_1 = arith.constant 0 : i32
    return %c0_i32, %c0_i32_0 : i32, i32
  }
  func.func @transform_8(%arg0: i32) -> (i32, i32) {
    %c0_i32 = arith.constant 0 : i32
    %c0_i32_0 = arith.constant 0 : i32
    %c0_i32_1 = arith.constant 0 : i32
    return %c0_i32, %c0_i32_0 : i32, i32
  }
  func.func @transform_9(%arg0: i32) -> (i32, i32) {
    %c0_i32 = arith.constant 0 : i32
    %c0_i32_0 = arith.constant 0 : i32
    return %arg0, %c0_i32 : i32, i32
  }
}

</mosaic_0001>

<bundles_post_ra>
// kernel: tpu_custom_call.1
= control target key start
LH: loop header
LB: loop body
LE: loop exit
PB: predicated region body
PF: predicated region fallthrough
CT: control target
= control target key end

     0   :  { %s6510_s0 = inlined_call_operand.hbm [shape: f32[16,32], index: 0, kind: input, shape index: {}]   ;;  %s6511_s1 = inlined_call_operand.vmem [shape: bf16[32,512], index: 1, kind: input, shape index: {}]   ;;  %s6512_s2 = inlined_call_operand.hbm [shape: bf16[128,512], index: 2, kind: input, shape index: {}]   ;;  %s6513_s3 = inlined_call_operand.vmem [shape: f32[1,512], index: 3, kind: input, shape index: {}]   ;;  %s6514_s4 = inlined_call_operand.hbm [shape: bf16[128,512], index: 4, kind: input, shape index: {}]   ;;  %s6515_s5 = inlined_call_operand.hbm [shape: bf16[128,512], index: 5, kind: input, shape index: {}]   ;;  %s6516_s6 = inlined_call_operand.vmem [shape: f32[1,512], index: 6, kind: input, shape index: {}]   ;;  %s6517_s7 = inlined_call_operand.vmem [shape: bf16[128,1], index: 7, kind: input, shape index: {}]   ;;  %s6518_s8 = inlined_call_operand.<no memory space> [shape: f32[1,1], index: 8, kind: input, shape index: {}]   ;;  %s6519_s9 = inlined_call_operand.vmem [shape: f32[128,1], index: 9, kind: output, shape index: {}]  }
   0x1   :  { %v14_v0 = vstv %s6518_s8 }
   0x2   :  { %15 = vst [vmem:[#allocation2] sm:$0x1] %v14_v0 }
   0x3   :  { %16 = vsyncpa [#allocation4], 0 }
   0x4   :  { %18 = vsyncpa [#allocation4 + $0x1], 0 }
   0x5   :  { %19 = vsyncpa [#allocation6], 0 }
   0x6   :  { %20 = vsyncpa [#allocation9], 0  ;;  %s4654_s11 = smov 0   ;;  %s4656_s12 = smov 0  }
   0x7   :  { %s4658_s13 = smov 0   ;;  %s4660_s14 = smov 0  }
   0x8 LB: > { %s6523_s8 = sadd.s32 4294967295, %s4592_s14   ;;  %p46_p0 = scmp.ne.s32.totalorder %s4584_s12, %s4580_s11  ;;  %s4592_s14 = sphi %s4660_s14, %s7258_s14   ;;  %s4588_s13 = sphi %s4658_s13, %s7257_s13   ;;  %s4584_s12 = sphi %s4656_s12, %s7256_s12   ;;  %s4580_s11 = sphi %s4654_s11, %s7255_s11  }
   0x9   : > { %p4676_p1 = scmp.eq.s32.totalorder %s6523_s8, 0  ;;  %p3688_p2 = scmp.ge.s32.totalorder %s4592_s14, 1 }
   0xa   : > { %p251_p3 = scmp.lt.s32.totalorder %s4592_s14, 3  ;;  %s4594_s18 = smov [#allocation5]  }
   0xb   : > { %s6830_s15 = scalar_select %p4676_p1, 1, 0 }
   0xc   : > { %p4684_p4 = por %p4676_p1, %p46_p0  ;;  %p4688_p5 = pnand %p3688_p2, %p251_p3 }
   0xd   : > { %s266_s19 = sshll.u32 %s4594_s18, 4  ;;  %s4595_s21 = smov [#allocation7]   ;;  %s267_s19 = int_to_ptr.vmem [resolvable:$true] %s266_s19 }
   0xe   : > { %s6831_s16 = scalar_select %p4684_p4, 1, 0 }
   0xf   : > { %s6832_s17 = scalar_select %p4688_p5, 1, 0 }
  0x10   : > { %p3869_p6 = pneg %p4688_p5  ;;  %s282_s22 = sshll.u32 %s4595_s21, 4  ;;  %s283_s22 = int_to_ptr.vmem [resolvable:$true] %s282_s22 }
  0x11   : > { %s4596_s23 = smov [#allocation8]   ;;  %s4455_s25 = scalar_lea.vmem %s267_s19, 4096 }
  0x12   : > { %p4696_p7 = pnand %p3869_p6, %p4676_p1  ;;  %s295_s24 = sshll.u32 %s4596_s23, 4  ;;  %s296_s24 = int_to_ptr.vmem [resolvable:$true] %s295_s24 }
  0x13   : > { %p4456_p9 = scmp.ne.s32.totalorder %s267_s19, %s4455_s25  ;;  %p4463_p12 = scmp.lt.s32.totalorder %s267_s19, %s267_s19 }
  0x14   : > { %p4446_p8 = pneg %p4696_p7  ;;  %p4464_p13 = scmp.lt.s32.totalorder %s4455_s25, %s4455_s25 }
  0x16   : > { %p4458_p10 = pnand %p4456_p9, %p4446_p8  ;;  %p4465_p0 = por %p4464_p13, %p4463_p12 }
  0x18   : > { %p4459_p11 = pneg %p4458_p10 }
  0x1a   : > { %p4466_p2 = pnand %p4465_p0, %p4459_p11 }
  0x1c   : > { %4469 = shalt.err (!%p4466_p2)
}
  0x1d   : > { %s4597_s26 = smov 256   ;;  %s4598_s27 = smov 16  }
  0x1e   : > { %3872 = dma.hbm_to_vmem [thread:$0]  (!%p4696_p7), %s6512_s2, 4096, %s267_s19, [#allocation6], %s4597_s26, %s4597_s26, %s4598_s27  }
  0x1f   : > { %s4481_s30 = scalar_lea.vmem %s283_s22, 4096  ;;  %p4489_p10 = scmp.lt.s32.totalorder %s283_s22, %s283_s22 }
  0x20   : > { %p4482_p3 = scmp.ne.s32.totalorder %s283_s22, %s4481_s30  ;;  %p4490_p1 = scmp.lt.s32.totalorder %s4481_s30, %s4481_s30 }
  0x22   : > { %p4484_p6 = pnand %p4482_p3, %p4446_p8  ;;  %p4491_p12 = por %p4490_p1, %p4489_p10 }
  0x24   : > { %p4485_p9 = pneg %p4484_p6 }
  0x26   : > { %p4492_p11 = pnand %p4491_p12, %p4485_p9 }
  0x28   : > { %4495 = shalt.err (!%p4492_p11)
}
  0x29   : > { %3875 = dma.hbm_to_vmem [thread:$0]  (!%p4696_p7), %s6514_s4, 4096, %s283_s22, [#allocation6], %s4597_s26, %s4597_s26, %s4598_s27  }
  0x2a   : > { %s4507_s18 = scalar_lea.vmem %s296_s24, 4096  ;;  %p4515_p3 = scmp.lt.s32.totalorder %s296_s24, %s296_s24 }
  0x2b   : > { %p4508_p13 = scmp.ne.s32.totalorder %s296_s24, %s4507_s18  ;;  %p4516_p6 = scmp.lt.s32.totalorder %s4507_s18, %s4507_s18 }
  0x2d   : > { %p4510_p0 = pnand %p4508_p13, %p4446_p8  ;;  %p4517_p4 = por %p4516_p6, %p4515_p3 }
  0x2f   : > { %p4511_p2 = pneg %p4510_p0 }
  0x31   : > { %p4518_p1 = pnand %p4517_p4, %p4511_p2 }
  0x33   : > { %4521 = shalt.err (!%p4518_p1)
}
  0x34   : > { %3878 = dma.hbm_to_vmem [thread:$0]  (!%p4696_p7), %s6515_s5, 4096, %s296_s24, [#allocation9], %s4597_s26, %s4597_s26, %s4598_s27  }
  0x35   : > { %s4727_s22 = sadd.s32 1, %s4592_s14   ;;  %s33_s25 = sadd.s32 1, %s4588_s13 }
  0x36   : > { %s30_s23 = ssub.s32 %s4592_s14, %s4727_s22  ;;  %p40_p8 = scmp.ne.s32.totalorder %s4588_s13, %s4584_s12 }
  0x37   : > { %p31_p4 = scmp.eq.s32.totalorder %s30_s23, 0  ;;  %p41_p9 = scmp.eq.s32.totalorder %s4592_s14, 0 }
  0x38   : > { %p3886_p10 = scmp.lt.s32.totalorder %s4592_s14, 2  ;;  %s318_s28 = sand.u32 1, %s4588_s13  }
  0x39   : > { %s4737_s20 = scalar_select %p31_p4, %s4588_s13, %s33_s25  }
  0x3a   : > { %p42_p12 = por %p41_p9, %p40_p8  ;;  %s3693_s29 = sshll.u32 %s318_s28, 3 }
  0x3b   : > { %s3694_s30 = sshll.u32 %s4592_s14, 7  ;;  %s322_s24 = scalar_lea.vmem [#allocation3], %s3693_s29 }
  0x3c   : > { %s4744_s18 = scalar_lea.hbm %s6510_s0, %s3694_s30  ;;  %s329_s26 = sshll.u32 %s322_s24, 4  ;;  %s330_s26 = int_to_ptr.vmem [resolvable:$true] %s329_s26 }
  0x3d   : > { %p4746_p7 = pnand %p3886_p10, %p42_p12  ;;  %s319_s19 = scalar_lea.sflag [#allocation4], %s318_s28 }
  0x3e   : > { %s4522_s21 = scalar_lea.hbm %s4744_s18, 128  ;;  %s4527_s30 = scalar_lea.hbm %s6510_s0, 256 }
  0x3f   : > { %p4523_p11 = scmp.ne.s32.totalorder %s4744_s18, %s4522_s21  ;;  %p4524_p13 = pneg %p4746_p7 }
  0x40   : > { %p4528_p3 = scmp.lt.s32.totalorder %s4744_s18, %s6510_s0  ;;  %p4529_p6 = scmp.lt.s32.totalorder %s4527_s30, %s4522_s21 }
  0x41   : > { %p4525_p0 = pnand %p4524_p13, %p4523_p11 }
  0x42   : > { %p4530_p1 = por %p4529_p6, %p4528_p3 }
  0x43   : > { %p4526_p2 = pneg %p4525_p0 }
  0x45   : > { %p4531_p4 = pnand %p4530_p1, %p4526_p2 }
  0x47   : > { %4534 = shalt.err (!%p4531_p4)
}
  0x48   : > { %s4535_s11 = scalar_lea.vmem %s330_s26, 128  ;;  %s4599_s28 = smov [#allocation3]  }
  0x49   : > { %p4536_p8 = scmp.ne.s32.totalorder %s330_s26, %s4535_s11  ;;  %s4540_s24 = sshll.u32 %s4599_s28, 4  ;;  %s4541_s24 = int_to_ptr.vmem [resolvable:$false] %s4540_s24 }
  0x4a   : > { %s4542_s8 = scalar_lea.vmem %s4541_s24, 256  ;;  %p4543_p12 = scmp.lt.s32.totalorder %s330_s26, %s4541_s24 }
  0x4b   : > { %p4538_p9 = pnand %p4536_p8, %p4524_p13  ;;  %p4544_p11 = scmp.lt.s32.totalorder %s4542_s8, %s4535_s11 }
  0x4d   : > { %p4539_p10 = pneg %p4538_p9  ;;  %p4545_p0 = por %p4544_p11, %p4543_p12 }
  0x4f   : > { %p4546_p5 = pnand %p4545_p0, %p4539_p10 }
  0x51   : > { %4549 = shalt.err (!%p4546_p5)
}
  0x52   : > { %3882 = dma.hbm_to_vmem [thread:$0]  (!%p4746_p7), %s4744_s18, 128, %s330_s26, %s319_s19  }
  0x53   : > { %p6835_p2 = scmp.ne.s32.totalorder %s6832_s17, 0 }
  0x55   : > { %338 = sbr.rel (%p6835_p2) target bundleno = 2960 (0xb90), region = 56 }
  0x5a   : > { %s340_s21 = sand.u32 1, %s4584_s12   ;;  %p6836_p13 = scmp.ne.s32.totalorder %s6831_s16, 0 }
  0x5b   : > { %s3696_s23 = sshll.u32 %s340_s21, 3  ;;  %s341_s25 = scalar_lea.sflag [#allocation4], %s340_s21 }
  0x5c   : > { %s344_s30 = scalar_lea.vmem [#allocation3], %s3696_s23 }
  0x5d   : > { %4567 = dma.done.wait (%p6836_p13), %s341_s25, 128  }
  0x5e   : > { %4569 = vsyncadd (%p6836_p13), %s341_s25, 4294967168  ;;  %p6837_p5 = scmp.ne.s32.totalorder %s6830_s15, 0 }
  0x60   : > { %4571 = dma.done.wait (%p6837_p5), [#allocation6], 8192  }
  0x61   : > { %4573 = vsyncadd (%p6837_p5), [#allocation6], 4294959104 }
  0x62   : > { %4575 = dma.done.wait (%p6837_p5), [#allocation9], 4096  }
  0x63   : > { %4577 = vsyncadd (%p6837_p5), [#allocation9], 4294963200  ;;  %v6525_v1 = vmov 0   ;;  %v3928_v2 = vld [vmem:[%s6511_s1 + $0x24] ss:$16 sps:$4 sm:$0xff]   ;;  %vm470_vm0 = vcmask 261120  }
  0x64   : > { %506 = vmatprep.mubr.bf16.mxu1 %v6525_v1  ;;  %834 = vmatprep.mubr.bf16.mxu0 %v6525_v1  ;;  %v4784_v3 = vld [vmem:[#allocation5 + $0xe4] ss:$16 sps:$4 sm:$0xff]   ;;  %v3932_v4 = vld [vmem:[%s6511_s1 + $0x20] ss:$16 sps:$4 sm:$0xff]   ;;  %v3942_v12 = vld [vmem:[%s6511_s1 + $0x2c] ss:$16 sps:$4 sm:$0xff]  }
  0x65   : > { %486 = vmatprep.subr.bf16.mxu1 %v3928_v2  ;;  %v4789_v5 = vld [vmem:[#allocation5 + $0xe0] ss:$16 sps:$4 sm:$0xff]   ;;  %802 = vmatprep.subr.bf16.mxu0 %v4784_v3  ;;  %v4796_v7 = vld [vmem:[#allocation5 + $0xc4] ss:$16 sps:$4 sm:$0xff]   ;;  %v3948_v16 = vld [vmem:[%s6511_s1 + $0xc] ss:$16 sps:$4 sm:$0xff]  }
  0x66   : > { %v3934_v6 = vld [vmem:[%s6511_s1 + $0x4] ss:$16 sps:$4 sm:$0xff]   ;;  %487 = vmatpush1.bf16.msra.mxu1 %v3932_v4  ;;  %803 = vmatpush1.bf16.msra.mxu0 %v4789_v5  ;;  %v3938_v8 = vld [vmem:[%s6511_s1] ss:$16 sps:$4 sm:$0xff]   ;;  %v3940_v11 = vld [vmem:[%s6511_s1 + $0x28] ss:$16 sps:$4 sm:$0xff]  }
  0x67   : > { %488 = vmatprep.subr.bf16.mxu1 %v3934_v6  ;;  %v4801_v9 = vld [vmem:[#allocation5 + $0xc0] ss:$16 sps:$4 sm:$0xff]   ;;  %804 = vmatprep.subr.bf16.mxu0 %v4796_v7  ;;  %v4810_v14 = vld [vmem:[#allocation5 + $0xa4] ss:$16 sps:$4 sm:$0xff]   ;;  %v4831_v21 = vld [vmem:[#allocation5 + $0xec] ss:$16 sps:$4 sm:$0xff]  }
  0x68   : > { %v398_v10 = vld [vmem:[%s344_s30] sm:$0xff]  ;;  %s7254_s17 = sadd.s32 4294967295, %s4592_s14   ;;  %vm3581_vm1 = vcmask 7168  }
  0x69   : > { %v399_v13 = vpack.c.bf16 %v398_v10, %v398_v10  ;;  %v4813_v15 = vld [vmem:[#allocation5 + $0xa0] ss:$16 sps:$4 sm:$0xff]   ;;  %v4819_v17 = vld [vmem:[#allocation5 + $0x84] ss:$16 sps:$4 sm:$0xff]   ;;  %v4836_v23 = vld [vmem:[#allocation5 + $0xe8] ss:$16 sps:$4 sm:$0xff]  }
  0x6a   : > { %489 = vmatpush1.bf16.msra.mxu1 %v3938_v8  ;;  %805 = vmatpush1.bf16.msra.mxu0 %v4801_v9  ;;  %v3946_v18 = vld [vmem:[%s6511_s1 + $0x8] ss:$16 sps:$4 sm:$0xff]   ;;  %v4826_v19 = vld [vmem:[#allocation5 + $0x80] ss:$16 sps:$4 sm:$0xff]   ;;  %v4843_v25 = vld [vmem:[#allocation5 + $0xcc] ss:$16 sps:$4 sm:$0xff]  }
  0x6b   : > { %527 = vmatprep.subr.bf16.mxu1 %v3942_v12  ;;  %806 = vmatprep.subr.bf16.mxu0 %v4810_v14  ;;  %v4829_v20 = vld [vmem:[#allocation5 + $0x64] ss:$16 sps:$4 sm:$0xff]   ;;  %v4834_v22 = vld [vmem:[#allocation5 + $0x60] ss:$16 sps:$4 sm:$0xff]   ;;  %v4850_v27 = vld [vmem:[#allocation5 + $0xc8] ss:$16 sps:$4 sm:$0xff]  }
  0x6c   : > { %v4839_v24 = vld [vmem:[#allocation5 + $0x44] ss:$16 sps:$4 sm:$0xff]   ;;  %v4846_v26 = vld [vmem:[#allocation5 + $0x40] ss:$16 sps:$4 sm:$0xff]   ;;  %v4856_v29 = vld [vmem:[#allocation5 + $0xac] ss:$16 sps:$4 sm:$0xff]  }
  0x6d   : > { %3710 = vmatmul.mubr.msk.bf16.vlgmr.msra.gmra.mxu1 %vm470_vm0, %v399_v13  ;;  %v4854_v28 = vld [vmem:[#allocation5 + $0x24] ss:$16 sps:$4 sm:$0xff]   ;;  %v4859_v30 = vld [vmem:[#allocation5 + $0x20] ss:$16 sps:$4 sm:$0xff]   ;;  %v4863_v31 = vld [vmem:[#allocation5 + $0xa8] ss:$16 sps:$4 sm:$0xff]  }
  0x6e   : > { %528 = vmatpush1.bf16.msra.mxu1 %v3940_v11  ;;  %807 = vmatpush1.bf16.msra.mxu0 %v4813_v15  ;;  %v4867_v32 = vld [vmem:[#allocation5 + $0x4] ss:$16 sps:$4 sm:$0xff]   ;;  %v4869_v33 = vld [vmem:[#allocation5 + $0x8c] ss:$16 sps:$4 sm:$0xff]   ;;  %v4871_v34 = vld [vmem:[#allocation5] ss:$16 sps:$4 sm:$0xff]  }
  0x6f   : > { %529 = vmatprep.subr.bf16.mxu1 %v3948_v16  ;;  %808 = vmatprep.subr.bf16.mxu0 %v4819_v17  ;;  %v4873_v35 = vld [vmem:[#allocation5 + $0x88] ss:$16 sps:$4 sm:$0xff]   ;;  %v4875_v36 = vld [vmem:[#allocation5 + $0x6c] ss:$16 sps:$4 sm:$0xff]   ;;  %v4909_v44 = vld [vmem:[#allocation7 + $0xe4] ss:$16 sps:$4 sm:$0xff]  }
  0x70   : > { %547 = vmatprep.mubr.bf16.mxu1 %v6525_v1  ;;  %v4881_v37 = vld [vmem:[#allocation5 + $0x68] ss:$16 sps:$4 sm:$0xff]   ;;  %v4883_v38 = vld [vmem:[#allocation5 + $0x4c] ss:$16 sps:$4 sm:$0xff]   ;;  %v4913_v46 = vld [vmem:[#allocation7 + $0xe0] ss:$16 sps:$4 sm:$0xff]  }
  0x71   : > { %v4888_v39 = vld [vmem:[#allocation5 + $0x48] ss:$16 sps:$4 sm:$0xff]   ;;  %v4891_v40 = vld [vmem:[#allocation5 + $0x2c] ss:$16 sps:$4 sm:$0xff]   ;;  %v4921_v48 = vld [vmem:[#allocation7 + $0xc4] ss:$16 sps:$4 sm:$0xff]  }
  0x72   : > { %530 = vmatpush1.bf16.msra.mxu1 %v3946_v18  ;;  %809 = vmatpush1.bf16.msra.mxu0 %v4826_v19  ;;  %v4896_v41 = vld [vmem:[#allocation5 + $0x28] ss:$16 sps:$4 sm:$0xff]   ;;  %v4898_v42 = vld [vmem:[#allocation5 + $0xc] ss:$16 sps:$4 sm:$0xff]   ;;  %v4925_v50 = vld [vmem:[#allocation7 + $0xc0] ss:$16 sps:$4 sm:$0xff]  }
  0x73   : > { %810 = vmatprep.subr.bf16.mxu0 %v4829_v20  ;;  %843 = vmatprep.subr.bf16.mxu1 %v4831_v21  ;;  %v4902_v43 = vld [vmem:[#allocation5 + $0x8] ss:$16 sps:$4 sm:$0xff]   ;;  %v4911_v45 = vld [vmem:[#allocation7 + $0xec] ss:$16 sps:$4 sm:$0xff]   ;;  %v4933_v52 = vld [vmem:[#allocation7 + $0xa4] ss:$16 sps:$4 sm:$0xff]  }
  0x74   : > { %v4915_v47 = vld [vmem:[#allocation7 + $0xe8] ss:$16 sps:$4 sm:$0xff]   ;;  %v4923_v49 = vld [vmem:[#allocation7 + $0xcc] ss:$16 sps:$4 sm:$0xff]   ;;  %6838 = vst [vmem:[#allocation13_spill] sm:$0xff] %v4933_v52  ;;  %s3700_s18 = sshll.u32 %s7254_s17, 3 }
  0x75   : > { %3711 = vmatmul.mubr.msk.bf16.vlgmr.msra.gmra.mxu1 %vm470_vm0, %v399_v13  ;;  %v4927_v51 = vld [vmem:[#allocation7 + $0xc8] ss:$16 sps:$4 sm:$0xff]   ;;  %v4935_v53 = vld [vmem:[#allocation7 + $0xac] ss:$16 sps:$4 sm:$0xff]   ;;  %v4937_v54 = vld [vmem:[#allocation7 + $0xa0] ss:$16 sps:$4 sm:$0xff]  }
  0x76   : > { %811 = vmatpush1.bf16.msra.mxu0 %v4834_v22  ;;  %844 = vmatpush1.bf16.msra.mxu1 %v4836_v23  ;;  %6839 = vst [vmem:[#allocation14_spill] sm:$0xff] %v4935_v53  ;;  %6840 = vst [vmem:[#allocation15_spill] sm:$0xff] %v4937_v54  ;;  %v4939_v55 = vld [vmem:[#allocation7 + $0xa8] ss:$16 sps:$4 sm:$0xff]   ;;  %v4945_v56 = vld [vmem:[#allocation7 + $0x84] ss:$16 sps:$4 sm:$0xff]  }
  0x77   : > { %812 = vmatprep.subr.bf16.mxu0 %v4839_v24  ;;  %845 = vmatprep.subr.bf16.mxu1 %v4843_v25  ;;  %6841 = vst [vmem:[#allocation16_spill] sm:$0xff] %v4939_v55  ;;  %6842 = vst [vmem:[#allocation17_spill] sm:$0xff] %v4945_v56  ;;  %v4947_v57 = vld [vmem:[#allocation7 + $0x8c] ss:$16 sps:$4 sm:$0xff]   ;;  %v4949_v58 = vld [vmem:[#allocation7 + $0x80] ss:$16 sps:$4 sm:$0xff]  }
  0x78   : > { %875 = vmatprep.mubr.bf16.mxu1 %v6525_v1  ;;  %6843 = vst [vmem:[#allocation18_spill] sm:$0xff] %v4947_v57  ;;  %6844 = vst [vmem:[#allocation19_spill] sm:$0xff] %v4949_v58  ;;  %v4951_v59 = vld [vmem:[#allocation7 + $0x88] ss:$16 sps:$4 sm:$0xff]   ;;  %v4957_v60 = vld [vmem:[#allocation7 + $0x64] ss:$16 sps:$4 sm:$0xff]  }
  0x79   : > { %6845 = vst [vmem:[#allocation20_spill] sm:$0xff] %v4951_v59  ;;  %6846 = vst [vmem:[#allocation21_spill] sm:$0xff] %v4957_v60  ;;  %v4959_v61 = vld [vmem:[#allocation7 + $0x6c] ss:$16 sps:$4 sm:$0xff]   ;;  %v4961_v62 = vld [vmem:[#allocation7 + $0x60] ss:$16 sps:$4 sm:$0xff]  }
  0x7a   : > { %813 = vmatpush1.bf16.msra.mxu0 %v4846_v26  ;;  %846 = vmatpush1.bf16.msra.mxu1 %v4850_v27  ;;  %6847 = vst [vmem:[#allocation22_spill] sm:$0xff] %v4959_v61  ;;  %6848 = vst [vmem:[#allocation23_spill] sm:$0xff] %v4961_v62  ;;  %v4963_v63 = vld [vmem:[#allocation7 + $0x68] ss:$16 sps:$4 sm:$0xff]   ;;  %v4969_v0 = vld [vmem:[#allocation7 + $0x44] ss:$16 sps:$4 sm:$0xff]  }
  0x7b   : > { %814 = vmatprep.subr.bf16.mxu0 %v4854_v28  ;;  %847 = vmatprep.subr.bf16.mxu1 %v4856_v29  ;;  %6849 = vst [vmem:[#allocation24_spill] sm:$0xff] %v4963_v63  ;;  %6850 = vst [vmem:[#allocation25_spill] sm:$0xff] %v4969_v0  ;;  %v4971_v2 = vld [vmem:[#allocation7 + $0x4c] ss:$16 sps:$4 sm:$0xff]   ;;  %v4973_v4 = vld [vmem:[#allocation7 + $0x40] ss:$16 sps:$4 sm:$0xff]  }
  0x7c   : > { %6851 = vst [vmem:[#allocation26_spill] sm:$0xff] %v4971_v2  ;;  %6852 = vst [vmem:[#allocation27_spill] sm:$0xff] %v4973_v4  ;;  %v4975_v6 = vld [vmem:[#allocation7 + $0x48] ss:$16 sps:$4 sm:$0xff]   ;;  %v4981_v8 = vld [vmem:[#allocation7 + $0x24] ss:$16 sps:$4 sm:$0xff]  }
  0x7d   : > { %6853 = vst [vmem:[#allocation28_spill] sm:$0xff] %v4975_v6  ;;  %6854 = vst [vmem:[#allocation29_spill] sm:$0xff] %v4981_v8  ;;  %v4983_v10 = vld [vmem:[#allocation7 + $0x2c] ss:$16 sps:$4 sm:$0xff]   ;;  %v4985_v11 = vld [vmem:[#allocation7 + $0x20] ss:$16 sps:$4 sm:$0xff]  }
  0x7e   : > { %815 = vmatpush1.bf16.msra.mxu0 %v4859_v30  ;;  %848 = vmatpush1.bf16.msra.mxu1 %v4863_v31  ;;  %6855 = vst [vmem:[#allocation30_spill] sm:$0xff] %v4983_v10  ;;  %6856 = vst [vmem:[#allocation31_spill] sm:$0xff] %v4985_v11  ;;  %v4987_v12 = vld [vmem:[#allocation7 + $0x28] ss:$16 sps:$4 sm:$0xff]   ;;  %v4993_v13 = vld [vmem:[#allocation7 + $0x4] ss:$16 sps:$4 sm:$0xff]  }
  0x7f   : > { %816 = vmatprep.subr.bf16.mxu0 %v4867_v32  ;;  %849 = vmatprep.subr.bf16.mxu1 %v4869_v33  ;;  %6857 = vst [vmem:[#allocation32_spill] sm:$0xff] %v4987_v12  ;;  %6858 = vst [vmem:[#allocation33_spill] sm:$0xff] %v4993_v13  ;;  %v4995_v16 = vld [vmem:[#allocation7 + $0xc] ss:$16 sps:$4 sm:$0xff]   ;;  %v4997_v18 = vld [vmem:[#allocation7] ss:$16 sps:$4 sm:$0xff]  }
  0x80   : > { %6859 = vst [vmem:[#allocation34_spill] sm:$0xff] %v4995_v16  ;;  %6860 = vst [vmem:[#allocation35_spill] sm:$0xff] %v4997_v18  ;;  %p392_p7 = scmp.lt.s32.totalorder %s3700_s18, 15 }
  0x82   : > { %817 = vmatpush1.bf16.msra.mxu0 %v4871_v34  ;;  %850 = vmatpush1.bf16.msra.mxu1 %v4873_v35  ;;  %s7260_s18 = smov (!%p392_p7, %s3700_s18), 15 }
  0x83   : > { %851 = vmatprep.subr.bf16.mxu1 %v4875_v36  ;;  %1096 = vmatprep.subr.bf16.mxu0 %v4909_v44  ;;  %s3701_s15 = sshll.u32 %s7260_s18, 3 }
  0x84   : > { %s6478_s14 = scalar_lea.vmem %s6519_s9, %s3701_s15 }
  0x85   : > { %835 = vmatmul.mubr.bf16.vlgmr.msra.gmra.mxu0 %v6525_v1 }
  0x86   : > { %852 = vmatpush1.bf16.msra.mxu1 %v4881_v37  ;;  %1128 = vmatprep.mubr.bf16.mxu0 %v6525_v1 }
  0x87   : > { %853 = vmatprep.subr.bf16.mxu1 %v4883_v38  ;;  %1097 = vmatpush1.bf16.msra.mxu0 %v4913_v46 }
  0x88   : > { %1098 = vmatprep.subr.bf16.mxu0 %v4921_v48 }
  0x8a   : > { %854 = vmatpush1.bf16.msra.mxu1 %v4888_v39 }
  0x8b   : > { %855 = vmatprep.subr.bf16.mxu1 %v4891_v40  ;;  %1099 = vmatpush1.bf16.msra.mxu0 %v4925_v50 }
  0x8c   : > { %1100 = vmatprep.subr.bf16.mxu0 %v4933_v52 }
  0x8e   : > { %856 = vmatpush1.bf16.msra.mxu1 %v4896_v41 }
  0x8f   : > { %857 = vmatprep.subr.bf16.mxu1 %v4898_v42  ;;  %1101 = vmatpush1.bf16.msra.mxu0 %v4937_v54 }
  0x90   : > { %1102 = vmatprep.subr.bf16.mxu0 %v4945_v56 }
  0x92   : > { %858 = vmatpush1.bf16.msra.mxu1 %v4902_v43 }
  0x93   : > { %1137 = vmatprep.subr.bf16.mxu1 %v4911_v45  ;;  %1103 = vmatpush1.bf16.msra.mxu0 %v4949_v58 }
  0x94   : > { %1104 = vmatprep.subr.bf16.mxu0 %v4957_v60 }
  0x95   : > { %876 = vmatmul.mubr.bf16.vlgmr.msra.gmra.mxu1 %v6525_v1 }
  0x96   : > { %1169 = vmatprep.mubr.bf16.mxu1 %v6525_v1  ;;  %1138 = vmatpush1.bf16.msra.mxu1 %v4915_v47  ;;  %v4999_v1 = vld [vmem:[#allocation7 + $0x8] ss:$16 sps:$4 sm:$0xff]  }
  0x97   : > { %1139 = vmatprep.subr.bf16.mxu1 %v4923_v49  ;;  %1105 = vmatpush1.bf16.msra.mxu0 %v4961_v62  ;;  %6861 = vst [vmem:[#allocation36_spill] sm:$0xff] %v4999_v1  ;;  %v408_v62 = vld [vmem:[%s6513_s3] sm:$0xf] }
  0x98   : > { %1106 = vmatprep.subr.bf16.mxu0 %v4969_v0  ;;  %v410_v0 = vlaneseq }
  0x9a   : > { %1140 = vmatpush1.bf16.msra.mxu1 %v4927_v51 }
  0x9b   : > { %1141 = vmatprep.subr.bf16.mxu1 %v4935_v53  ;;  %1107 = vmatpush1.bf16.msra.mxu0 %v4973_v4 }
  0x9c   : > { %1108 = vmatprep.subr.bf16.mxu0 %v4981_v8 }
  0x9e   : > { %1142 = vmatpush1.bf16.msra.mxu1 %v4939_v55 }
  0x9f   : > { %1143 = vmatprep.subr.bf16.mxu1 %v4947_v57  ;;  %1109 = vmatpush1.bf16.msra.mxu0 %v4985_v11  ;;  %v5007_v11 = vld [vmem:[#allocation8 + $0xec] ss:$16 sps:$4 sm:$0xff]  }
  0xa0   : > { %1110 = vmatprep.subr.bf16.mxu0 %v4993_v13  ;;  %6863 = vst [vmem:[#allocation38_spill] sm:$0xff] %v5007_v11 }
  0xa2   : > { %1144 = vmatpush1.bf16.msra.mxu1 %v4951_v59 }
  0xa3   : > { %1145 = vmatprep.subr.bf16.mxu1 %v4959_v61  ;;  %1111 = vmatpush1.bf16.msra.mxu0 %v4997_v18  ;;  %v5011_v18 = vshrl.u32 %v410_v0, 7 }
  0xa5   : > { %v6573_v58 = vsub.s32 2, %v5011_v18 }
  0xa6   : > { %1146 = vmatpush1.bf16.msra.mxu1 %v4963_v63 }
  0xa7   : > { %1147 = vmatprep.subr.bf16.mxu1 %v4971_v2 }
  0xaa   : > { %1148 = vmatpush1.bf16.msra.mxu1 %v4975_v6 }
  0xab   : > { %1149 = vmatprep.subr.bf16.mxu1 %v4983_v10  ;;  %v5005_v10 = vld [vmem:[#allocation8 + $0xe4] ss:$16 sps:$4 sm:$0xff]  }
  0xac   : > { %6862 = vst [vmem:[#allocation37_spill] sm:$0xff] %v5005_v10  ;;  %1338 = vmatprep.subr.bf16.mxu0 %v5005_v10  ;;  %v6572_v10 = vsub.s32 0, %v5011_v18 }
  0xae   : > { %1150 = vmatpush1.bf16.msra.mxu1 %v4987_v12 }
  0xaf   : > { %1151 = vmatprep.subr.bf16.mxu1 %v4995_v16 }
  0xb2   : > { %1152 = vmatpush1.bf16.msra.mxu1 %v4999_v1  ;;  %v6569_v1 = vsub.s32 1, %v5011_v18 }
  0xb3   : > { %1379 = vmatprep.subr.bf16.mxu1 %v5007_v11 }
  0xb4   : > { %v417_v11 = vrot.slane %v408_v62, %v6569_v1  ;;  %v421_v1 = vrot.slane %v408_v62, %v6573_v58 }
 0x12d   : > { %v508_v12 = vpop.f32.mrf.mxu1 }
 0x12f   : > { %v510_v8 = vpop.f32.mrf.mxu1 }
 0x131   : > { %v512_v6 = vpop.f32.mrf.mxu1 }
 0x133   : > { %v513_v4 = vpop.f32.mrf.mxu1 }
 0x134   : > { %v413_v4 = vrot.slane %v408_v62, %v6572_v10 }
 0x135   : > { %v549_v2 = vpop.f32.mrf.mxu1 }
 0x136   : > { %v5024_v0 = vadd.f32 %v508_v12, %v413_v4  ;;  %v5031_v56 = vadd.f32 %v549_v2, %v421_v1 }
 0x137   : > { %v551_v13 = vpop.f32.mrf.mxu1 }
 0x138   : > { %6865 = vst [vmem:[#allocation40_spill] sm:$0xff] %v5024_v0  ;;  %6866 = vst [vmem:[#allocation41_spill] sm:$0xff] %v5031_v56 }
 0x139   : > { %v553_v16 = vpop.f32.mrf.mxu1 }
 0x13a   : > { %v5022_v16 = vadd.f32 %v510_v8, %v417_v11  ;;  %v6582_v8 = vsub.s32 3, %v5011_v18 }
 0x13b   : > { %v554_v63 = vpop.f32.mrf.mxu1 }
 0x13c   : > { %6864 = vst [vmem:[#allocation39_spill] sm:$0xff] %v5022_v16 }
 0x145   : > { %v836_v6 = vpop.f32.mrf.mxu0 }
 0x146   : > { %v884_v57 = vadd.f32 %v836_v6, %v5024_v0 }
 0x147   : > { %v838_v61 = vpop.f32.mrf.mxu0 }
 0x148   : > { %v885_v60 = vadd.f32 %v838_v61, %v5022_v16 }
 0x149   : > { %v840_v63 = vpop.f32.mrf.mxu0 }
 0x14a   : > { %4092 = vtanh.f32 %v885_v60 }
 0x14b   : > { %v841_v59 = vpop.f32.mrf.mxu0  ;;  %4094 = vtanh.f32 %v884_v57 }
 0x14c   : > { %v425_v59 = vrot.slane %v408_v62, %v6582_v8  ;;  %v5091_v8 = vld [vmem:[#allocation8 + $0x6c] ss:$16 sps:$4 sm:$0xff]  }
 0x14d   : > { %6876 = vst [vmem:[#allocation50_spill] sm:$0xff] %v5091_v8 }
 0x14e   : > { %v5037_v60 = vadd.f32 %v551_v13, %v425_v59 }
 0x155   : > { %v877_v11 = vpop.f32.mrf.mxu1 }
 0x156   : > { %v886_v12 = vadd.f32 %v877_v11, %v5031_v56 }
 0x157   : > { %v879_v4 = vpop.f32.mrf.mxu1  ;;  %v4093_v63 = vpop.eup %4092 }
 0x158   : > { %4096 = vtanh.f32 %v886_v12  ;;  %v4095_v10 = vpop.eup %4094  ;;  %v894_v58 = vmul.f32 0.5, %v4093_v63  ;;  %v887_v1 = vadd.f32 %v879_v4, %v5037_v60  ;;  %v5045_v63 = vld [vmem:[#allocation8 + $0xe8] ss:$16 sps:$4 sm:$0xff]   ;;  %v5051_v4 = vld [vmem:[#allocation8 + $0xcc] ss:$16 sps:$4 sm:$0xff]  }
 0x159   : > { %v881_v61 = vpop.f32.mrf.mxu1  ;;  %v892_v57 = vmul.f32 0.5, %v4095_v10 }
 0x15a   : > { %v895_v2 = vadd.f32 0.5, %v894_v58  ;;  %4098 = vtanh.f32 %v887_v1  ;;  %v5049_v58 = vld [vmem:[#allocation8 + $0xc4] ss:$16 sps:$4 sm:$0xff]   ;;  %v5065_v1 = vld [vmem:[#allocation8 + $0xac] ss:$16 sps:$4 sm:$0xff]  }
 0x15b   : > { %v882_v6 = vpop.f32.mrf.mxu1  ;;  %v893_v16 = vadd.f32 0.5, %v892_v57  ;;  %6867 = vst [vmem:[#allocation42_spill] sm:$0xff] %v5065_v1  ;;  %v6868_v57 = vmov 0  }
 0x15c   : > { %v898_v11 = vmul.f32 0.0, %v895_v2  ;;  %v5043_v6 = vld [vmem:[#allocation8 + $0xe0] ss:$16 sps:$4 sm:$0xff]  }
 0x15d   : > { %v5071_v2 = vld [vmem:[#allocation8 + $0xa0] ss:$16 sps:$4 sm:$0xff]  }
 0x15e   : > { %6869 = vst [vmem:[#allocation43_spill] sm:$0xff] %v5071_v2 }
 0x165   : > { %v4097_v0 = vpop.eup %4096 }
 0x166   : > { %v899_v56 = vmul.f32 %v4097_v0, %v893_v16  ;;  %v5059_v16 = vld [vmem:[#allocation8 + $0xc8] ss:$16 sps:$4 sm:$0xff]   ;;  %v5063_v0 = vld [vmem:[#allocation8 + $0xa4] ss:$16 sps:$4 sm:$0xff]  }
 0x167   : > { %v4099_v62 = vpop.eup %4098 }
 0x168   : > { %v5040_v55 = vadd.f32 %v899_v56, %v898_v11  ;;  %v896_v12 = vmul.f32 0.5, %v4099_v62  ;;  %v5057_v56 = vld [vmem:[#allocation8 + $0xc0] ss:$16 sps:$4 sm:$0xff]   ;;  %v5073_v11 = vld [vmem:[#allocation8 + $0xa8] ss:$16 sps:$4 sm:$0xff]  }
 0x169   : > { %6870 = vst [vmem:[#allocation44_spill] sm:$0xff] %v5073_v11  ;;  %v5077_v62 = vld [vmem:[#allocation8 + $0x84] ss:$16 sps:$4 sm:$0xff]  }
 0x16a   : > { %4100 = vtanh.f32 %v5040_v55  ;;  %v897_v61 = vadd.f32 0.5, %v896_v12  ;;  %6871 = vst [vmem:[#allocation45_spill] sm:$0xff] %v5077_v62  ;;  %v5079_v12 = vld [vmem:[#allocation8 + $0x8c] ss:$16 sps:$4 sm:$0xff]  }
 0x16b   : > { %6872 = vst [vmem:[#allocation46_spill] sm:$0xff] %v5079_v12 }
 0x177   : > { %v4101_v13 = vpop.eup %4100 }
 0x178   : > { %v902_v59 = vmul.f32 %v4101_v13, %v897_v61  ;;  %v5083_v61 = vld [vmem:[#allocation8 + $0x80] ss:$16 sps:$4 sm:$0xff]   ;;  %v5085_v13 = vld [vmem:[#allocation8 + $0x88] ss:$16 sps:$4 sm:$0xff]  }
 0x179   : > { %6873 = vst [vmem:[#allocation47_spill] sm:$0xff] %v5083_v61  ;;  %6874 = vst [vmem:[#allocation48_spill] sm:$0xff] %v5085_v13 }
 0x17a   : > { %v5047_v10 = vpack.c.bf16 %v902_v59, %v902_v59  ;;  %v5089_v59 = vld [vmem:[#allocation8 + $0x64] ss:$16 sps:$4 sm:$0xff]  }
 0x17b   : > { %6875 = vst [vmem:[#allocation49_spill] sm:$0xff] %v5089_v59 }
 0x17c   : > { %1129 = vmatmul.mubr.bf16.vlgmr.msra.gmra.mxu0 %v5047_v10  ;;  %1170 = vmatmul.mubr.bf16.vlgmr.msra.gmra.mxu1 %v5047_v10 }
 0x17d   : > { %1339 = vmatpush1.bf16.msra.mxu0 %v5043_v6  ;;  %1380 = vmatpush1.bf16.msra.mxu1 %v5045_v63 }
 0x17e   : > { %1340 = vmatprep.subr.bf16.mxu0 %v5049_v58  ;;  %1381 = vmatprep.subr.bf16.mxu1 %v5051_v4 }
 0x17f   : > { %1370 = vmatprep.mubr.bf16.mxu0 %v6868_v57  ;;  %1411 = vmatprep.mubr.bf16.mxu1 %v6868_v57 }
 0x181   : > { %1341 = vmatpush1.bf16.msra.mxu0 %v5057_v56  ;;  %1382 = vmatpush1.bf16.msra.mxu1 %v5059_v16 }
 0x182   : > { %1342 = vmatprep.subr.bf16.mxu0 %v5063_v0  ;;  %1383 = vmatprep.subr.bf16.mxu1 %v5065_v1  ;;  %v5095_v1 = vld [vmem:[#allocation8 + $0x60] ss:$16 sps:$4 sm:$0xff]  }
 0x183   : > { %6877 = vst [vmem:[#allocation51_spill] sm:$0xff] %v5095_v1 }
 0x185   : > { %1343 = vmatpush1.bf16.msra.mxu0 %v5071_v2  ;;  %1384 = vmatpush1.bf16.msra.mxu1 %v5073_v11  ;;  %v5097_v2 = vld [vmem:[#allocation8 + $0x68] ss:$16 sps:$4 sm:$0xff]   ;;  %v5101_v11 = vld [vmem:[#allocation8 + $0x44] ss:$16 sps:$4 sm:$0xff]  }
 0x186   : > { %1344 = vmatprep.subr.bf16.mxu0 %v5077_v62  ;;  %1385 = vmatprep.subr.bf16.mxu1 %v5079_v12  ;;  %6878 = vst [vmem:[#allocation52_spill] sm:$0xff] %v5097_v2  ;;  %6879 = vst [vmem:[#allocation53_spill] sm:$0xff] %v5101_v11  ;;  %v5103_v62 = vld [vmem:[#allocation8 + $0x4c] ss:$16 sps:$4 sm:$0xff]   ;;  %v5107_v12 = vld [vmem:[#allocation8 + $0x40] ss:$16 sps:$4 sm:$0xff]  }
 0x187   : > { %6880 = vst [vmem:[#allocation54_spill] sm:$0xff] %v5103_v62  ;;  %6881 = vst [vmem:[#allocation55_spill] sm:$0xff] %v5107_v12 }
 0x189   : > { %1345 = vmatpush1.bf16.msra.mxu0 %v5083_v61  ;;  %1386 = vmatpush1.bf16.msra.mxu1 %v5085_v13  ;;  %v5109_v61 = vld [vmem:[#allocation8 + $0x48] ss:$16 sps:$4 sm:$0xff]   ;;  %v5113_v13 = vld [vmem:[#allocation8 + $0x24] ss:$16 sps:$4 sm:$0xff]  }
 0x18a   : > { %1346 = vmatprep.subr.bf16.mxu0 %v5089_v59  ;;  %1387 = vmatprep.subr.bf16.mxu1 %v5091_v8  ;;  %v5115_v59 = vld [vmem:[#allocation8 + $0x2c] ss:$16 sps:$4 sm:$0xff]   ;;  %v5119_v8 = vld [vmem:[#allocation8 + $0x20] ss:$16 sps:$4 sm:$0xff]  }
 0x18b   : > { %6882 = vst [vmem:[#allocation56_spill] sm:$0xff] %v5115_v59 }
 0x18d   : > { %1347 = vmatpush1.bf16.msra.mxu0 %v5095_v1  ;;  %1388 = vmatpush1.bf16.msra.mxu1 %v5097_v2  ;;  %v5121_v1 = vld [vmem:[#allocation8 + $0x28] ss:$16 sps:$4 sm:$0xff]   ;;  %v5125_v2 = vld [vmem:[#allocation8 + $0x4] ss:$16 sps:$4 sm:$0xff]  }
 0x18e   : > { %1348 = vmatprep.subr.bf16.mxu0 %v5101_v11  ;;  %1389 = vmatprep.subr.bf16.mxu1 %v5103_v62  ;;  %v5127_v11 = vld [vmem:[#allocation8 + $0xc] ss:$16 sps:$4 sm:$0xff]   ;;  %v5131_v62 = vld [vmem:[#allocation8] ss:$16 sps:$4 sm:$0xff]  }
 0x191   : > { %1349 = vmatpush1.bf16.msra.mxu0 %v5107_v12  ;;  %1390 = vmatpush1.bf16.msra.mxu1 %v5109_v61  ;;  %v5133_v12 = vld [vmem:[#allocation8 + $0x8] ss:$16 sps:$4 sm:$0xff]  }
 0x192   : > { %1350 = vmatprep.subr.bf16.mxu0 %v5113_v13  ;;  %1391 = vmatprep.subr.bf16.mxu1 %v5115_v59  ;;  %6883 = vst [vmem:[#allocation57_spill] sm:$0xff] %v5133_v12 }
 0x195   : > { %1351 = vmatpush1.bf16.msra.mxu0 %v5119_v8  ;;  %1392 = vmatpush1.bf16.msra.mxu1 %v5121_v1 }
 0x196   : > { %1352 = vmatprep.subr.bf16.mxu0 %v5125_v2  ;;  %1393 = vmatprep.subr.bf16.mxu1 %v5127_v11 }
 0x199   : > { %1353 = vmatpush1.bf16.msra.mxu0 %v5131_v62  ;;  %1394 = vmatpush1.bf16.msra.mxu1 %v5133_v12 }
 0x19a   : > { %1440 = vmatprep.subr.bf16.mxu0 %v4784_v3  ;;  %1481 = vmatprep.subr.bf16.mxu1 %v4831_v21  ;;  %v6884_v3 = vld [vmem:[#allocation16_spill] sm:$0xff]  ;;  %v6893_v21 = vld [vmem:[#allocation25_spill] sm:$0xff] }
 0x19c   : > { %1371 = vmatmul.mubr.bf16.vlgmr.msra.gmra.mxu0 %v6868_v57  ;;  %1412 = vmatmul.mubr.bf16.vlgmr.msra.gmra.mxu1 %v6868_v57 }
 0x19d   : > { %1441 = vmatpush1.bf16.msra.mxu0 %v4789_v5  ;;  %1482 = vmatpush1.bf16.msra.mxu1 %v4836_v23  ;;  %v6885_v5 = vld [vmem:[#allocation17_spill] sm:$0xff]  ;;  %v6895_v23 = vld [vmem:[#allocation27_spill] sm:$0xff] }
 0x19e   : > { %1442 = vmatprep.subr.bf16.mxu0 %v4796_v7  ;;  %1483 = vmatprep.subr.bf16.mxu1 %v4843_v25  ;;  %v6886_v7 = vld [vmem:[#allocation18_spill] sm:$0xff]  ;;  %v6897_v25 = vld [vmem:[#allocation29_spill] sm:$0xff] }
 0x19f   : > { %1472 = vmatprep.mubr.bf16.mxu0 %v6868_v57  ;;  %1513 = vmatprep.mubr.bf16.mxu1 %v6868_v57 }
 0x1a1   : > { %1443 = vmatpush1.bf16.msra.mxu0 %v4801_v9  ;;  %1484 = vmatpush1.bf16.msra.mxu1 %v4850_v27  ;;  %v6887_v9 = vld [vmem:[#allocation19_spill] sm:$0xff] }
 0x1a2   : > { %1444 = vmatprep.subr.bf16.mxu0 %v4810_v14  ;;  %1485 = vmatprep.subr.bf16.mxu1 %v4856_v29  ;;  %v6888_v14 = vld [vmem:[#allocation20_spill] sm:$0xff]  ;;  %v6899_v27 = vld [vmem:[#allocation31_spill] sm:$0xff]  ;;  %v6901_v29 = vld [vmem:[#allocation33_spill] sm:$0xff] }
 0x1a5   : > { %1445 = vmatpush1.bf16.msra.mxu0 %v4813_v15  ;;  %1486 = vmatpush1.bf16.msra.mxu1 %v4863_v31  ;;  %v6889_v15 = vld [vmem:[#allocation21_spill] sm:$0xff] }
 0x1a6   : > { %1446 = vmatprep.subr.bf16.mxu0 %v4819_v17  ;;  %1487 = vmatprep.subr.bf16.mxu1 %v4869_v33  ;;  %v6890_v17 = vld [vmem:[#allocation22_spill] sm:$0xff] }
 0x1a9   : > { %1447 = vmatpush1.bf16.msra.mxu0 %v4826_v19  ;;  %1488 = vmatpush1.bf16.msra.mxu1 %v4873_v35  ;;  %v6891_v19 = vld [vmem:[#allocation23_spill] sm:$0xff] }
 0x1aa   : > { %1448 = vmatprep.subr.bf16.mxu0 %v4829_v20  ;;  %1489 = vmatprep.subr.bf16.mxu1 %v4875_v36  ;;  %v6892_v20 = vld [vmem:[#allocation24_spill] sm:$0xff] }
 0x1ad   : > { %1449 = vmatpush1.bf16.msra.mxu0 %v4834_v22  ;;  %1490 = vmatpush1.bf16.msra.mxu1 %v4881_v37  ;;  %v6894_v22 = vld [vmem:[#allocation26_spill] sm:$0xff] }
 0x1ae   : > { %1450 = vmatprep.subr.bf16.mxu0 %v4839_v24  ;;  %1491 = vmatprep.subr.bf16.mxu1 %v4883_v38  ;;  %v6896_v24 = vld [vmem:[#allocation28_spill] sm:$0xff] }
 0x1b1   : > { %1451 = vmatpush1.bf16.msra.mxu0 %v4846_v26  ;;  %1492 = vmatpush1.bf16.msra.mxu1 %v4888_v39  ;;  %v6898_v26 = vld [vmem:[#allocation30_spill] sm:$0xff] }
 0x1b2   : > { %1452 = vmatprep.subr.bf16.mxu0 %v4854_v28  ;;  %1493 = vmatprep.subr.bf16.mxu1 %v4891_v40  ;;  %v6900_v28 = vld [vmem:[#allocation32_spill] sm:$0xff] }
 0x1b5   : > { %1453 = vmatpush1.bf16.msra.mxu0 %v4859_v30  ;;  %1494 = vmatpush1.bf16.msra.mxu1 %v4896_v41  ;;  %v6902_v30 = vld [vmem:[#allocation34_spill] sm:$0xff] }
 0x1b6   : > { %1454 = vmatprep.subr.bf16.mxu0 %v4867_v32  ;;  %1495 = vmatprep.subr.bf16.mxu1 %v4898_v42  ;;  %v6903_v32 = vld [vmem:[#allocation35_spill] sm:$0xff] }
 0x1b9   : > { %1455 = vmatpush1.bf16.msra.mxu0 %v4871_v34  ;;  %1496 = vmatpush1.bf16.msra.mxu1 %v4902_v43  ;;  %v6904_v34 = vld [vmem:[#allocation36_spill] sm:$0xff] }
 0x1ba   : > { %1542 = vmatprep.subr.bf16.mxu0 %v4909_v44  ;;  %1583 = vmatprep.subr.bf16.mxu1 %v4911_v45 }
 0x1bc   : > { %1473 = vmatmul.mubr.bf16.vlgmr.msra.gmra.mxu0 %v5047_v10  ;;  %1514 = vmatmul.mubr.bf16.vlgmr.msra.gmra.mxu1 %v5047_v10  ;;  %v6905_v10 = vld [vmem:[#allocation37_spill] sm:$0xff] }
 0x1bd   : > { %1543 = vmatpush1.bf16.msra.mxu0 %v4913_v46  ;;  %1584 = vmatpush1.bf16.msra.mxu1 %v4915_v47 }
 0x1be   : > { %1544 = vmatprep.subr.bf16.mxu0 %v4921_v48  ;;  %1585 = vmatprep.subr.bf16.mxu1 %v4923_v49 }
 0x1bf   : > { %1574 = vmatprep.mubr.bf16.mxu0 %v6868_v57  ;;  %1615 = vmatprep.mubr.bf16.mxu1 %v6868_v57 }
 0x1c1   : > { %1545 = vmatpush1.bf16.msra.mxu0 %v4925_v50  ;;  %1586 = vmatpush1.bf16.msra.mxu1 %v4927_v51 }
 0x1c2   : > { %1546 = vmatprep.subr.bf16.mxu0 %v4933_v52  ;;  %1587 = vmatprep.subr.bf16.mxu1 %v4935_v53 }
 0x1c5   : > { %1547 = vmatpush1.bf16.msra.mxu0 %v4937_v54  ;;  %1588 = vmatpush1.bf16.msra.mxu1 %v6884_v3 }
 0x1c6   : > { %1548 = vmatprep.subr.bf16.mxu0 %v6885_v5  ;;  %1589 = vmatprep.subr.bf16.mxu1 %v6886_v7 }
 0x1c9   : > { %1549 = vmatpush1.bf16.msra.mxu0 %v6887_v9  ;;  %1590 = vmatpush1.bf16.msra.mxu1 %v6888_v14 }
 0x1ca   : > { %1550 = vmatprep.subr.bf16.mxu0 %v6889_v15  ;;  %1591 = vmatprep.subr.bf16.mxu1 %v6890_v17 }
 0x1cd   : > { %1551 = vmatpush1.bf16.msra.mxu0 %v6891_v19  ;;  %1592 = vmatpush1.bf16.msra.mxu1 %v6892_v20 }
 0x1ce   : > { %1552 = vmatprep.subr.bf16.mxu0 %v6893_v21  ;;  %1593 = vmatprep.subr.bf16.mxu1 %v6894_v22 }
 0x1d1   : > { %1553 = vmatpush1.bf16.msra.mxu0 %v6895_v23  ;;  %1594 = vmatpush1.bf16.msra.mxu1 %v6896_v24  ;;  %v6906_v23 = vld [vmem:[#allocation38_spill] sm:$0xff] }
 0x1d2   : > { %1554 = vmatprep.subr.bf16.mxu0 %v6897_v25  ;;  %1595 = vmatprep.subr.bf16.mxu1 %v6898_v26 }
 0x1d5   : > { %1555 = vmatpush1.bf16.msra.mxu0 %v6899_v27  ;;  %1596 = vmatpush1.bf16.msra.mxu1 %v6900_v28 }
 0x1d6   : > { %1556 = vmatprep.subr.bf16.mxu0 %v6901_v29  ;;  %1597 = vmatprep.subr.bf16.mxu1 %v6902_v30  ;;  %v5216_v30 = vld [vmem:[%s6516_s6] sm:$0xf]  ;;  %v6908_v29 = vsub.s32 1, %v5011_v18 }
 0x1d8   : > { %v5226_v19 = vrot.slane %v5216_v30, %v6908_v29 }
 0x1d9   : > { %1557 = vmatpush1.bf16.msra.mxu0 %v6903_v32  ;;  %1598 = vmatpush1.bf16.msra.mxu1 %v6904_v34  ;;  %v6907_v32 = vsub.s32 0, %v5011_v18 }
 0x1da   : > { %1624 = vmatprep.subr.bf16.mxu0 %v6905_v10  ;;  %1665 = vmatprep.subr.bf16.mxu1 %v6906_v23 }
 0x1db   : > { %v5221_v34 = vrot.slane %v5216_v30, %v6907_v32 }
 0x23c   : > { %v1130_v24 = vpop.f32.mrf.mxu0  ;;  %v1171_v25 = vpop.f32.mrf.mxu1 }
 0x23e   : > { %v1132_v22 = vpop.f32.mrf.mxu0  ;;  %v1173_v26 = vpop.f32.mrf.mxu1 }
 0x240   : > { %v1134_v21 = vpop.f32.mrf.mxu0  ;;  %v1175_v27 = vpop.f32.mrf.mxu1 }
 0x242   : > { %v1135_v20 = vpop.f32.mrf.mxu0  ;;  %v1176_v28 = vpop.f32.mrf.mxu1 }
 0x243   : > { %v6909_v20 = vsub.s32 2, %v5011_v18 }
 0x245   : > { %v5231_v21 = vrot.slane %v5216_v30, %v6909_v20 }
 0x25c   : > { %v1372_v10 = vpop.f32.mrf.mxu0  ;;  %v1413_v23 = vpop.f32.mrf.mxu1 }
 0x25d   : > { %v1373_v27 = vadd.f32 %v1372_v10, %v1130_v24  ;;  %v1414_v28 = vadd.f32 %v1413_v23, %v1171_v25 }
 0x25e   : > { %v1374_v17 = vpop.f32.mrf.mxu0  ;;  %v1415_v15 = vpop.f32.mrf.mxu1 }
 0x25f   : > { %v1420_v14 = vadd.f32 %v1373_v27, %v5221_v34  ;;  %v1375_v32 = vadd.f32 %v1374_v17, %v1132_v22  ;;  %v1416_v9 = vadd.f32 %v1415_v15, %v1173_v26  ;;  %v1422_v3 = vadd.f32 %v1414_v28, %v5231_v21  ;;  %v6910_v22 = vld [vmem:[#allocation40_spill] sm:$0xff] }
 0x260   : > { %v1376_v7 = vpop.f32.mrf.mxu0  ;;  %v1417_v5 = vpop.f32.mrf.mxu1 }
 0x261   : > { %4102 = vtanh.f32 %v1420_v14  ;;  %v1421_v29 = vadd.f32 %v1375_v32, %v5226_v19 }
 0x262   : > { %v1377_v54 = vpop.f32.mrf.mxu0  ;;  %v1418_v53 = vpop.f32.mrf.mxu1 }
 0x263   : > { %4104 = vtanh.f32 %v1421_v29  ;;  %v6911_v53 = vld [vmem:[#allocation39_spill] sm:$0xff] }
 0x264   : > { %4106 = vtanh.f32 %v1422_v3 }
 0x26e   : > { %v4103_v20 = vpop.eup %4102 }
 0x26f   : > { %v1428_v24 = vmul.f32 0.5, %v4103_v20  ;;  %v6912_v20 = vld [vmem:[#allocation41_spill] sm:$0xff] }
 0x270   : > { %v4105_v23 = vpop.eup %4104 }
 0x271   : > { %v1429_v25 = vadd.f32 0.5, %v1428_v24  ;;  %v1430_v10 = vmul.f32 0.5, %v4105_v23  ;;  %v4107_v52 = vpop.eup %4106 }
 0x273   : > { %v1431_v27 = vadd.f32 0.5, %v1430_v10  ;;  %v1435_v17 = vmul.f32 %v4107_v52, %v1429_v25 }
 0x275   : > { %v1434_v15 = vmul.f32 0.0, %v1431_v27 }
 0x277   : > { %v5236_v7 = vadd.f32 %v1435_v17, %v1434_v15 }
 0x27c   : > { %v1474_v5 = vpop.f32.mrf.mxu0  ;;  %v1515_v14 = vpop.f32.mrf.mxu1 }
 0x27d   : > { %v1522_v26 = vadd.f32 %v1474_v5, %v6910_v22  ;;  %v1524_v24 = vadd.f32 %v1515_v14, %v6912_v20 }
 0x27e   : > { %v1476_v28 = vpop.f32.mrf.mxu0  ;;  %v1517_v54 = vpop.f32.mrf.mxu1 }
 0x27f   : > { %4108 = vtanh.f32 %v1522_v26  ;;  %v1523_v3 = vadd.f32 %v1476_v28, %v6911_v53  ;;  %v1525_v52 = vadd.f32 %v1517_v54, %v5037_v60  ;;  %v6913_v54 = vsub.s32 3, %v5011_v18  ;;  %v6915_v18 = vld [vmem:[#allocation43_spill] sm:$0xff] }
 0x280   : > { %v1478_v32 = vpop.f32.mrf.mxu0  ;;  %v1519_v29 = vpop.f32.mrf.mxu1 }
 0x281   : > { %4110 = vtanh.f32 %v1523_v3 }
 0x282   : > { %v1479_v23 = vpop.f32.mrf.mxu0  ;;  %v1520_v10 = vpop.f32.mrf.mxu1  ;;  %4112 = vtanh.f32 %v1524_v24 }
 0x283   : > { %4114 = vtanh.f32 %v1525_v52  ;;  %v5249_v10 = vrot.slane %v5216_v30, %v6913_v54  ;;  %v6917_v30 = vld [vmem:[#allocation45_spill] sm:$0xff]  ;;  %v6927_v54 = vld [vmem:[#allocation55_spill] sm:$0xff] }
 0x28c   : > { %v4109_v25 = vpop.eup %4108 }
 0x28d   : > { %v1530_v27 = vmul.f32 0.5, %v4109_v25 }
 0x28e   : > { %v4111_v17 = vpop.eup %4110 }
 0x28f   : > { %v1531_v15 = vadd.f32 0.5, %v1530_v27  ;;  %v1532_v5 = vmul.f32 0.5, %v4111_v17  ;;  %v4113_v26 = vpop.eup %4112  ;;  %v1423_v27 = vadd.f32 %v1416_v9, %v5249_v10  ;;  %v6916_v9 = vld [vmem:[#allocation44_spill] sm:$0xff]  ;;  %v6919_v17 = vld [vmem:[#allocation47_spill] sm:$0xff] }
 0x290   : > { %v4115_v14 = vpop.eup %4114 }
 0x291   : > { %v1533_v22 = vadd.f32 0.5, %v1532_v5  ;;  %v1537_v32 = vmul.f32 %v4113_v26, %v1531_v15  ;;  %v1534_v3 = vmul.f32 0.5, %v4115_v14  ;;  %v6920_v15 = vld [vmem:[#allocation48_spill] sm:$0xff]  ;;  %v6921_v5 = vld [vmem:[#allocation49_spill] sm:$0xff]  ;;  %v6922_v26 = vld [vmem:[#allocation50_spill] sm:$0xff] }
 0x292   : > { %v6924_v14 = vld [vmem:[#allocation52_spill] sm:$0xff] }
 0x293   : > { %v1536_v28 = vmul.f32 %v1533_v22, %v5040_v55  ;;  %v1535_v24 = vadd.f32 0.5, %v1534_v3  ;;  %v6914_v55 = vld [vmem:[#allocation42_spill] sm:$0xff]  ;;  %v6925_v3 = vld [vmem:[#allocation53_spill] sm:$0xff] }
 0x294   : > { %v6918_v22 = vld [vmem:[#allocation46_spill] sm:$0xff] }
 0x295   : > { %v5243_v29 = vadd.f32 %v1537_v32, %v1536_v28  ;;  %v6923_v32 = vld [vmem:[#allocation51_spill] sm:$0xff] }
 0x297   : > { %4116 = vtanh.f32 %v5243_v29 }
 0x298   : > { %4118 = vtanh.f32 %v1423_v27 }
 0x299   : > { %4120 = vtanh.f32 %v5236_v7 }
 0x2a4   : > { %v4117_v23 = vpop.eup %4116 }
 0x2a5   : > { %v1540_v25 = vmul.f32 %v4117_v23, %v1535_v24  ;;  %v4119_v28 = vpop.eup %4118  ;;  %v6926_v24 = vld [vmem:[#allocation54_spill] sm:$0xff] }
 0x2a6   : > { %v1432_v23 = vmul.f32 0.5, %v4119_v28 }
 0x2a7   : > { %v5251_v52 = vpack.c.bf16 %v1540_v25, %v1540_v25  ;;  %v4121_v25 = vpop.eup %4120 }
 0x2a8   : > { %v1433_v27 = vadd.f32 0.5, %v1432_v23  ;;  %v5296_v23 = vld [vmem:[#allocation5 + $0xec] ss:$16 sps:$4 sm:$0xff]  }
 0x2a9   : > { %1575 = vmatmul.mubr.bf16.vlgmr.msra.gmra.mxu0 %v5251_v52  ;;  %1616 = vmatmul.mubr.bf16.vlgmr.msra.gmra.mxu1 %v5251_v52  ;;  %6929 = vst [vmem:[#allocation41_spill] sm:$0xff] %v5296_v23 }
 0x2aa   : > { %1625 = vmatpush1.bf16.msra.mxu0 %v5043_v6  ;;  %1666 = vmatpush1.bf16.msra.mxu1 %v5045_v63 }
 0x2ab   : > { %1626 = vmatprep.subr.bf16.mxu0 %v5049_v58  ;;  %1667 = vmatprep.subr.bf16.mxu1 %v5051_v4 }
 0x2ac   : > { %1656 = vmatprep.mubr.bf16.mxu0 %v6868_v57  ;;  %1697 = vmatprep.mubr.bf16.mxu1 %v6868_v57 }
 0x2ae   : > { %1627 = vmatpush1.bf16.msra.mxu0 %v5057_v56  ;;  %1668 = vmatpush1.bf16.msra.mxu1 %v5059_v16 }
 0x2af   : > { %1628 = vmatprep.subr.bf16.mxu0 %v5063_v0  ;;  %1669 = vmatprep.subr.bf16.mxu1 %v6914_v55 }
 0x2b2   : > { %1629 = vmatpush1.bf16.msra.mxu0 %v6915_v18  ;;  %1670 = vmatpush1.bf16.msra.mxu1 %v6916_v9 }
 0x2b3   : > { %1630 = vmatprep.subr.bf16.mxu0 %v6917_v30  ;;  %1671 = vmatprep.subr.bf16.mxu1 %v6918_v22 }
 0x2b6   : > { %1631 = vmatpush1.bf16.msra.mxu0 %v6919_v17  ;;  %1672 = vmatpush1.bf16.msra.mxu1 %v6920_v15 }
 0x2b7   : > { %1632 = vmatprep.subr.bf16.mxu0 %v6921_v5  ;;  %1673 = vmatprep.subr.bf16.mxu1 %v6922_v26 }
 0x2ba   : > { %1633 = vmatpush1.bf16.msra.mxu0 %v6923_v32  ;;  %1674 = vmatpush1.bf16.msra.mxu1 %v6924_v14  ;;  %v5285_v14 = vmul.f32 %v4121_v25, %v1433_v27  ;;  %v5299_v25 = vld [vmem:[#allocation5 + $0xe0] ss:$16 sps:$4 sm:$0xff]   ;;  %v5302_v27 = vld [vmem:[#allocation5 + $0xe8] ss:$16 sps:$4 sm:$0xff]  }
 0x2bb   : > { %1634 = vmatprep.subr.bf16.mxu0 %v6925_v3  ;;  %1675 = vmatprep.subr.bf16.mxu1 %v6926_v24  ;;  %6930 = vst [vmem:[#allocation42_spill] sm:$0xff] %v5299_v25  ;;  %6931 = vst [vmem:[#allocation43_spill] sm:$0xff] %v5302_v27 }
 0x2bc   : > { %6928 = vst [vmem:[#allocation39_spill] sm:$0xff] %v5285_v14  ;;  %v1439_v28 = vpack.c.bf16 %v5285_v14, %v5285_v14  ;;  %v5308_v14 = vld [vmem:[#allocation5 + $0xcc] ss:$16 sps:$4 sm:$0xff]  }
 0x2bd   : > { %6933 = vst [vmem:[#allocation45_spill] sm:$0xff] %v5308_v14 }
 0x2be   : > { %1635 = vmatpush1.bf16.msra.mxu0 %v6927_v54  ;;  %1676 = vmatpush1.bf16.msra.mxu1 %v5109_v61 }
 0x2bf   : > { %1636 = vmatprep.subr.bf16.mxu0 %v5113_v13  ;;  %1677 = vmatprep.subr.bf16.mxu1 %v5115_v59  ;;  %v5293_v59 = vld [vmem:[#allocation5 + $0xe4] ss:$16 sps:$4 sm:$0xff]  }
 0x2c2   : > { %1637 = vmatpush1.bf16.msra.mxu0 %v5119_v8  ;;  %1678 = vmatpush1.bf16.msra.mxu1 %v5121_v1 }
 0x2c3   : > { %1638 = vmatprep.subr.bf16.mxu0 %v5125_v2  ;;  %1679 = vmatprep.subr.bf16.mxu1 %v5127_v11 }
 0x2c6   : > { %1639 = vmatpush1.bf16.msra.mxu0 %v5131_v62  ;;  %1680 = vmatpush1.bf16.msra.mxu1 %v5133_v12  ;;  %v5305_v12 = vld [vmem:[#allocation5 + $0xc4] ss:$16 sps:$4 sm:$0xff]  }
 0x2c7   : > { %1726 = vmatprep.subr.bf16.mxu0 %v5293_v59  ;;  %1767 = vmatprep.subr.bf16.mxu1 %v5296_v23  ;;  %6932 = vst [vmem:[#allocation44_spill] sm:$0xff] %v5305_v12  ;;  %v5329_v23 = vld [vmem:[#allocation5 + $0x84] ss:$16 sps:$4 sm:$0xff]  }
 0x2c9   : > { %1657 = vmatmul.mubr.bf16.vlgmr.msra.gmra.mxu0 %v1439_v28  ;;  %1698 = vmatmul.mubr.bf16.vlgmr.msra.gmra.mxu1 %v1439_v28  ;;  %v5313_v28 = vld [vmem:[#allocation5 + $0xc0] ss:$16 sps:$4 sm:$0xff]  }
 0x2ca   : > { %1727 = vmatpush1.bf16.msra.mxu0 %v5299_v25  ;;  %1768 = vmatpush1.bf16.msra.mxu1 %v5302_v27  ;;  %v5316_v25 = vld [vmem:[#allocation5 + $0xc8] ss:$16 sps:$4 sm:$0xff]   ;;  %v5319_v27 = vld [vmem:[#allocation5 + $0xa4] ss:$16 sps:$4 sm:$0xff]  }
 0x2cb   : > { %1728 = vmatprep.subr.bf16.mxu0 %v5305_v12  ;;  %1769 = vmatprep.subr.bf16.mxu1 %v5308_v14  ;;  %6934 = vst [vmem:[#allocation46_spill] sm:$0xff] %v5316_v25  ;;  %6935 = vst [vmem:[#allocation47_spill] sm:$0xff] %v5319_v27  ;;  %v5322_v12 = vld [vmem:[#allocation5 + $0xac] ss:$16 sps:$4 sm:$0xff]   ;;  %v5325_v14 = vld [vmem:[#allocation5 + $0xa0] ss:$16 sps:$4 sm:$0xff]  }
 0x2cc   : > { %1758 = vmatprep.mubr.bf16.mxu0 %v6868_v57  ;;  %1799 = vmatprep.mubr.bf16.mxu1 %v6868_v57  ;;  %6936 = vst [vmem:[#allocation48_spill] sm:$0xff] %v5325_v14 }
 0x2ce   : > { %1729 = vmatpush1.bf16.msra.mxu0 %v5313_v28  ;;  %1770 = vmatpush1.bf16.msra.mxu1 %v5316_v25  ;;  %v5333_v25 = vld [vmem:[#allocation5 + $0x80] ss:$16 sps:$4 sm:$0xff]  }
 0x2cf   : > { %1730 = vmatprep.subr.bf16.mxu0 %v5319_v27  ;;  %1771 = vmatprep.subr.bf16.mxu1 %v5322_v12  ;;  %v5337_v27 = vld [vmem:[#allocation5 + $0x64] ss:$16 sps:$4 sm:$0xff]  }
 0x2d2   : > { %1731 = vmatpush1.bf16.msra.mxu0 %v5325_v14  ;;  %1772 = vmatpush1.bf16.msra.mxu1 %v4863_v31  ;;  %v5341_v14 = vld [vmem:[#allocation5 + $0x60] ss:$16 sps:$4 sm:$0xff]   ;;  %v5345_v31 = vld [vmem:[#allocation5 + $0x44] ss:$16 sps:$4 sm:$0xff]  }
 0x2d3   : > { %1732 = vmatprep.subr.bf16.mxu0 %v5329_v23  ;;  %1773 = vmatprep.subr.bf16.mxu1 %v4869_v33  ;;  %6937 = vst [vmem:[#allocation49_spill] sm:$0xff] %v5341_v14  ;;  %6938 = vst [vmem:[#allocation50_spill] sm:$0xff] %v5345_v31  ;;  %v5349_v33 = vld [vmem:[#allocation5 + $0x40] ss:$16 sps:$4 sm:$0xff]  }
 0x2d4   : > { %6939 = vst [vmem:[#allocation51_spill] sm:$0xff] %v5349_v33 }
 0x2d6   : > { %1733 = vmatpush1.bf16.msra.mxu0 %v5333_v25  ;;  %1774 = vmatpush1.bf16.msra.mxu1 %v4873_v35  ;;  %v5353_v35 = vld [vmem:[#allocation5 + $0x24] ss:$16 sps:$4 sm:$0xff]  }
 0x2d7   : > { %1734 = vmatprep.subr.bf16.mxu0 %v5337_v27  ;;  %1775 = vmatprep.subr.bf16.mxu1 %v4875_v36  ;;  %6940 = vst [vmem:[#allocation53_spill] sm:$0xff] %v5353_v35  ;;  %v5357_v36 = vld [vmem:[#allocation5 + $0x20] ss:$16 sps:$4 sm:$0xff]  }
 0x2d8   : > { %6941 = vst [vmem:[#allocation54_spill] sm:$0xff] %v5357_v36 }
 0x2da   : > { %1735 = vmatpush1.bf16.msra.mxu0 %v5341_v14  ;;  %1776 = vmatpush1.bf16.msra.mxu1 %v4881_v37  ;;  %v5361_v37 = vld [vmem:[#allocation5 + $0x4] ss:$16 sps:$4 sm:$0xff]  }
 0x2db   : > { %1736 = vmatprep.subr.bf16.mxu0 %v5345_v31  ;;  %1777 = vmatprep.subr.bf16.mxu1 %v4883_v38  ;;  %6942 = vst [vmem:[#allocation55_spill] sm:$0xff] %v5361_v37  ;;  %v5365_v38 = vld [vmem:[#allocation5] ss:$16 sps:$4 sm:$0xff]  }
 0x2dc   : > { %6943 = vst [vmem:[#allocation58_spill] sm:$0xff] %v5365_v38 }
 0x2de   : > { %1737 = vmatpush1.bf16.msra.mxu0 %v5349_v33  ;;  %1778 = vmatpush1.bf16.msra.mxu1 %v4888_v39  ;;  %v6944_v39 = vld [vmem:[#allocation13_spill] sm:$0xff] }
 0x2df   : > { %1738 = vmatprep.subr.bf16.mxu0 %v5353_v35  ;;  %1779 = vmatprep.subr.bf16.mxu1 %v4891_v40  ;;  %v6945_v40 = vld [vmem:[#allocation14_spill] sm:$0xff] }
 0x2e2   : > { %1739 = vmatpush1.bf16.msra.mxu0 %v5357_v36  ;;  %1780 = vmatpush1.bf16.msra.mxu1 %v4896_v41  ;;  %v6946_v41 = vld [vmem:[#allocation15_spill] sm:$0xff] }
 0x2e3   : > { %1740 = vmatprep.subr.bf16.mxu0 %v5361_v37  ;;  %1781 = vmatprep.subr.bf16.mxu1 %v4898_v42  ;;  %v6947_v42 = vld [vmem:[#allocation16_spill] sm:$0xff] }
 0x2e6   : > { %1741 = vmatpush1.bf16.msra.mxu0 %v5365_v38  ;;  %1782 = vmatpush1.bf16.msra.mxu1 %v4902_v43  ;;  %v6948_v43 = vld [vmem:[#allocation17_spill] sm:$0xff] }
 0x2e7   : > { %1828 = vmatprep.subr.bf16.mxu0 %v4909_v44  ;;  %1869 = vmatprep.subr.bf16.mxu1 %v4911_v45  ;;  %v6949_v44 = vld [vmem:[#allocation18_spill] sm:$0xff]  ;;  %v6950_v45 = vld [vmem:[#allocation19_spill] sm:$0xff] }
 0x2e9   : > { %1759 = vmatmul.mubr.bf16.vlgmr.msra.gmra.mxu0 %v5251_v52  ;;  %1800 = vmatmul.mubr.bf16.vlgmr.msra.gmra.mxu1 %v5251_v52  ;;  %v6957_v52 = vld [vmem:[#allocation26_spill] sm:$0xff] }
 0x2ea   : > { %1829 = vmatpush1.bf16.msra.mxu0 %v4913_v46  ;;  %1870 = vmatpush1.bf16.msra.mxu1 %v4915_v47  ;;  %v6951_v46 = vld [vmem:[#allocation20_spill] sm:$0xff]  ;;  %v6952_v47 = vld [vmem:[#allocation21_spill] sm:$0xff] }
 0x2eb   : > { %1830 = vmatprep.subr.bf16.mxu0 %v4921_v48  ;;  %1871 = vmatprep.subr.bf16.mxu1 %v4923_v49  ;;  %v6953_v48 = vld [vmem:[#allocation22_spill] sm:$0xff]  ;;  %v6954_v49 = vld [vmem:[#allocation23_spill] sm:$0xff] }
 0x2ec   : > { %1860 = vmatprep.mubr.bf16.mxu0 %v6868_v57  ;;  %1901 = vmatprep.mubr.bf16.mxu1 %v6868_v57 }
 0x2ee   : > { %1831 = vmatpush1.bf16.msra.mxu0 %v4925_v50  ;;  %1872 = vmatpush1.bf16.msra.mxu1 %v4927_v51  ;;  %v6955_v50 = vld [vmem:[#allocation24_spill] sm:$0xff]  ;;  %v6956_v51 = vld [vmem:[#allocation25_spill] sm:$0xff] }
 0x2ef   : > { %1832 = vmatprep.subr.bf16.mxu0 %v6944_v39  ;;  %1873 = vmatprep.subr.bf16.mxu1 %v6945_v40  ;;  %v6958_v39 = vld [vmem:[#allocation27_spill] sm:$0xff]  ;;  %v6959_v40 = vld [vmem:[#allocation28_spill] sm:$0xff] }
 0x2f2   : > { %1833 = vmatpush1.bf16.msra.mxu0 %v6946_v41  ;;  %1874 = vmatpush1.bf16.msra.mxu1 %v6947_v42  ;;  %v6960_v41 = vld [vmem:[#allocation29_spill] sm:$0xff]  ;;  %v6961_v42 = vld [vmem:[#allocation30_spill] sm:$0xff] }
 0x2f3   : > { %1834 = vmatprep.subr.bf16.mxu0 %v6948_v43  ;;  %1875 = vmatprep.subr.bf16.mxu1 %v6949_v44  ;;  %v6962_v43 = vld [vmem:[#allocation31_spill] sm:$0xff]  ;;  %v6963_v44 = vld [vmem:[#allocation32_spill] sm:$0xff] }
 0x2f6   : > { %1835 = vmatpush1.bf16.msra.mxu0 %v6950_v45  ;;  %1876 = vmatpush1.bf16.msra.mxu1 %v6951_v46  ;;  %v6964_v45 = vld [vmem:[#allocation33_spill] sm:$0xff]  ;;  %v6965_v46 = vld [vmem:[#allocation34_spill] sm:$0xff] }
 0x2f7   : > { %1836 = vmatprep.subr.bf16.mxu0 %v6952_v47  ;;  %1877 = vmatprep.subr.bf16.mxu1 %v6953_v48  ;;  %v6966_v47 = vld [vmem:[#allocation35_spill] sm:$0xff]  ;;  %v6967_v48 = vld [vmem:[#allocation36_spill] sm:$0xff] }
 0x2fa   : > { %1837 = vmatpush1.bf16.msra.mxu0 %v6954_v49  ;;  %1878 = vmatpush1.bf16.msra.mxu1 %v6955_v50  ;;  %v6968_v49 = vld [vmem:[#allocation37_spill] sm:$0xff]  ;;  %v6969_v50 = vld [vmem:[#allocation38_spill] sm:$0xff] }
 0x2fb   : > { %1838 = vmatprep.subr.bf16.mxu0 %v6956_v51  ;;  %1879 = vmatprep.subr.bf16.mxu1 %v6957_v52 }
 0x2fe   : > { %1839 = vmatpush1.bf16.msra.mxu0 %v6958_v39  ;;  %1880 = vmatpush1.bf16.msra.mxu1 %v6959_v40 }
 0x2ff   : > { %1840 = vmatprep.subr.bf16.mxu0 %v6960_v41  ;;  %1881 = vmatprep.subr.bf16.mxu1 %v6961_v42 }
 0x302   : > { %1841 = vmatpush1.bf16.msra.mxu0 %v6962_v43  ;;  %1882 = vmatpush1.bf16.msra.mxu1 %v6963_v44 }
 0x303   : > { %1842 = vmatprep.subr.bf16.mxu0 %v6964_v45  ;;  %1883 = vmatprep.subr.bf16.mxu1 %v6965_v46 }
 0x306   : > { %1843 = vmatpush1.bf16.msra.mxu0 %v6966_v47  ;;  %1884 = vmatpush1.bf16.msra.mxu1 %v6967_v48 }
 0x307   : > { %1910 = vmatprep.subr.bf16.mxu0 %v6968_v49  ;;  %1951 = vmatprep.subr.bf16.mxu1 %v6969_v50 }
 0x369   : > { %v1576_v51 = vpop.f32.mrf.mxu0  ;;  %v1617_v52 = vpop.f32.mrf.mxu1 }
 0x36b   : > { %v1578_v39 = vpop.f32.mrf.mxu0  ;;  %v1619_v40 = vpop.f32.mrf.mxu1 }
 0x36d   : > { %v1580_v41 = vpop.f32.mrf.mxu0  ;;  %v1621_v42 = vpop.f32.mrf.mxu1 }
 0x36f   : > { %v1581_v43 = vpop.f32.mrf.mxu0  ;;  %v1622_v44 = vpop.f32.mrf.mxu1 }
 0x389   : > { %v1658_v38 = vpop.f32.mrf.mxu0  ;;  %v1699_v45 = vpop.f32.mrf.mxu1 }
 0x38a   : > { %v1659_v37 = vadd.f32 %v1658_v38, %v1576_v51  ;;  %v1700_v46 = vadd.f32 %v1699_v45, %v1617_v52 }
 0x38b   : > { %v1660_v36 = vpop.f32.mrf.mxu0  ;;  %v1701_v47 = vpop.f32.mrf.mxu1 }
 0x38c   : > { %v1706_v48 = vadd.f32 %v1659_v37, %v5221_v34  ;;  %v1661_v35 = vadd.f32 %v1660_v36, %v1578_v39  ;;  %v1702_v49 = vadd.f32 %v1701_v47, %v1619_v40  ;;  %v1708_v31 = vadd.f32 %v1700_v46, %v5231_v21  ;;  %v6970_v47 = vld [vmem:[#allocation40_spill] sm:$0xff] }
 0x38d   : > { %v1662_v33 = vpop.f32.mrf.mxu0  ;;  %v1703_v50 = vpop.f32.mrf.mxu1 }
 0x38e   : > { %4122 = vtanh.f32 %v1706_v48  ;;  %v1707_v41 = vadd.f32 %v1661_v35, %v5226_v19 }
 0x38f   : > { %v1663_v42 = vpop.f32.mrf.mxu0  ;;  %v1704_v43 = vpop.f32.mrf.mxu1 }
 0x390   : > { %4124 = vtanh.f32 %v1707_v41 }
 0x391   : > { %4126 = vtanh.f32 %v1708_v31 }
 0x39b   : > { %v4123_v44 = vpop.eup %4122 }
 0x39c   : > { %v1714_v38 = vmul.f32 0.5, %v4123_v44 }
 0x39d   : > { %v4125_v51 = vpop.eup %4124 }
 0x39e   : > { %v1715_v52 = vadd.f32 0.5, %v1714_v38  ;;  %v1716_v45 = vmul.f32 0.5, %v4125_v51  ;;  %v4127_v14 = vpop.eup %4126 }
 0x3a0   : > { %v1717_v37 = vadd.f32 0.5, %v1716_v45  ;;  %v1721_v36 = vmul.f32 %v4127_v14, %v1715_v52 }
 0x3a2   : > { %v1720_v33 = vmul.f32 %v1717_v37, %v5236_v7 }
 0x3a4   : > { %v5411_v39 = vadd.f32 %v1721_v36, %v1720_v33 }
 0x3a9   : > { %v1760_v40 = vpop.f32.mrf.mxu0  ;;  %v1801_v46 = vpop.f32.mrf.mxu1 }
 0x3aa   : > { %v1808_v35 = vadd.f32 %v1760_v40, %v6970_v47  ;;  %v1810_v43 = vadd.f32 %v1801_v46, %v6912_v20 }
 0x3ab   : > { %v1762_v48 = vpop.f32.mrf.mxu0  ;;  %v1803_v50 = vpop.f32.mrf.mxu1 }
 0x3ac   : > { %4128 = vtanh.f32 %v1808_v35  ;;  %v1809_v31 = vadd.f32 %v1762_v48, %v6911_v53  ;;  %v1811_v7 = vadd.f32 %v1803_v50, %v5037_v60 }
 0x3ad   : > { %v1764_v41 = vpop.f32.mrf.mxu0  ;;  %v1805_v42 = vpop.f32.mrf.mxu1 }
 0x3ae   : > { %4130 = vtanh.f32 %v1809_v31 }
 0x3af   : > { %v1765_v44 = vpop.f32.mrf.mxu0  ;;  %v1806_v14 = vpop.f32.mrf.mxu1  ;;  %4132 = vtanh.f32 %v1810_v43 }
 0x3b0   : > { %4134 = vtanh.f32 %v1811_v7  ;;  %v1709_v44 = vadd.f32 %v1702_v49, %v5249_v10  ;;  %v5504_v49 = vld [vmem:[#allocation5 + $0x2c] ss:$16 sps:$4 sm:$0xff]   ;;  %v5508_v7 = vld [vmem:[#allocation5 + $0x28] ss:$16 sps:$4 sm:$0xff]  }
 0x3b1   : > { %v6987_v14 = vld [vmem:[#allocation54_spill] sm:$0xff] }
 0x3b9   : > { %v4129_v38 = vpop.eup %4128 }
 0x3ba   : > { %v1816_v51 = vmul.f32 0.5, %v4129_v38  ;;  %v6988_v38 = vld [vmem:[#allocation55_spill] sm:$0xff] }
 0x3bb   : > { %v4131_v52 = vpop.eup %4130 }
 0x3bc   : > { %v1817_v45 = vadd.f32 0.5, %v1816_v51  ;;  %v1818_v37 = vmul.f32 0.5, %v4131_v52  ;;  %v4133_v33 = vpop.eup %4132  ;;  %v5512_v51 = vld [vmem:[#allocation5 + $0xc] ss:$16 sps:$4 sm:$0xff]  }
 0x3bd   : > { %v4135_v46 = vpop.eup %4134  ;;  %v6989_v52 = vld [vmem:[#allocation58_spill] sm:$0xff] }
 0x3be   : > { %v1819_v36 = vadd.f32 0.5, %v1818_v37  ;;  %v1823_v35 = vmul.f32 %v4133_v33, %v1817_v45  ;;  %v1820_v31 = vmul.f32 0.5, %v4135_v46  ;;  %v5516_v45 = vld [vmem:[#allocation5 + $0x8] ss:$16 sps:$4 sm:$0xff]   ;;  %v5519_v37 = vld [vmem:[#allocation7 + $0xe4] ss:$16 sps:$4 sm:$0xff]  }
 0x3bf   : > { %6990 = vst [vmem:[#allocation14_spill] sm:$0xff] %v5519_v37  ;;  %v5527_v33 = vld [vmem:[#allocation7 + $0xe0] ss:$16 sps:$4 sm:$0xff]   ;;  %v5536_v46 = vld [vmem:[#allocation7 + $0xcc] ss:$16 sps:$4 sm:$0xff]  }
 0x3c0   : > { %v1822_v40 = vmul.f32 %v1819_v36, %v5243_v29  ;;  %v1821_v41 = vadd.f32 0.5, %v1820_v31  ;;  %v6974_v29 = vld [vmem:[#allocation57_spill] sm:$0xff]  ;;  %v5522_v36 = vld [vmem:[#allocation7 + $0xec] ss:$16 sps:$4 sm:$0xff]   ;;  %6992 = vst [vmem:[#allocation16_spill] sm:$0xff] %v5527_v33  ;;  %6995 = vst [vmem:[#allocation19_spill] sm:$0xff] %v5536_v46 }
 0x3c1   : > { %6991 = vst [vmem:[#allocation15_spill] sm:$0xff] %v5522_v36  ;;  %v5541_v31 = vld [vmem:[#allocation7 + $0xc0] ss:$16 sps:$4 sm:$0xff]  }
 0x3c2   : > { %v5418_v48 = vadd.f32 %v1823_v35, %v1822_v40  ;;  %v5530_v40 = vld [vmem:[#allocation7 + $0xe8] ss:$16 sps:$4 sm:$0xff]   ;;  %v5533_v35 = vld [vmem:[#allocation7 + $0xc4] ss:$16 sps:$4 sm:$0xff]   ;;  %6996 = vst [vmem:[#allocation20_spill] sm:$0xff] %v5541_v31 }
 0x3c3   : > { %6993 = vst [vmem:[#allocation17_spill] sm:$0xff] %v5530_v40  ;;  %6994 = vst [vmem:[#allocation18_spill] sm:$0xff] %v5533_v35 }
 0x3c4   : > { %4136 = vtanh.f32 %v5418_v48 }
 0x3c5   : > { %4138 = vtanh.f32 %v1709_v44  ;;  %v5556_v44 = vld [vmem:[#allocation7 + $0xa8] ss:$16 sps:$4 sm:$0xff]  }
 0x3c6   : > { %4140 = vtanh.f32 %v5411_v39  ;;  %7001 = vst [vmem:[#allocation25_spill] sm:$0xff] %v5556_v44 }
 0x3d1   : > { %v4137_v42 = vpop.eup %4136 }
 0x3d2   : > { %v1826_v50 = vmul.f32 %v4137_v42, %v1821_v41  ;;  %v5544_v41 = vld [vmem:[#allocation7 + $0xc8] ss:$16 sps:$4 sm:$0xff]   ;;  %v5547_v42 = vld [vmem:[#allocation7 + $0xa4] ss:$16 sps:$4 sm:$0xff]  }
 0x3d3   : > { %6997 = vst [vmem:[#allocation21_spill] sm:$0xff] %v5544_v41  ;;  %6998 = vst [vmem:[#allocation22_spill] sm:$0xff] %v5547_v42 }
 0x3d4   : > { %v5421_v43 = vpack.c.bf16 %v1826_v50, %v1826_v50  ;;  %v5550_v50 = vld [vmem:[#allocation7 + $0xac] ss:$16 sps:$4 sm:$0xff]  }
 0x3d5   : > { %6999 = vst [vmem:[#allocation23_spill] sm:$0xff] %v5550_v50 }
 0x3d6   : > { %1861 = vmatmul.mubr.bf16.vlgmr.msra.gmra.mxu0 %v5421_v43  ;;  %1902 = vmatmul.mubr.bf16.vlgmr.msra.gmra.mxu1 %v5421_v43 }
 0x3d7   : > { %1911 = vmatpush1.bf16.msra.mxu0 %v5043_v6  ;;  %1952 = vmatpush1.bf16.msra.mxu1 %v5045_v63  ;;  %v4139_v6 = vpop.eup %4138  ;;  %v6971_v63 = vld [vmem:[#allocation52_spill] sm:$0xff] }
 0x3d8   : > { %1912 = vmatprep.subr.bf16.mxu0 %v5049_v58  ;;  %1953 = vmatprep.subr.bf16.mxu1 %v5051_v4  ;;  %v1718_v58 = vmul.f32 0.5, %v4139_v6  ;;  %v6972_v4 = vld [vmem:[#allocation56_spill] sm:$0xff]  ;;  %v5559_v6 = vld [vmem:[#allocation7 + $0x84] ss:$16 sps:$4 sm:$0xff]  }
 0x3d9   : > { %1942 = vmatprep.mubr.bf16.mxu0 %v6868_v57  ;;  %1983 = vmatprep.mubr.bf16.mxu1 %v6868_v57  ;;  %7002 = vst [vmem:[#allocation26_spill] sm:$0xff] %v5559_v6 }
 0x3db   : > { %1913 = vmatpush1.bf16.msra.mxu0 %v5057_v56  ;;  %1954 = vmatpush1.bf16.msra.mxu1 %v5059_v16  ;;  %v4141_v56 = vpop.eup %4140  ;;  %v1719_v16 = vadd.f32 0.5, %v1718_v58  ;;  %v5565_v58 = vld [vmem:[#allocation7 + $0x80] ss:$16 sps:$4 sm:$0xff]  }
 0x3dc   : > { %1914 = vmatprep.subr.bf16.mxu0 %v5063_v0  ;;  %1955 = vmatprep.subr.bf16.mxu1 %v6914_v55  ;;  %v6981_v55 = vld [vmem:[#allocation47_spill] sm:$0xff]  ;;  %7004 = vst [vmem:[#allocation28_spill] sm:$0xff] %v5565_v58 }
 0x3dd   : > { %v5455_v0 = vmul.f32 %v4141_v56, %v1719_v16  ;;  %v5571_v56 = vld [vmem:[#allocation7 + $0x64] ss:$16 sps:$4 sm:$0xff]   ;;  %v5574_v16 = vld [vmem:[#allocation7 + $0x6c] ss:$16 sps:$4 sm:$0xff]  }
 0x3de   : > { %7006 = vst [vmem:[#allocation30_spill] sm:$0xff] %v5571_v56  ;;  %7007 = vst [vmem:[#allocation31_spill] sm:$0xff] %v5574_v16 }
 0x3df   : > { %1915 = vmatpush1.bf16.msra.mxu0 %v6915_v18  ;;  %1956 = vmatpush1.bf16.msra.mxu1 %v6916_v9  ;;  %6973 = vst [vmem:[#allocation13_spill] sm:$0xff] %v5455_v0  ;;  %v6982_v18 = vld [vmem:[#allocation48_spill] sm:$0xff] }
 0x3e0   : > { %1916 = vmatprep.subr.bf16.mxu0 %v6917_v30  ;;  %1957 = vmatprep.subr.bf16.mxu1 %v6918_v22  ;;  %v5476_v9 = vld [vmem:[#allocation5 + $0xa8] ss:$16 sps:$4 sm:$0xff]   ;;  %v5480_v30 = vld [vmem:[#allocation5 + $0x8c] ss:$16 sps:$4 sm:$0xff]  }
 0x3e1   : > { %v5484_v22 = vld [vmem:[#allocation5 + $0x88] ss:$16 sps:$4 sm:$0xff]  }
 0x3e3   : > { %1917 = vmatpush1.bf16.msra.mxu0 %v6919_v17  ;;  %1958 = vmatpush1.bf16.msra.mxu1 %v6920_v15  ;;  %v5488_v17 = vld [vmem:[#allocation5 + $0x6c] ss:$16 sps:$4 sm:$0xff]   ;;  %v6983_v15 = vld [vmem:[#allocation49_spill] sm:$0xff] }
 0x3e4   : > { %1918 = vmatprep.subr.bf16.mxu0 %v6921_v5  ;;  %1959 = vmatprep.subr.bf16.mxu1 %v6922_v26  ;;  %v5492_v5 = vld [vmem:[#allocation5 + $0x68] ss:$16 sps:$4 sm:$0xff]  }
 0x3e5   : > { %v6984_v26 = vld [vmem:[#allocation50_spill] sm:$0xff] }
 0x3e7   : > { %1919 = vmatpush1.bf16.msra.mxu0 %v6923_v32  ;;  %1960 = vmatpush1.bf16.msra.mxu1 %v6971_v63  ;;  %v5496_v32 = vld [vmem:[#allocation5 + $0x4c] ss:$16 sps:$4 sm:$0xff]  }
 0x3e8   : > { %1920 = vmatprep.subr.bf16.mxu0 %v6925_v3  ;;  %1961 = vmatprep.subr.bf16.mxu1 %v6926_v24  ;;  %v6985_v3 = vld [vmem:[#allocation51_spill] sm:$0xff]  ;;  %v5500_v24 = vld [vmem:[#allocation5 + $0x48] ss:$16 sps:$4 sm:$0xff]   ;;  %v5562_v63 = vld [vmem:[#allocation7 + $0x8c] ss:$16 sps:$4 sm:$0xff]  }
 0x3e9   : > { %7003 = vst [vmem:[#allocation27_spill] sm:$0xff] %v5562_v63 }
 0x3eb   : > { %1921 = vmatpush1.bf16.msra.mxu0 %v6927_v54  ;;  %1962 = vmatpush1.bf16.msra.mxu1 %v5109_v61  ;;  %v1725_v61 = vpack.c.bf16 %v5455_v0, %v5455_v0  ;;  %v6986_v54 = vld [vmem:[#allocation53_spill] sm:$0xff] }
 0x3ec   : > { %1922 = vmatprep.subr.bf16.mxu0 %v5113_v13  ;;  %1963 = vmatprep.subr.bf16.mxu1 %v6972_v4  ;;  %v6975_v13 = vld [vmem:[#allocation41_spill] sm:$0xff]  ;;  %v5568_v4 = vld [vmem:[#allocation7 + $0x88] ss:$16 sps:$4 sm:$0xff]  }
 0x3ed   : > { %7005 = vst [vmem:[#allocation29_spill] sm:$0xff] %v5568_v4  ;;  %v5583_v0 = vld [vmem:[#allocation7 + $0x44] ss:$16 sps:$4 sm:$0xff]  }
 0x3ee   : > { %7010 = vst [vmem:[#allocation34_spill] sm:$0xff] %v5583_v0 }
 0x3ef   : > { %1923 = vmatpush1.bf16.msra.mxu0 %v5119_v8  ;;  %1964 = vmatpush1.bf16.msra.mxu1 %v5121_v1  ;;  %v6976_v8 = vld [vmem:[#allocation42_spill] sm:$0xff]  ;;  %v6977_v1 = vld [vmem:[#allocation43_spill] sm:$0xff] }
 0x3f0   : > { %1924 = vmatprep.subr.bf16.mxu0 %v5125_v2  ;;  %1965 = vmatprep.subr.bf16.mxu1 %v5127_v11  ;;  %v6978_v2 = vld [vmem:[#allocation44_spill] sm:$0xff]  ;;  %v6979_v11 = vld [vmem:[#allocation45_spill] sm:$0xff] }
 0x3f3   : > { %1925 = vmatpush1.bf16.msra.mxu0 %v5131_v62  ;;  %1966 = vmatpush1.bf16.msra.mxu1 %v6974_v29  ;;  %v6980_v62 = vld [vmem:[#allocation46_spill] sm:$0xff]  ;;  %v5577_v29 = vld [vmem:[#allocation7 + $0x60] ss:$16 sps:$4 sm:$0xff]  }
 0x3f4   : > { %2012 = vmatprep.subr.bf16.mxu0 %v5293_v59  ;;  %2053 = vmatprep.subr.bf16.mxu1 %v6975_v13  ;;  %7008 = vst [vmem:[#allocation32_spill] sm:$0xff] %v5577_v29 }
 0x3f6   : > { %1943 = vmatmul.mubr.bf16.vlgmr.msra.gmra.mxu0 %v1725_v61  ;;  %1984 = vmatmul.mubr.bf16.vlgmr.msra.gmra.mxu1 %v1725_v61  ;;  %v5580_v61 = vld [vmem:[#allocation7 + $0x68] ss:$16 sps:$4 sm:$0xff]  }
 0x3f7   : > { %2013 = vmatpush1.bf16.msra.mxu0 %v6976_v8  ;;  %2054 = vmatpush1.bf16.msra.mxu1 %v6977_v1  ;;  %7009 = vst [vmem:[#allocation33_spill] sm:$0xff] %v5580_v61 }
 0x3f8   : > { %2014 = vmatprep.subr.bf16.mxu0 %v6978_v2  ;;  %2055 = vmatprep.subr.bf16.mxu1 %v6979_v11 }
 0x3f9   : > { %2044 = vmatprep.mubr.bf16.mxu0 %v6868_v57  ;;  %2085 = vmatprep.mubr.bf16.mxu1 %v6868_v57 }
 0x3fb   : > { %2015 = vmatpush1.bf16.msra.mxu0 %v5313_v28  ;;  %2056 = vmatpush1.bf16.msra.mxu1 %v6980_v62 }
 0x3fc   : > { %2016 = vmatprep.subr.bf16.mxu0 %v6981_v55  ;;  %2057 = vmatprep.subr.bf16.mxu1 %v5322_v12 }
 0x3ff   : > { %2017 = vmatpush1.bf16.msra.mxu0 %v6982_v18  ;;  %2058 = vmatpush1.bf16.msra.mxu1 %v5476_v9 }
 0x400   : > { %2018 = vmatprep.subr.bf16.mxu0 %v5329_v23  ;;  %2059 = vmatprep.subr.bf16.mxu1 %v5480_v30 }
 0x403   : > { %2019 = vmatpush1.bf16.msra.mxu0 %v5333_v25  ;;  %2060 = vmatpush1.bf16.msra.mxu1 %v5484_v22 }
 0x404   : > { %2020 = vmatprep.subr.bf16.mxu0 %v5337_v27  ;;  %2061 = vmatprep.subr.bf16.mxu1 %v5488_v17 }
 0x407   : > { %2021 = vmatpush1.bf16.msra.mxu0 %v6983_v15  ;;  %2062 = vmatpush1.bf16.msra.mxu1 %v5492_v5 }
 0x408   : > { %2022 = vmatprep.subr.bf16.mxu0 %v6984_v26  ;;  %2063 = vmatprep.subr.bf16.mxu1 %v5496_v32 }
 0x40b   : > { %2023 = vmatpush1.bf16.msra.mxu0 %v6985_v3  ;;  %2064 = vmatpush1.bf16.msra.mxu1 %v5500_v24 }
 0x40c   : > { %2024 = vmatprep.subr.bf16.mxu0 %v6986_v54  ;;  %2065 = vmatprep.subr.bf16.mxu1 %v5504_v49 }
 0x40f   : > { %2025 = vmatpush1.bf16.msra.mxu0 %v6987_v14  ;;  %2066 = vmatpush1.bf16.msra.mxu1 %v5508_v7 }
 0x410   : > { %2026 = vmatprep.subr.bf16.mxu0 %v6988_v38  ;;  %2067 = vmatprep.subr.bf16.mxu1 %v5512_v51 }
 0x413   : > { %2027 = vmatpush1.bf16.msra.mxu0 %v6989_v52  ;;  %2068 = vmatpush1.bf16.msra.mxu1 %v5516_v45 }
 0x414   : > { %2114 = vmatprep.subr.bf16.mxu0 %v5519_v37  ;;  %2155 = vmatprep.subr.bf16.mxu1 %v5522_v36 }
 0x416   : > { %2045 = vmatmul.mubr.bf16.vlgmr.msra.gmra.mxu0 %v5421_v43  ;;  %2086 = vmatmul.mubr.bf16.vlgmr.msra.gmra.mxu1 %v5421_v43  ;;  %v5553_v43 = vld [vmem:[#allocation7 + $0xa0] ss:$16 sps:$4 sm:$0xff]  }
 0x417   : > { %2115 = vmatpush1.bf16.msra.mxu0 %v5527_v33  ;;  %2156 = vmatpush1.bf16.msra.mxu1 %v5530_v40  ;;  %7000 = vst [vmem:[#allocation24_spill] sm:$0xff] %v5553_v43 }
 0x418   : > { %2116 = vmatprep.subr.bf16.mxu0 %v5533_v35  ;;  %2157 = vmatprep.subr.bf16.mxu1 %v5536_v46 }
 0x419   : > { %2146 = vmatprep.mubr.bf16.mxu0 %v6868_v57  ;;  %2187 = vmatprep.mubr.bf16.mxu1 %v6868_v57 }
 0x41b   : > { %2117 = vmatpush1.bf16.msra.mxu0 %v5541_v31  ;;  %2158 = vmatpush1.bf16.msra.mxu1 %v5544_v41 }
 0x41c   : > { %2118 = vmatprep.subr.bf16.mxu0 %v5547_v42  ;;  %2159 = vmatprep.subr.bf16.mxu1 %v5550_v50 }
 0x41f   : > { %2119 = vmatpush1.bf16.msra.mxu0 %v5553_v43  ;;  %2160 = vmatpush1.bf16.msra.mxu1 %v5556_v44 }
 0x420   : > { %2120 = vmatprep.subr.bf16.mxu0 %v5559_v6  ;;  %2161 = vmatprep.subr.bf16.mxu1 %v5562_v63 }
 0x423   : > { %2121 = vmatpush1.bf16.msra.mxu0 %v5565_v58  ;;  %2162 = vmatpush1.bf16.msra.mxu1 %v5568_v4  ;;  %v5586_v4 = vld [vmem:[#allocation7 + $0x4c] ss:$16 sps:$4 sm:$0xff]  }
 0x424   : > { %2122 = vmatprep.subr.bf16.mxu0 %v5571_v56  ;;  %2163 = vmatprep.subr.bf16.mxu1 %v5574_v16  ;;  %7011 = vst [vmem:[#allocation35_spill] sm:$0xff] %v5586_v4  ;;  %v5589_v56 = vld [vmem:[#allocation7 + $0x40] ss:$16 sps:$4 sm:$0xff]   ;;  %v5592_v16 = vld [vmem:[#allocation7 + $0x48] ss:$16 sps:$4 sm:$0xff]  }
 0x425   : > { %7012 = vst [vmem:[#allocation36_spill] sm:$0xff] %v5589_v56  ;;  %7013 = vst [vmem:[#allocation37_spill] sm:$0xff] %v5592_v16 }
 0x427   : > { %2123 = vmatpush1.bf16.msra.mxu0 %v5577_v29  ;;  %2164 = vmatpush1.bf16.msra.mxu1 %v5580_v61  ;;  %v5595_v29 = vld [vmem:[#allocation7 + $0x24] ss:$16 sps:$4 sm:$0xff]   ;;  %v5598_v61 = vld [vmem:[#allocation7 + $0x2c] ss:$16 sps:$4 sm:$0xff]  }
 0x428   : > { %2124 = vmatprep.subr.bf16.mxu0 %v5583_v0  ;;  %2165 = vmatprep.subr.bf16.mxu1 %v5586_v4  ;;  %7014 = vst [vmem:[#allocation38_spill] sm:$0xff] %v5595_v29  ;;  %7015 = vst [vmem:[#allocation40_spill] sm:$0xff] %v5598_v61  ;;  %v5601_v0 = vld [vmem:[#allocation7 + $0x20] ss:$16 sps:$4 sm:$0xff]   ;;  %v5604_v4 = vld [vmem:[#allocation7 + $0x28] ss:$16 sps:$4 sm:$0xff]  }
 0x429   : > { %7016 = vst [vmem:[#allocation52_spill] sm:$0xff] %v5601_v0  ;;  %7017 = vst [vmem:[#allocation56_spill] sm:$0xff] %v5604_v4 }
 0x42b   : > { %2125 = vmatpush1.bf16.msra.mxu0 %v5589_v56  ;;  %2166 = vmatpush1.bf16.msra.mxu1 %v5592_v16  ;;  %v5607_v56 = vld [vmem:[#allocation7 + $0x4] ss:$16 sps:$4 sm:$0xff]   ;;  %v5610_v16 = vld [vmem:[#allocation7 + $0xc] ss:$16 sps:$4 sm:$0xff]  }
 0x42c   : > { %2126 = vmatprep.subr.bf16.mxu0 %v5595_v29  ;;  %2167 = vmatprep.subr.bf16.mxu1 %v5598_v61  ;;  %7018 = vst [vmem:[#allocation57_spill] sm:$0xff] %v5607_v56  ;;  %7019 = vst [vmem:[#allocation41_spill] sm:$0xff] %v5610_v16  ;;  %v5613_v29 = vld [vmem:[#allocation7] ss:$16 sps:$4 sm:$0xff]   ;;  %v5616_v61 = vld [vmem:[#allocation7 + $0x8] ss:$16 sps:$4 sm:$0xff]  }
 0x42d   : > { %7020 = vst [vmem:[#allocation42_spill] sm:$0xff] %v5613_v29  ;;  %7021 = vst [vmem:[#allocation43_spill] sm:$0xff] %v5616_v61 }
 0x42f   : > { %2127 = vmatpush1.bf16.msra.mxu0 %v5601_v0  ;;  %2168 = vmatpush1.bf16.msra.mxu1 %v5604_v4  ;;  %v5619_v0 = vld [vmem:[#allocation8 + $0xe4] ss:$16 sps:$4 sm:$0xff]   ;;  %v5622_v4 = vld [vmem:[#allocation8 + $0xec] ss:$16 sps:$4 sm:$0xff]  }
 0x430   : > { %2128 = vmatprep.subr.bf16.mxu0 %v5607_v56  ;;  %2169 = vmatprep.subr.bf16.mxu1 %v5610_v16  ;;  %7022 = vst [vmem:[#allocation44_spill] sm:$0xff] %v5619_v0  ;;  %7023 = vst [vmem:[#allocation45_spill] sm:$0xff] %v5622_v4 }
 0x433   : > { %2129 = vmatpush1.bf16.msra.mxu0 %v5613_v29  ;;  %2170 = vmatpush1.bf16.msra.mxu1 %v5616_v61 }
 0x434   : > { %2196 = vmatprep.subr.bf16.mxu0 %v5619_v0  ;;  %2237 = vmatprep.subr.bf16.mxu1 %v5622_v4 }
 0x496   : > { %v1862_v56 = vpop.f32.mrf.mxu0  ;;  %v1903_v58 = vpop.f32.mrf.mxu1 }
 0x498   : > { %v1864_v63 = vpop.f32.mrf.mxu0  ;;  %v1905_v16 = vpop.f32.mrf.mxu1 }
 0x49a   : > { %v1866_v6 = vpop.f32.mrf.mxu0  ;;  %v1907_v44 = vpop.f32.mrf.mxu1 }
 0x49c   : > { %v1867_v43 = vpop.f32.mrf.mxu0  ;;  %v1908_v29 = vpop.f32.mrf.mxu1 }
 0x4b6   : > { %v1944_v50 = vpop.f32.mrf.mxu0  ;;  %v1985_v42 = vpop.f32.mrf.mxu1 }
 0x4b7   : > { %v1945_v41 = vadd.f32 %v1944_v50, %v1862_v56  ;;  %v1986_v61 = vadd.f32 %v1985_v42, %v1903_v58 }
 0x4b8   : > { %v1946_v31 = vpop.f32.mrf.mxu0  ;;  %v1987_v46 = vpop.f32.mrf.mxu1 }
 0x4b9   : > { %v1992_v0 = vadd.f32 %v1945_v41, %v5221_v34  ;;  %v1947_v35 = vadd.f32 %v1946_v31, %v1864_v63  ;;  %v1988_v40 = vadd.f32 %v1987_v46, %v1905_v16  ;;  %v1994_v36 = vadd.f32 %v1986_v61, %v5231_v21 }
 0x4ba   : > { %v1948_v33 = vpop.f32.mrf.mxu0  ;;  %v1989_v4 = vpop.f32.mrf.mxu1 }
 0x4bb   : > { %4142 = vtanh.f32 %v1992_v0  ;;  %v1993_v6 = vadd.f32 %v1947_v35, %v5226_v19 }
 0x4bc   : > { %v1949_v44 = vpop.f32.mrf.mxu0  ;;  %v1990_v43 = vpop.f32.mrf.mxu1 }
 0x4bd   : > { %4144 = vtanh.f32 %v1993_v6 }
 0x4be   : > { %4146 = vtanh.f32 %v1994_v36 }
 0x4c8   : > { %v4143_v29 = vpop.eup %4142 }
 0x4c9   : > { %v2000_v50 = vmul.f32 0.5, %v4143_v29 }
 0x4ca   : > { %v4145_v42 = vpop.eup %4144 }
 0x4cb   : > { %v2001_v58 = vadd.f32 0.5, %v2000_v50  ;;  %v2002_v56 = vmul.f32 0.5, %v4145_v42  ;;  %v4147_v37 = vpop.eup %4146 }
 0x4cd   : > { %v2003_v41 = vadd.f32 0.5, %v2002_v56  ;;  %v2007_v31 = vmul.f32 %v4147_v37, %v2001_v58 }
 0x4cf   : > { %v2006_v33 = vmul.f32 %v2003_v41, %v5411_v39 }
 0x4d1   : > { %v5629_v46 = vadd.f32 %v2007_v31, %v2006_v33 }
 0x4d6   : > { %v2046_v0 = vpop.f32.mrf.mxu0  ;;  %v2087_v63 = vpop.f32.mrf.mxu1 }
 0x4d7   : > { %v2094_v35 = vadd.f32 %v2046_v0, %v6970_v47  ;;  %v2096_v44 = vadd.f32 %v2087_v63, %v6912_v20 }
 0x4d8   : > { %v2048_v4 = vpop.f32.mrf.mxu0  ;;  %v2089_v16 = vpop.f32.mrf.mxu1 }
 0x4d9   : > { %4148 = vtanh.f32 %v2094_v35  ;;  %v2095_v36 = vadd.f32 %v2048_v4, %v6911_v53  ;;  %v2097_v39 = vadd.f32 %v2089_v16, %v5037_v60 }
 0x4da   : > { %v2050_v61 = vpop.f32.mrf.mxu0  ;;  %v2091_v6 = vpop.f32.mrf.mxu1 }
 0x4db   : > { %4150 = vtanh.f32 %v2095_v36 }
 0x4dc   : > { %v2051_v43 = vpop.f32.mrf.mxu0  ;;  %v2092_v37 = vpop.f32.mrf.mxu1  ;;  %4152 = vtanh.f32 %v2096_v44  ;;  %v1995_v44 = vadd.f32 %v1988_v40, %v5249_v10  ;;  %v5658_v40 = vld [vmem:[#allocation8 + $0xc0] ss:$16 sps:$4 sm:$0xff]  }
 0x4dd   : > { %4154 = vtanh.f32 %v2097_v39  ;;  %v5644_v43 = vld [vmem:[#allocation8 + $0xe0] ss:$16 sps:$4 sm:$0xff]   ;;  %v5650_v37 = vld [vmem:[#allocation8 + $0xc4] ss:$16 sps:$4 sm:$0xff]   ;;  %v5653_v39 = vld [vmem:[#allocation8 + $0xcc] ss:$16 sps:$4 sm:$0xff]  }
 0x4e6   : > { %v4149_v29 = vpop.eup %4148 }
 0x4e7   : > { %v2102_v50 = vmul.f32 0.5, %v4149_v29  ;;  %v5661_v29 = vld [vmem:[#allocation8 + $0xc8] ss:$16 sps:$4 sm:$0xff]  }
 0x4e8   : > { %v4151_v42 = vpop.eup %4150 }
 0x4e9   : > { %v2103_v58 = vadd.f32 0.5, %v2102_v50  ;;  %v2104_v56 = vmul.f32 0.5, %v4151_v42  ;;  %v4153_v31 = vpop.eup %4152  ;;  %v5664_v50 = vld [vmem:[#allocation8 + $0xa4] ss:$16 sps:$4 sm:$0xff]   ;;  %v5667_v42 = vld [vmem:[#allocation8 + $0xac] ss:$16 sps:$4 sm:$0xff]  }
 0x4ea   : > { %v4155_v63 = vpop.eup %4154 }
 0x4eb   : > { %v2105_v41 = vadd.f32 0.5, %v2104_v56  ;;  %v2109_v0 = vmul.f32 %v4153_v31, %v2103_v58  ;;  %v2106_v4 = vmul.f32 0.5, %v4155_v63  ;;  %v5670_v58 = vld [vmem:[#allocation8 + $0xa0] ss:$16 sps:$4 sm:$0xff]   ;;  %v5673_v56 = vld [vmem:[#allocation8 + $0xa8] ss:$16 sps:$4 sm:$0xff]  }
 0x4ec   : > { %v5680_v31 = vld [vmem:[#allocation8 + $0x8c] ss:$16 sps:$4 sm:$0xff]   ;;  %v5689_v63 = vld [vmem:[#allocation8 + $0x64] ss:$16 sps:$4 sm:$0xff]  }
 0x4ed   : > { %v2108_v33 = vmul.f32 %v2105_v41, %v5418_v48  ;;  %v2107_v36 = vadd.f32 0.5, %v2106_v4  ;;  %v5647_v48 = vld [vmem:[#allocation8 + $0xe8] ss:$16 sps:$4 sm:$0xff]   ;;  %v5677_v41 = vld [vmem:[#allocation8 + $0x84] ss:$16 sps:$4 sm:$0xff]   ;;  %7024 = vst [vmem:[#allocation46_spill] sm:$0xff] %v5680_v31 }
 0x4ee   : > { %7027 = vst [vmem:[#allocation49_spill] sm:$0xff] %v5689_v63  ;;  %v5692_v4 = vld [vmem:[#allocation8 + $0x6c] ss:$16 sps:$4 sm:$0xff]  }
 0x4ef   : > { %v5636_v35 = vadd.f32 %v2109_v0, %v2108_v33  ;;  %v5683_v33 = vld [vmem:[#allocation8 + $0x80] ss:$16 sps:$4 sm:$0xff]   ;;  %v5686_v0 = vld [vmem:[#allocation8 + $0x88] ss:$16 sps:$4 sm:$0xff]   ;;  %7028 = vst [vmem:[#allocation50_spill] sm:$0xff] %v5692_v4 }
 0x4f0   : > { %7025 = vst [vmem:[#allocation47_spill] sm:$0xff] %v5683_v33  ;;  %7026 = vst [vmem:[#allocation48_spill] sm:$0xff] %v5686_v0 }
 0x4f1   : > { %4156 = vtanh.f32 %v5636_v35 }
 0x4f2   : > { %4158 = vtanh.f32 %v1995_v44  ;;  %v5701_v44 = vld [vmem:[#allocation8 + $0x44] ss:$16 sps:$4 sm:$0xff]  }
 0x4f3   : > { %4160 = vtanh.f32 %v5629_v46  ;;  %7031 = vst [vmem:[#allocation54_spill] sm:$0xff] %v5701_v44 }
 0x4fe   : > { %v4157_v61 = vpop.eup %4156 }
 0x4ff   : > { %v2112_v16 = vmul.f32 %v4157_v61, %v2107_v36  ;;  %v4159_v36 = vpop.eup %4158  ;;  %v5695_v61 = vld [vmem:[#allocation8 + $0x60] ss:$16 sps:$4 sm:$0xff]  }
 0x500   : > { %7029 = vst [vmem:[#allocation51_spill] sm:$0xff] %v5695_v61 }
 0x501   : > { %v5639_v6 = vpack.c.bf16 %v2112_v16, %v2112_v16  ;;  %v5698_v16 = vld [vmem:[#allocation8 + $0x68] ss:$16 sps:$4 sm:$0xff]  }
 0x502   : > { %7030 = vst [vmem:[#allocation53_spill] sm:$0xff] %v5698_v16 }
 0x503   : > { %2147 = vmatmul.mubr.bf16.vlgmr.msra.gmra.mxu0 %v5639_v6  ;;  %2188 = vmatmul.mubr.bf16.vlgmr.msra.gmra.mxu1 %v5639_v6 }
 0x504   : > { %2197 = vmatpush1.bf16.msra.mxu0 %v5644_v43  ;;  %2238 = vmatpush1.bf16.msra.mxu1 %v5647_v48 }
 0x505   : > { %2198 = vmatprep.subr.bf16.mxu0 %v5650_v37  ;;  %2239 = vmatprep.subr.bf16.mxu1 %v5653_v39 }
 0x506   : > { %2228 = vmatprep.mubr.bf16.mxu0 %v6868_v57  ;;  %2269 = vmatprep.mubr.bf16.mxu1 %v6868_v57 }
 0x508   : > { %2199 = vmatpush1.bf16.msra.mxu0 %v5658_v40  ;;  %2240 = vmatpush1.bf16.msra.mxu1 %v5661_v29 }
 0x509   : > { %2200 = vmatprep.subr.bf16.mxu0 %v5664_v50  ;;  %2241 = vmatprep.subr.bf16.mxu1 %v5667_v42 }
 0x50c   : > { %2201 = vmatpush1.bf16.msra.mxu0 %v5670_v58  ;;  %2242 = vmatpush1.bf16.msra.mxu1 %v5673_v56 }
 0x50d   : > { %2202 = vmatprep.subr.bf16.mxu0 %v5677_v41  ;;  %2243 = vmatprep.subr.bf16.mxu1 %v5680_v31 }
 0x510   : > { %2203 = vmatpush1.bf16.msra.mxu0 %v5683_v33  ;;  %2244 = vmatpush1.bf16.msra.mxu1 %v5686_v0  ;;  %v5704_v0 = vld [vmem:[#allocation8 + $0x4c] ss:$16 sps:$4 sm:$0xff]   ;;  %v5707_v33 = vld [vmem:[#allocation8 + $0x40] ss:$16 sps:$4 sm:$0xff]  }
 0x511   : > { %2204 = vmatprep.subr.bf16.mxu0 %v5689_v63  ;;  %2245 = vmatprep.subr.bf16.mxu1 %v5692_v4  ;;  %7032 = vst [vmem:[#allocation55_spill] sm:$0xff] %v5704_v0  ;;  %v2004_v63 = vmul.f32 0.5, %v4159_v36  ;;  %7033 = vst [vmem:[#allocation58_spill] sm:$0xff] %v5707_v33  ;;  %v5710_v4 = vld [vmem:[#allocation8 + $0x48] ss:$16 sps:$4 sm:$0xff]  }
 0x512   : > { %7034 = vst [vmem:[#allocation59_spill] sm:$0xff] %v5710_v4  ;;  %v5722_v36 = vld [vmem:[#allocation8 + $0x28] ss:$16 sps:$4 sm:$0xff]  }
 0x513   : > { %v2005_v31 = vadd.f32 0.5, %v2004_v63  ;;  %v5736_v63 = vld [vmem:[#allocation8 + $0x8] ss:$16 sps:$4 sm:$0xff]  }
 0x514   : > { %2205 = vmatpush1.bf16.msra.mxu0 %v5695_v61  ;;  %2246 = vmatpush1.bf16.msra.mxu1 %v5698_v16  ;;  %v5713_v61 = vld [vmem:[#allocation8 + $0x24] ss:$16 sps:$4 sm:$0xff]   ;;  %v5716_v16 = vld [vmem:[#allocation8 + $0x2c] ss:$16 sps:$4 sm:$0xff]  }
 0x515   : > { %2206 = vmatprep.subr.bf16.mxu0 %v5701_v44  ;;  %2247 = vmatprep.subr.bf16.mxu1 %v5704_v0  ;;  %7035 = vst [vmem:[#allocation60_spill] sm:$0xff] %v5713_v61  ;;  %7036 = vst [vmem:[#allocation61_spill] sm:$0xff] %v5716_v16  ;;  %v4161_v44 = vpop.eup %4160  ;;  %v5719_v0 = vld [vmem:[#allocation8 + $0x20] ss:$16 sps:$4 sm:$0xff]  }
 0x518   : > { %2207 = vmatpush1.bf16.msra.mxu0 %v5707_v33  ;;  %2248 = vmatpush1.bf16.msra.mxu1 %v5710_v4  ;;  %v5725_v33 = vmul.f32 %v4161_v44, %v2005_v31  ;;  %v5727_v4 = vld [vmem:[#allocation8 + $0x4] ss:$16 sps:$4 sm:$0xff]   ;;  %v7060_v44 = vld [vmem:[#allocation36_spill] sm:$0xff] }
 0x519   : > { %2208 = vmatprep.subr.bf16.mxu0 %v5713_v61  ;;  %2249 = vmatprep.subr.bf16.mxu1 %v5716_v16  ;;  %v5730_v61 = vld [vmem:[#allocation8 + $0xc] ss:$16 sps:$4 sm:$0xff]   ;;  %v5733_v16 = vld [vmem:[#allocation8] ss:$16 sps:$4 sm:$0xff]  }
 0x51a   : > { %7037 = vst [vmem:[#allocation62_spill] sm:$0xff] %v5725_v33  ;;  %v2011_v31 = vpack.c.bf16 %v5725_v33, %v5725_v33  ;;  %v7062_v33 = vld [vmem:[#allocation38_spill] sm:$0xff] }
 0x51c   : > { %2209 = vmatpush1.bf16.msra.mxu0 %v5719_v0  ;;  %2250 = vmatpush1.bf16.msra.mxu1 %v5722_v36 }
 0x51d   : > { %2210 = vmatprep.subr.bf16.mxu0 %v5727_v4  ;;  %2251 = vmatprep.subr.bf16.mxu1 %v5730_v61 }
 0x520   : > { %2211 = vmatpush1.bf16.msra.mxu0 %v5733_v16  ;;  %2252 = vmatpush1.bf16.msra.mxu1 %v5736_v63 }
 0x521   : > { %2298 = vmatprep.subr.bf16.mxu0 %v5293_v59  ;;  %2339 = vmatprep.subr.bf16.mxu1 %v6975_v13  ;;  %v7039_v59 = vld [vmem:[#allocation15_spill] sm:$0xff]  ;;  %v7044_v13 = vld [vmem:[#allocation20_spill] sm:$0xff] }
 0x523   : > { %2229 = vmatmul.mubr.bf16.vlgmr.msra.gmra.mxu0 %v2011_v31  ;;  %2270 = vmatmul.mubr.bf16.vlgmr.msra.gmra.mxu1 %v2011_v31  ;;  %v7061_v31 = vld [vmem:[#allocation37_spill] sm:$0xff] }
 0x524   : > { %2299 = vmatpush1.bf16.msra.mxu0 %v6976_v8  ;;  %2340 = vmatpush1.bf16.msra.mxu1 %v6977_v1  ;;  %v7045_v8 = vld [vmem:[#allocation21_spill] sm:$0xff]  ;;  %v7046_v1 = vld [vmem:[#allocation22_spill] sm:$0xff] }
 0x525   : > { %2300 = vmatprep.subr.bf16.mxu0 %v6978_v2  ;;  %2341 = vmatprep.subr.bf16.mxu1 %v6979_v11  ;;  %v7047_v2 = vld [vmem:[#allocation23_spill] sm:$0xff]  ;;  %v7048_v11 = vld [vmem:[#allocation24_spill] sm:$0xff] }
 0x526   : > { %2330 = vmatprep.mubr.bf16.mxu0 %v6868_v57  ;;  %2371 = vmatprep.mubr.bf16.mxu1 %v6868_v57 }
 0x528   : > { %2301 = vmatpush1.bf16.msra.mxu0 %v5313_v28  ;;  %2342 = vmatpush1.bf16.msra.mxu1 %v6980_v62  ;;  %v7043_v28 = vld [vmem:[#allocation19_spill] sm:$0xff]  ;;  %v7049_v62 = vld [vmem:[#allocation25_spill] sm:$0xff] }
 0x529   : > { %2302 = vmatprep.subr.bf16.mxu0 %v6981_v55  ;;  %2343 = vmatprep.subr.bf16.mxu1 %v5322_v12  ;;  %v7038_v12 = vld [vmem:[#allocation14_spill] sm:$0xff] }
 0x52a   : > { %v7050_v55 = vld [vmem:[#allocation26_spill] sm:$0xff] }
 0x52c   : > { %2303 = vmatpush1.bf16.msra.mxu0 %v6982_v18  ;;  %2344 = vmatpush1.bf16.msra.mxu1 %v5476_v9  ;;  %v7051_v18 = vld [vmem:[#allocation27_spill] sm:$0xff] }
 0x52d   : > { %2304 = vmatprep.subr.bf16.mxu0 %v5329_v23  ;;  %2345 = vmatprep.subr.bf16.mxu1 %v5480_v30  ;;  %v7040_v23 = vld [vmem:[#allocation16_spill] sm:$0xff] }
 0x530   : > { %2305 = vmatpush1.bf16.msra.mxu0 %v5333_v25  ;;  %2346 = vmatpush1.bf16.msra.mxu1 %v5484_v22  ;;  %v7041_v25 = vld [vmem:[#allocation17_spill] sm:$0xff] }
 0x531   : > { %2306 = vmatprep.subr.bf16.mxu0 %v5337_v27  ;;  %2347 = vmatprep.subr.bf16.mxu1 %v5488_v17  ;;  %v7042_v27 = vld [vmem:[#allocation18_spill] sm:$0xff] }
 0x534   : > { %2307 = vmatpush1.bf16.msra.mxu0 %v6983_v15  ;;  %2348 = vmatpush1.bf16.msra.mxu1 %v5492_v5  ;;  %v7052_v15 = vld [vmem:[#allocation28_spill] sm:$0xff] }
 0x535   : > { %2308 = vmatprep.subr.bf16.mxu0 %v6984_v26  ;;  %2349 = vmatprep.subr.bf16.mxu1 %v5496_v32  ;;  %v7053_v26 = vld [vmem:[#allocation29_spill] sm:$0xff] }
 0x538   : > { %2309 = vmatpush1.bf16.msra.mxu0 %v6985_v3  ;;  %2350 = vmatpush1.bf16.msra.mxu1 %v5500_v24  ;;  %v7054_v3 = vld [vmem:[#allocation30_spill] sm:$0xff] }
 0x539   : > { %2310 = vmatprep.subr.bf16.mxu0 %v6986_v54  ;;  %2351 = vmatprep.subr.bf16.mxu1 %v5504_v49  ;;  %v7055_v54 = vld [vmem:[#allocation31_spill] sm:$0xff] }
 0x53c   : > { %2311 = vmatpush1.bf16.msra.mxu0 %v6987_v14  ;;  %2352 = vmatpush1.bf16.msra.mxu1 %v5508_v7  ;;  %v7056_v14 = vld [vmem:[#allocation32_spill] sm:$0xff] }
 0x53d   : > { %2312 = vmatprep.subr.bf16.mxu0 %v6988_v38  ;;  %2353 = vmatprep.subr.bf16.mxu1 %v5512_v51  ;;  %v7057_v38 = vld [vmem:[#allocation33_spill] sm:$0xff] }
 0x540   : > { %2313 = vmatpush1.bf16.msra.mxu0 %v6989_v52  ;;  %2354 = vmatpush1.bf16.msra.mxu1 %v5516_v45  ;;  %v7058_v52 = vld [vmem:[#allocation34_spill] sm:$0xff] }
 0x541   : > { %2400 = vmatprep.subr.bf16.mxu0 %v7038_v12  ;;  %2441 = vmatprep.subr.bf16.mxu1 %v7039_v59 }
 0x543   : > { %2331 = vmatmul.mubr.bf16.vlgmr.msra.gmra.mxu0 %v5639_v6  ;;  %2372 = vmatmul.mubr.bf16.vlgmr.msra.gmra.mxu1 %v5639_v6  ;;  %v7059_v6 = vld [vmem:[#allocation35_spill] sm:$0xff] }
 0x544   : > { %2401 = vmatpush1.bf16.msra.mxu0 %v7040_v23  ;;  %2442 = vmatpush1.bf16.msra.mxu1 %v7041_v25 }
 0x545   : > { %2402 = vmatprep.subr.bf16.mxu0 %v7042_v27  ;;  %2443 = vmatprep.subr.bf16.mxu1 %v7043_v28 }
 0x546   : > { %2432 = vmatprep.mubr.bf16.mxu0 %v6868_v57  ;;  %2473 = vmatprep.mubr.bf16.mxu1 %v6868_v57 }
 0x548   : > { %2403 = vmatpush1.bf16.msra.mxu0 %v7044_v13  ;;  %2444 = vmatpush1.bf16.msra.mxu1 %v7045_v8 }
 0x549   : > { %2404 = vmatprep.subr.bf16.mxu0 %v7046_v1  ;;  %2445 = vmatprep.subr.bf16.mxu1 %v7047_v2 }
 0x54c   : > { %2405 = vmatpush1.bf16.msra.mxu0 %v7048_v11  ;;  %2446 = vmatpush1.bf16.msra.mxu1 %v7049_v62 }
 0x54d   : > { %2406 = vmatprep.subr.bf16.mxu0 %v7050_v55  ;;  %2447 = vmatprep.subr.bf16.mxu1 %v7051_v18 }
 0x550   : > { %2407 = vmatpush1.bf16.msra.mxu0 %v7052_v15  ;;  %2448 = vmatpush1.bf16.msra.mxu1 %v7053_v26  ;;  %v7063_v15 = vld [vmem:[#allocation40_spill] sm:$0xff] }
 0x551   : > { %2408 = vmatprep.subr.bf16.mxu0 %v7054_v3  ;;  %2449 = vmatprep.subr.bf16.mxu1 %v7055_v54  ;;  %v7064_v26 = vld [vmem:[#allocation52_spill] sm:$0xff]  ;;  %v7066_v54 = vld [vmem:[#allocation57_spill] sm:$0xff] }
 0x552   : > { %v7065_v3 = vld [vmem:[#allocation56_spill] sm:$0xff] }
 0x554   : > { %2409 = vmatpush1.bf16.msra.mxu0 %v7056_v14  ;;  %2450 = vmatpush1.bf16.msra.mxu1 %v7057_v38  ;;  %v7067_v14 = vld [vmem:[#allocation41_spill] sm:$0xff]  ;;  %v7068_v38 = vld [vmem:[#allocation42_spill] sm:$0xff] }
 0x555   : > { %2410 = vmatprep.subr.bf16.mxu0 %v7058_v52  ;;  %2451 = vmatprep.subr.bf16.mxu1 %v7059_v6  ;;  %v7069_v52 = vld [vmem:[#allocation43_spill] sm:$0xff]  ;;  %v7070_v6 = vld [vmem:[#allocation44_spill] sm:$0xff] }
 0x558   : > { %2411 = vmatpush1.bf16.msra.mxu0 %v7060_v44  ;;  %2452 = vmatpush1.bf16.msra.mxu1 %v7061_v31  ;;  %v7071_v44 = vld [vmem:[#allocation45_spill] sm:$0xff] }
 0x559   : > { %2412 = vmatprep.subr.bf16.mxu0 %v7062_v33  ;;  %2453 = vmatprep.subr.bf16.mxu1 %v7063_v15 }
 0x55c   : > { %2413 = vmatpush1.bf16.msra.mxu0 %v7064_v26  ;;  %2454 = vmatpush1.bf16.msra.mxu1 %v7065_v3 }
 0x55d   : > { %2414 = vmatprep.subr.bf16.mxu0 %v7066_v54  ;;  %2455 = vmatprep.subr.bf16.mxu1 %v7067_v14 }
 0x560   : > { %2415 = vmatpush1.bf16.msra.mxu0 %v7068_v38  ;;  %2456 = vmatpush1.bf16.msra.mxu1 %v7069_v52 }
 0x561   : > { %2482 = vmatprep.subr.bf16.mxu0 %v7070_v6  ;;  %2523 = vmatprep.subr.bf16.mxu1 %v7071_v44 }
 0x5c3   : > { %v2148_v31 = vpop.f32.mrf.mxu0  ;;  %v2189_v33 = vpop.f32.mrf.mxu1 }
 0x5c5   : > { %v2150_v18 = vpop.f32.mrf.mxu0  ;;  %v2191_v15 = vpop.f32.mrf.mxu1 }
 0x5c7   : > { %v2152_v55 = vpop.f32.mrf.mxu0  ;;  %v2193_v26 = vpop.f32.mrf.mxu1 }
 0x5c9   : > { %v2153_v62 = vpop.f32.mrf.mxu0  ;;  %v2194_v3 = vpop.f32.mrf.mxu1 }
 0x5e3   : > { %v2230_v11 = vpop.f32.mrf.mxu0  ;;  %v2271_v54 = vpop.f32.mrf.mxu1 }
 0x5e4   : > { %v2231_v2 = vadd.f32 %v2230_v11, %v2148_v31  ;;  %v2272_v14 = vadd.f32 %v2271_v54, %v2189_v33 }
 0x5e5   : > { %v2232_v1 = vpop.f32.mrf.mxu0  ;;  %v2273_v38 = vpop.f32.mrf.mxu1 }
 0x5e6   : > { %v2278_v52 = vadd.f32 %v2231_v2, %v5221_v34  ;;  %v2233_v8 = vadd.f32 %v2232_v1, %v2150_v18  ;;  %v2274_v6 = vadd.f32 %v2273_v38, %v2191_v15  ;;  %v2280_v28 = vadd.f32 %v2272_v14, %v5231_v21 }
 0x5e7   : > { %v2234_v13 = vpop.f32.mrf.mxu0  ;;  %v2275_v44 = vpop.f32.mrf.mxu1 }
 0x5e8   : > { %4162 = vtanh.f32 %v2278_v52  ;;  %v2279_v55 = vadd.f32 %v2233_v8, %v5226_v19 }
 0x5e9   : > { %v2235_v26 = vpop.f32.mrf.mxu0  ;;  %v2276_v62 = vpop.f32.mrf.mxu1 }
 0x5ea   : > { %4164 = vtanh.f32 %v2279_v55 }
 0x5eb   : > { %4166 = vtanh.f32 %v2280_v28 }
 0x5f5   : > { %v4163_v3 = vpop.eup %4162 }
 0x5f6   : > { %v2286_v11 = vmul.f32 0.5, %v4163_v3 }
 0x5f7   : > { %v4165_v33 = vpop.eup %4164 }
 0x5f8   : > { %v2287_v54 = vadd.f32 0.5, %v2286_v11  ;;  %v2288_v31 = vmul.f32 0.5, %v4165_v33  ;;  %v4167_v27 = vpop.eup %4166 }
 0x5fa   : > { %v2289_v2 = vadd.f32 0.5, %v2288_v31  ;;  %v2293_v1 = vmul.f32 %v4167_v27, %v2287_v54 }
 0x5fc   : > { %v2292_v13 = vmul.f32 %v2289_v2, %v5629_v46 }
 0x5fe   : > { %v5817_v18 = vadd.f32 %v2293_v1, %v2292_v13 }
 0x603   : > { %v2332_v15 = vpop.f32.mrf.mxu0  ;;  %v2373_v14 = vpop.f32.mrf.mxu1 }
 0x604   : > { %v2380_v8 = vadd.f32 %v2332_v15, %v6970_v47  ;;  %v2382_v26 = vadd.f32 %v2373_v14, %v6912_v20 }
 0x605   : > { %v2334_v38 = vpop.f32.mrf.mxu0  ;;  %v2375_v52 = vpop.f32.mrf.mxu1 }
 0x606   : > { %4168 = vtanh.f32 %v2380_v8  ;;  %v2381_v28 = vadd.f32 %v2334_v38, %v6911_v53  ;;  %v2383_v46 = vadd.f32 %v2375_v52, %v5037_v60 }
 0x607   : > { %v2336_v44 = vpop.f32.mrf.mxu0  ;;  %v2377_v55 = vpop.f32.mrf.mxu1 }
 0x608   : > { %4170 = vtanh.f32 %v2381_v28 }
 0x609   : > { %v2337_v62 = vpop.f32.mrf.mxu0  ;;  %v2378_v27 = vpop.f32.mrf.mxu1  ;;  %4172 = vtanh.f32 %v2382_v26  ;;  %v2281_v26 = vadd.f32 %v2274_v6, %v5249_v10  ;;  %v7073_v6 = vld [vmem:[#allocation47_spill] sm:$0xff] }
 0x60a   : > { %4174 = vtanh.f32 %v2383_v46  ;;  %v7074_v62 = vld [vmem:[#allocation48_spill] sm:$0xff]  ;;  %v7075_v27 = vld [vmem:[#allocation49_spill] sm:$0xff]  ;;  %v7076_v46 = vld [vmem:[#allocation50_spill] sm:$0xff] }
 0x613   : > { %v4169_v3 = vpop.eup %4168 }
 0x614   : > { %v2388_v11 = vmul.f32 0.5, %v4169_v3 }
 0x615   : > { %v4171_v33 = vpop.eup %4170 }
 0x616   : > { %v2389_v54 = vadd.f32 0.5, %v2388_v11  ;;  %v2390_v31 = vmul.f32 0.5, %v4171_v33  ;;  %v4173_v1 = vpop.eup %4172  ;;  %v7077_v11 = vld [vmem:[#allocation51_spill] sm:$0xff]  ;;  %v7078_v33 = vld [vmem:[#allocation53_spill] sm:$0xff] }
 0x617   : > { %v4175_v14 = vpop.eup %4174 }
 0x618   : > { %v2391_v2 = vadd.f32 0.5, %v2390_v31  ;;  %v2395_v15 = vmul.f32 %v4173_v1, %v2389_v54  ;;  %v2392_v38 = vmul.f32 0.5, %v4175_v14  ;;  %v7079_v54 = vld [vmem:[#allocation54_spill] sm:$0xff]  ;;  %v7080_v31 = vld [vmem:[#allocation55_spill] sm:$0xff]  ;;  %v7084_v14 = vld [vmem:[#allocation61_spill] sm:$0xff] }
 0x619   : > { %v7081_v1 = vld [vmem:[#allocation58_spill] sm:$0xff] }
 0x61a   : > { %v2394_v13 = vmul.f32 %v2391_v2, %v5636_v35  ;;  %v2393_v28 = vadd.f32 0.5, %v2392_v38  ;;  %v7072_v35 = vld [vmem:[#allocation46_spill] sm:$0xff] }
 0x61c   : > { %v5824_v8 = vadd.f32 %v2395_v15, %v2394_v13  ;;  %v7082_v13 = vld [vmem:[#allocation59_spill] sm:$0xff]  ;;  %v7083_v15 = vld [vmem:[#allocation60_spill] sm:$0xff] }
 0x61e   : > { %4176 = vtanh.f32 %v5824_v8 }
 0x61f   : > { %4178 = vtanh.f32 %v2281_v26  ;;  %v5869_v26 = vld [vmem:[#allocation5 + $0xe4] ss:$16 sps:$4 sm:$0xff]  }
 0x620   : > { %4180 = vtanh.f32 %v5817_v18 }
 0x62b   : > { %v4177_v44 = vpop.eup %4176 }
 0x62c   : > { %v2398_v52 = vmul.f32 %v4177_v44, %v2393_v28  ;;  %v4179_v3 = vpop.eup %4178 }
 0x62d   : > { %v2290_v2 = vmul.f32 0.5, %v4179_v3  ;;  %v4181_v38 = vpop.eup %4180  ;;  %v5872_v3 = vld [vmem:[#allocation5 + $0xec] ss:$16 sps:$4 sm:$0xff]  }
 0x62e   : > { %v5827_v55 = vpack.c.bf16 %v2398_v52, %v2398_v52  ;;  %7086 = vst [vmem:[#allocation15_spill] sm:$0xff] %v5872_v3 }
 0x62f   : > { %v2291_v28 = vadd.f32 0.5, %v2290_v2  ;;  %v5875_v2 = vld [vmem:[#allocation5 + $0xe0] ss:$16 sps:$4 sm:$0xff]  }
 0x630   : > { %2433 = vmatmul.mubr.bf16.vlgmr.msra.gmra.mxu0 %v5827_v55  ;;  %2474 = vmatmul.mubr.bf16.vlgmr.msra.gmra.mxu1 %v5827_v55  ;;  %7087 = vst [vmem:[#allocation16_spill] sm:$0xff] %v5875_v2 }
 0x631   : > { %2483 = vmatpush1.bf16.msra.mxu0 %v5644_v43  ;;  %2524 = vmatpush1.bf16.msra.mxu1 %v5647_v48  ;;  %v5861_v44 = vmul.f32 %v4181_v38, %v2291_v28  ;;  %v5878_v38 = vld [vmem:[#allocation5 + $0xe8] ss:$16 sps:$4 sm:$0xff]   ;;  %v5881_v28 = vld [vmem:[#allocation5 + $0xc4] ss:$16 sps:$4 sm:$0xff]  }
 0x632   : > { %2484 = vmatprep.subr.bf16.mxu0 %v5650_v37  ;;  %2525 = vmatprep.subr.bf16.mxu1 %v5653_v39  ;;  %7088 = vst [vmem:[#allocation17_spill] sm:$0xff] %v5878_v38  ;;  %7089 = vst [vmem:[#allocation46_spill] sm:$0xff] %v5881_v28 }
 0x633   : > { %2514 = vmatprep.mubr.bf16.mxu0 %v6868_v57  ;;  %2555 = vmatprep.mubr.bf16.mxu1 %v6868_v57  ;;  %7085 = vst [vmem:[#allocation14_spill] sm:$0xff] %v5861_v44  ;;  %v2297_v52 = vpack.c.bf16 %v5861_v44, %v5861_v44  ;;  %v5884_v44 = vld [vmem:[#allocation5 + $0xcc] ss:$16 sps:$4 sm:$0xff]  }
 0x634   : > { %7090 = vst [vmem:[#allocation47_spill] sm:$0xff] %v5884_v44 }
 0x635   : > { %2485 = vmatpush1.bf16.msra.mxu0 %v5658_v40  ;;  %2526 = vmatpush1.bf16.msra.mxu1 %v5661_v29 }
 0x636   : > { %2486 = vmatprep.subr.bf16.mxu0 %v5664_v50  ;;  %2527 = vmatprep.subr.bf16.mxu1 %v5667_v42 }
 0x639   : > { %2487 = vmatpush1.bf16.msra.mxu0 %v5670_v58  ;;  %2528 = vmatpush1.bf16.msra.mxu1 %v5673_v56 }
 0x63a   : > { %2488 = vmatprep.subr.bf16.mxu0 %v5677_v41  ;;  %2529 = vmatprep.subr.bf16.mxu1 %v7072_v35 }
 0x63d   : > { %2489 = vmatpush1.bf16.msra.mxu0 %v7073_v6  ;;  %2530 = vmatpush1.bf16.msra.mxu1 %v7074_v62 }
 0x63e   : > { %2490 = vmatprep.subr.bf16.mxu0 %v7075_v27  ;;  %2531 = vmatprep.subr.bf16.mxu1 %v7076_v46 }
 0x641   : > { %2491 = vmatpush1.bf16.msra.mxu0 %v7077_v11  ;;  %2532 = vmatpush1.bf16.msra.mxu1 %v7078_v33 }
 0x642   : > { %2492 = vmatprep.subr.bf16.mxu0 %v7079_v54  ;;  %2533 = vmatprep.subr.bf16.mxu1 %v7080_v31 }
 0x645   : > { %2493 = vmatpush1.bf16.msra.mxu0 %v7081_v1  ;;  %2534 = vmatpush1.bf16.msra.mxu1 %v7082_v13 }
 0x646   : > { %2494 = vmatprep.subr.bf16.mxu0 %v7083_v15  ;;  %2535 = vmatprep.subr.bf16.mxu1 %v7084_v14 }
 0x649   : > { %2495 = vmatpush1.bf16.msra.mxu0 %v5719_v0  ;;  %2536 = vmatpush1.bf16.msra.mxu1 %v5722_v36 }
 0x64a   : > { %2496 = vmatprep.subr.bf16.mxu0 %v5727_v4  ;;  %2537 = vmatprep.subr.bf16.mxu1 %v5730_v61 }
 0x64d   : > { %2497 = vmatpush1.bf16.msra.mxu0 %v5733_v16  ;;  %2538 = vmatpush1.bf16.msra.mxu1 %v5736_v63 }
 0x64e   : > { %2584 = vmatprep.subr.bf16.mxu0 %v5869_v26  ;;  %2625 = vmatprep.subr.bf16.mxu1 %v5872_v3  ;;  %v5905_v3 = vld [vmem:[#allocation5 + $0x84] ss:$16 sps:$4 sm:$0xff]  }
 0x64f   : > { %7095 = vst [vmem:[#allocation53_spill] sm:$0xff] %v5905_v3 }
 0x650   : > { %2515 = vmatmul.mubr.bf16.vlgmr.msra.gmra.mxu0 %v2297_v52  ;;  %2556 = vmatmul.mubr.bf16.vlgmr.msra.gmra.mxu1 %v2297_v52  ;;  %v5889_v52 = vld [vmem:[#allocation5 + $0xc0] ss:$16 sps:$4 sm:$0xff]  }
 0x651   : > { %2585 = vmatpush1.bf16.msra.mxu0 %v5875_v2  ;;  %2626 = vmatpush1.bf16.msra.mxu1 %v5878_v38  ;;  %v5892_v2 = vld [vmem:[#allocation5 + $0xc8] ss:$16 sps:$4 sm:$0xff]   ;;  %v5895_v38 = vld [vmem:[#allocation5 + $0xa4] ss:$16 sps:$4 sm:$0xff]  }
 0x652   : > { %2586 = vmatprep.subr.bf16.mxu0 %v5881_v28  ;;  %2627 = vmatprep.subr.bf16.mxu1 %v5884_v44  ;;  %7091 = vst [vmem:[#allocation48_spill] sm:$0xff] %v5892_v2  ;;  %7092 = vst [vmem:[#allocation49_spill] sm:$0xff] %v5895_v38  ;;  %v5898_v28 = vld [vmem:[#allocation5 + $0xac] ss:$16 sps:$4 sm:$0xff]   ;;  %v5901_v44 = vld [vmem:[#allocation5 + $0xa0] ss:$16 sps:$4 sm:$0xff]  }
 0x653   : > { %2616 = vmatprep.mubr.bf16.mxu0 %v6868_v57  ;;  %2657 = vmatprep.mubr.bf16.mxu1 %v6868_v57  ;;  %7093 = vst [vmem:[#allocation50_spill] sm:$0xff] %v5898_v28  ;;  %7094 = vst [vmem:[#allocation51_spill] sm:$0xff] %v5901_v44 }
 0x655   : > { %2587 = vmatpush1.bf16.msra.mxu0 %v5889_v52  ;;  %2628 = vmatpush1.bf16.msra.mxu1 %v5892_v2  ;;  %v5909_v2 = vld [vmem:[#allocation5 + $0x80] ss:$16 sps:$4 sm:$0xff]  }
 0x656   : > { %2588 = vmatprep.subr.bf16.mxu0 %v5895_v38  ;;  %2629 = vmatprep.subr.bf16.mxu1 %v5898_v28  ;;  %7096 = vst [vmem:[#allocation54_spill] sm:$0xff] %v5909_v2  ;;  %v5913_v38 = vld [vmem:[#allocation5 + $0x64] ss:$16 sps:$4 sm:$0xff]  }
 0x657   : > { %7097 = vst [vmem:[#allocation55_spill] sm:$0xff] %v5913_v38 }
 0x659   : > { %2589 = vmatpush1.bf16.msra.mxu0 %v5901_v44  ;;  %2630 = vmatpush1.bf16.msra.mxu1 %v5476_v9  ;;  %v5917_v44 = vld [vmem:[#allocation5 + $0x60] ss:$16 sps:$4 sm:$0xff]   ;;  %v5921_v9 = vld [vmem:[#allocation5 + $0x44] ss:$16 sps:$4 sm:$0xff]  }
 0x65a   : > { %2590 = vmatprep.subr.bf16.mxu0 %v5905_v3  ;;  %2631 = vmatprep.subr.bf16.mxu1 %v5480_v30  ;;  %7098 = vst [vmem:[#allocation58_spill] sm:$0xff] %v5917_v44  ;;  %7099 = vst [vmem:[#allocation59_spill] sm:$0xff] %v5921_v9  ;;  %v5925_v30 = vld [vmem:[#allocation5 + $0x40] ss:$16 sps:$4 sm:$0xff]  }
 0x65b   : > { %7100 = vst [vmem:[#allocation60_spill] sm:$0xff] %v5925_v30 }
 0x65d   : > { %2591 = vmatpush1.bf16.msra.mxu0 %v5909_v2  ;;  %2632 = vmatpush1.bf16.msra.mxu1 %v5484_v22  ;;  %v5929_v22 = vld [vmem:[#allocation5 + $0x24] ss:$16 sps:$4 sm:$0xff]  }
 0x65e   : > { %2592 = vmatprep.subr.bf16.mxu0 %v5913_v38  ;;  %2633 = vmatprep.subr.bf16.mxu1 %v5488_v17  ;;  %7101 = vst [vmem:[#allocation61_spill] sm:$0xff] %v5929_v22  ;;  %v5933_v17 = vld [vmem:[#allocation5 + $0x20] ss:$16 sps:$4 sm:$0xff]  }
 0x65f   : > { %7102 = vst [vmem:[#allocation63_spill] sm:$0xff] %v5933_v17 }
 0x661   : > { %2593 = vmatpush1.bf16.msra.mxu0 %v5917_v44  ;;  %2634 = vmatpush1.bf16.msra.mxu1 %v5492_v5  ;;  %v5937_v5 = vld [vmem:[#allocation5 + $0x4] ss:$16 sps:$4 sm:$0xff]  }
 0x662   : > { %2594 = vmatprep.subr.bf16.mxu0 %v5921_v9  ;;  %2635 = vmatprep.subr.bf16.mxu1 %v5496_v32  ;;  %7103 = vst [vmem:[#allocation64_spill] sm:$0xff] %v5937_v5  ;;  %v5941_v32 = vld [vmem:[#allocation5] ss:$16 sps:$4 sm:$0xff]  }
 0x663   : > { %7104 = vst [vmem:[#allocation65_spill] sm:$0xff] %v5941_v32 }
 0x665   : > { %2595 = vmatpush1.bf16.msra.mxu0 %v5925_v30  ;;  %2636 = vmatpush1.bf16.msra.mxu1 %v5500_v24  ;;  %v7105_v24 = vld [vmem:[#allocation18_spill] sm:$0xff] }
 0x666   : > { %2596 = vmatprep.subr.bf16.mxu0 %v5929_v22  ;;  %2637 = vmatprep.subr.bf16.mxu1 %v5504_v49  ;;  %v7106_v49 = vld [vmem:[#allocation19_spill] sm:$0xff] }
 0x669   : > { %2597 = vmatpush1.bf16.msra.mxu0 %v5933_v17  ;;  %2638 = vmatpush1.bf16.msra.mxu1 %v5508_v7  ;;  %v7107_v7 = vld [vmem:[#allocation20_spill] sm:$0xff] }
 0x66a   : > { %2598 = vmatprep.subr.bf16.mxu0 %v5937_v5  ;;  %2639 = vmatprep.subr.bf16.mxu1 %v5512_v51  ;;  %v7108_v51 = vld [vmem:[#allocation21_spill] sm:$0xff] }
 0x66d   : > { %2599 = vmatpush1.bf16.msra.mxu0 %v5941_v32  ;;  %2640 = vmatpush1.bf16.msra.mxu1 %v5516_v45  ;;  %v7109_v45 = vld [vmem:[#allocation22_spill] sm:$0xff] }
 0x66e   : > { %2686 = vmatprep.subr.bf16.mxu0 %v7038_v12  ;;  %2727 = vmatprep.subr.bf16.mxu1 %v7039_v59  ;;  %v7110_v12 = vld [vmem:[#allocation23_spill] sm:$0xff]  ;;  %v7111_v59 = vld [vmem:[#allocation24_spill] sm:$0xff]  ;;  %v7117_v32 = vld [vmem:[#allocation30_spill] sm:$0xff] }
 0x670   : > { %2617 = vmatmul.mubr.bf16.vlgmr.msra.gmra.mxu0 %v5827_v55  ;;  %2658 = vmatmul.mubr.bf16.vlgmr.msra.gmra.mxu1 %v5827_v55  ;;  %v7114_v55 = vld [vmem:[#allocation27_spill] sm:$0xff] }
 0x671   : > { %2687 = vmatpush1.bf16.msra.mxu0 %v7040_v23  ;;  %2728 = vmatpush1.bf16.msra.mxu1 %v7041_v25  ;;  %v7112_v23 = vld [vmem:[#allocation25_spill] sm:$0xff]  ;;  %v7113_v25 = vld [vmem:[#allocation26_spill] sm:$0xff] }
 0x672   : > { %2688 = vmatprep.subr.bf16.mxu0 %v7105_v24  ;;  %2729 = vmatprep.subr.bf16.mxu1 %v7106_v49  ;;  %v7115_v24 = vld [vmem:[#allocation28_spill] sm:$0xff]  ;;  %v7116_v49 = vld [vmem:[#allocation29_spill] sm:$0xff] }
 0x673   : > { %2718 = vmatprep.mubr.bf16.mxu0 %v6868_v57  ;;  %2759 = vmatprep.mubr.bf16.mxu1 %v6868_v57 }
 0x675   : > { %2689 = vmatpush1.bf16.msra.mxu0 %v7107_v7  ;;  %2730 = vmatpush1.bf16.msra.mxu1 %v7108_v51  ;;  %v7118_v7 = vld [vmem:[#allocation31_spill] sm:$0xff]  ;;  %v7119_v51 = vld [vmem:[#allocation32_spill] sm:$0xff] }
 0x676   : > { %2690 = vmatprep.subr.bf16.mxu0 %v7109_v45  ;;  %2731 = vmatprep.subr.bf16.mxu1 %v7110_v12  ;;  %v7120_v45 = vld [vmem:[#allocation33_spill] sm:$0xff]  ;;  %v7121_v12 = vld [vmem:[#allocation34_spill] sm:$0xff] }
 0x679   : > { %2691 = vmatpush1.bf16.msra.mxu0 %v7111_v59  ;;  %2732 = vmatpush1.bf16.msra.mxu1 %v7112_v23  ;;  %v7122_v59 = vld [vmem:[#allocation35_spill] sm:$0xff]  ;;  %v7123_v23 = vld [vmem:[#allocation36_spill] sm:$0xff] }
 0x67a   : > { %2692 = vmatprep.subr.bf16.mxu0 %v7113_v25  ;;  %2733 = vmatprep.subr.bf16.mxu1 %v7114_v55  ;;  %v7124_v25 = vld [vmem:[#allocation37_spill] sm:$0xff]  ;;  %v7125_v55 = vld [vmem:[#allocation38_spill] sm:$0xff] }
 0x67d   : > { %2693 = vmatpush1.bf16.msra.mxu0 %v7115_v24  ;;  %2734 = vmatpush1.bf16.msra.mxu1 %v7116_v49  ;;  %v7126_v24 = vld [vmem:[#allocation40_spill] sm:$0xff] }
 0x67e   : > { %2694 = vmatprep.subr.bf16.mxu0 %v7117_v32  ;;  %2735 = vmatprep.subr.bf16.mxu1 %v7118_v7  ;;  %v7127_v49 = vld [vmem:[#allocation52_spill] sm:$0xff]  ;;  %v7129_v7 = vld [vmem:[#allocation57_spill] sm:$0xff] }
 0x67f   : > { %v7128_v32 = vld [vmem:[#allocation56_spill] sm:$0xff] }
 0x681   : > { %2695 = vmatpush1.bf16.msra.mxu0 %v7119_v51  ;;  %2736 = vmatpush1.bf16.msra.mxu1 %v7120_v45  ;;  %v7130_v51 = vld [vmem:[#allocation41_spill] sm:$0xff]  ;;  %v7131_v45 = vld [vmem:[#allocation42_spill] sm:$0xff] }
 0x682   : > { %2696 = vmatprep.subr.bf16.mxu0 %v7121_v12  ;;  %2737 = vmatprep.subr.bf16.mxu1 %v7122_v59  ;;  %v7132_v12 = vld [vmem:[#allocation43_spill] sm:$0xff]  ;;  %v7133_v59 = vld [vmem:[#allocation44_spill] sm:$0xff] }
 0x685   : > { %2697 = vmatpush1.bf16.msra.mxu0 %v7123_v23  ;;  %2738 = vmatpush1.bf16.msra.mxu1 %v7124_v25  ;;  %v7134_v23 = vld [vmem:[#allocation45_spill] sm:$0xff] }
 0x686   : > { %2698 = vmatprep.subr.bf16.mxu0 %v7125_v55  ;;  %2739 = vmatprep.subr.bf16.mxu1 %v7126_v24 }
 0x689   : > { %2699 = vmatpush1.bf16.msra.mxu0 %v7127_v49  ;;  %2740 = vmatpush1.bf16.msra.mxu1 %v7128_v32 }
 0x68a   : > { %2700 = vmatprep.subr.bf16.mxu0 %v7129_v7  ;;  %2741 = vmatprep.subr.bf16.mxu1 %v7130_v51 }
 0x68d   : > { %2701 = vmatpush1.bf16.msra.mxu0 %v7131_v45  ;;  %2742 = vmatpush1.bf16.msra.mxu1 %v7132_v12 }
 0x68e   : > { %2768 = vmatprep.subr.bf16.mxu0 %v7133_v59  ;;  %2809 = vmatprep.subr.bf16.mxu1 %v7134_v23 }
 0x6f0   : > { %v2434_v25 = vpop.f32.mrf.mxu0  ;;  %v2475_v55 = vpop.f32.mrf.mxu1 }
 0x6f2   : > { %v2436_v5 = vpop.f32.mrf.mxu0  ;;  %v2477_v24 = vpop.f32.mrf.mxu1 }
 0x6f4   : > { %v2438_v17 = vpop.f32.mrf.mxu0  ;;  %v2479_v49 = vpop.f32.mrf.mxu1 }
 0x6f6   : > { %v2439_v22 = vpop.f32.mrf.mxu0  ;;  %v2480_v32 = vpop.f32.mrf.mxu1 }
 0x710   : > { %v2516_v30 = vpop.f32.mrf.mxu0  ;;  %v2557_v7 = vpop.f32.mrf.mxu1 }
 0x711   : > { %v2517_v9 = vadd.f32 %v2516_v30, %v2434_v25  ;;  %v2558_v51 = vadd.f32 %v2557_v7, %v2475_v55 }
 0x712   : > { %v2518_v44 = vpop.f32.mrf.mxu0  ;;  %v2559_v45 = vpop.f32.mrf.mxu1 }
 0x713   : > { %v2564_v12 = vadd.f32 %v2517_v9, %v5221_v34  ;;  %v2519_v38 = vadd.f32 %v2518_v44, %v2436_v5  ;;  %v2560_v59 = vadd.f32 %v2559_v45, %v2477_v24  ;;  %v2566_v3 = vadd.f32 %v2558_v51, %v5231_v21 }
 0x714   : > { %v2520_v2 = vpop.f32.mrf.mxu0  ;;  %v2561_v23 = vpop.f32.mrf.mxu1 }
 0x715   : > { %4182 = vtanh.f32 %v2564_v12  ;;  %v2565_v17 = vadd.f32 %v2519_v38, %v5226_v19 }
 0x716   : > { %v2521_v49 = vpop.f32.mrf.mxu0  ;;  %v2562_v22 = vpop.f32.mrf.mxu1 }
 0x717   : > { %4184 = vtanh.f32 %v2565_v17 }
 0x718   : > { %4186 = vtanh.f32 %v2566_v3 }
 0x722   : > { %v4183_v32 = vpop.eup %4182 }
 0x723   : > { %v2572_v30 = vmul.f32 0.5, %v4183_v32 }
 0x724   : > { %v4185_v25 = vpop.eup %4184 }
 0x725   : > { %v2573_v55 = vadd.f32 0.5, %v2572_v30  ;;  %v2574_v7 = vmul.f32 0.5, %v4185_v25  ;;  %v4187_v28 = vpop.eup %4186 }
 0x727   : > { %v2575_v9 = vadd.f32 0.5, %v2574_v7  ;;  %v2579_v44 = vmul.f32 %v4187_v28, %v2573_v55 }
 0x729   : > { %v2578_v2 = vmul.f32 %v2575_v9, %v5817_v18 }
 0x72b   : > { %v5987_v5 = vadd.f32 %v2579_v44, %v2578_v2 }
 0x730   : > { %v2618_v24 = vpop.f32.mrf.mxu0  ;;  %v2659_v51 = vpop.f32.mrf.mxu1 }
 0x731   : > { %v2666_v38 = vadd.f32 %v2618_v24, %v6970_v47  ;;  %v2668_v49 = vadd.f32 %v2659_v51, %v6912_v20 }
 0x732   : > { %v2620_v45 = vpop.f32.mrf.mxu0  ;;  %v2661_v12 = vpop.f32.mrf.mxu1 }
 0x733   : > { %4188 = vtanh.f32 %v2666_v38  ;;  %v2667_v3 = vadd.f32 %v2620_v45, %v6911_v53  ;;  %v2669_v18 = vadd.f32 %v2661_v12, %v5037_v60 }
 0x734   : > { %v2622_v23 = vpop.f32.mrf.mxu0  ;;  %v2663_v17 = vpop.f32.mrf.mxu1 }
 0x735   : > { %4190 = vtanh.f32 %v2667_v3 }
 0x736   : > { %v2623_v22 = vpop.f32.mrf.mxu0  ;;  %v2664_v28 = vpop.f32.mrf.mxu1  ;;  %4192 = vtanh.f32 %v2668_v49  ;;  %v2567_v49 = vadd.f32 %v2560_v59, %v5249_v10  ;;  %v6084_v59 = vld [vmem:[#allocation5 + $0x28] ss:$16 sps:$4 sm:$0xff]  }
 0x737   : > { %4194 = vtanh.f32 %v2669_v18  ;;  %v7153_v22 = vld [vmem:[#allocation64_spill] sm:$0xff]  ;;  %v7154_v18 = vld [vmem:[#allocation65_spill] sm:$0xff] }
 0x738   : > { %v6088_v28 = vld [vmem:[#allocation5 + $0xc] ss:$16 sps:$4 sm:$0xff]  }
 0x740   : > { %v4189_v32 = vpop.eup %4188 }
 0x741   : > { %v2674_v30 = vmul.f32 0.5, %v4189_v32  ;;  %v6092_v32 = vld [vmem:[#allocation5 + $0x8] ss:$16 sps:$4 sm:$0xff]  }
 0x742   : > { %v4191_v25 = vpop.eup %4190 }
 0x743   : > { %v2675_v55 = vadd.f32 0.5, %v2674_v30  ;;  %v2676_v7 = vmul.f32 0.5, %v4191_v25  ;;  %v4193_v44 = vpop.eup %4192  ;;  %v6095_v30 = vld [vmem:[#allocation7 + $0xe4] ss:$16 sps:$4 sm:$0xff]   ;;  %v6098_v25 = vld [vmem:[#allocation7 + $0xec] ss:$16 sps:$4 sm:$0xff]  }
 0x744   : > { %v4195_v51 = vpop.eup %4194  ;;  %7155 = vst [vmem:[#allocation19_spill] sm:$0xff] %v6095_v30  ;;  %7156 = vst [vmem:[#allocation20_spill] sm:$0xff] %v6098_v25 }
 0x745   : > { %v2677_v9 = vadd.f32 0.5, %v2676_v7  ;;  %v2681_v24 = vmul.f32 %v4193_v44, %v2675_v55  ;;  %v2678_v45 = vmul.f32 0.5, %v4195_v51  ;;  %v6103_v55 = vld [vmem:[#allocation7 + $0xe0] ss:$16 sps:$4 sm:$0xff]   ;;  %v6106_v7 = vld [vmem:[#allocation7 + $0xe8] ss:$16 sps:$4 sm:$0xff]  }
 0x746   : > { %7157 = vst [vmem:[#allocation21_spill] sm:$0xff] %v6103_v55  ;;  %7158 = vst [vmem:[#allocation22_spill] sm:$0xff] %v6106_v7  ;;  %v6112_v44 = vld [vmem:[#allocation7 + $0xcc] ss:$16 sps:$4 sm:$0xff]   ;;  %v6123_v51 = vld [vmem:[#allocation7 + $0xa4] ss:$16 sps:$4 sm:$0xff]  }
 0x747   : > { %v2680_v2 = vmul.f32 %v2677_v9, %v5824_v8  ;;  %v2679_v3 = vadd.f32 0.5, %v2678_v45  ;;  %v6056_v8 = vld [vmem:[#allocation5 + $0x8c] ss:$16 sps:$4 sm:$0xff]   ;;  %v6109_v9 = vld [vmem:[#allocation7 + $0xc4] ss:$16 sps:$4 sm:$0xff]   ;;  %7160 = vst [vmem:[#allocation24_spill] sm:$0xff] %v6112_v44 }
 0x748   : > { %7159 = vst [vmem:[#allocation23_spill] sm:$0xff] %v6109_v9  ;;  %7163 = vst [vmem:[#allocation27_spill] sm:$0xff] %v6123_v51  ;;  %v6126_v45 = vld [vmem:[#allocation7 + $0xac] ss:$16 sps:$4 sm:$0xff]  }
 0x749   : > { %v5994_v38 = vadd.f32 %v2681_v24, %v2680_v2  ;;  %v6117_v2 = vld [vmem:[#allocation7 + $0xc0] ss:$16 sps:$4 sm:$0xff]   ;;  %v6120_v24 = vld [vmem:[#allocation7 + $0xc8] ss:$16 sps:$4 sm:$0xff]   ;;  %7164 = vst [vmem:[#allocation28_spill] sm:$0xff] %v6126_v45 }
 0x74a   : > { %7161 = vst [vmem:[#allocation25_spill] sm:$0xff] %v6117_v2  ;;  %7162 = vst [vmem:[#allocation26_spill] sm:$0xff] %v6120_v24 }
 0x74b   : > { %4196 = vtanh.f32 %v5994_v38 }
 0x74c   : > { %4198 = vtanh.f32 %v2567_v49  ;;  %v6141_v49 = vld [vmem:[#allocation7 + $0x80] ss:$16 sps:$4 sm:$0xff]  }
 0x74d   : > { %4200 = vtanh.f32 %v5987_v5  ;;  %7169 = vst [vmem:[#allocation33_spill] sm:$0xff] %v6141_v49 }
 0x758   : > { %v4197_v23 = vpop.eup %4196 }
 0x759   : > { %v2684_v12 = vmul.f32 %v4197_v23, %v2679_v3  ;;  %v6129_v3 = vld [vmem:[#allocation7 + $0xa0] ss:$16 sps:$4 sm:$0xff]   ;;  %v6132_v23 = vld [vmem:[#allocation7 + $0xa8] ss:$16 sps:$4 sm:$0xff]  }
 0x75a   : > { %7165 = vst [vmem:[#allocation29_spill] sm:$0xff] %v6129_v3  ;;  %7166 = vst [vmem:[#allocation30_spill] sm:$0xff] %v6132_v23 }
 0x75b   : > { %v5997_v17 = vpack.c.bf16 %v2684_v12, %v2684_v12  ;;  %v6135_v12 = vld [vmem:[#allocation7 + $0x84] ss:$16 sps:$4 sm:$0xff]  }
 0x75c   : > { %7167 = vst [vmem:[#allocation31_spill] sm:$0xff] %v6135_v12 }
 0x75d   : > { %2719 = vmatmul.mubr.bf16.vlgmr.msra.gmra.mxu0 %v5997_v17  ;;  %2760 = vmatmul.mubr.bf16.vlgmr.msra.gmra.mxu1 %v5997_v17 }
 0x75e   : > { %2769 = vmatpush1.bf16.msra.mxu0 %v5644_v43  ;;  %2810 = vmatpush1.bf16.msra.mxu1 %v5647_v48  ;;  %v4199_v43 = vpop.eup %4198 }
 0x75f   : > { %2770 = vmatprep.subr.bf16.mxu0 %v5650_v37  ;;  %2811 = vmatprep.subr.bf16.mxu1 %v5653_v39  ;;  %v2576_v48 = vmul.f32 0.5, %v4199_v43  ;;  %v4201_v37 = vpop.eup %4200  ;;  %v6144_v43 = vld [vmem:[#allocation7 + $0x88] ss:$16 sps:$4 sm:$0xff]  }
 0x760   : > { %2800 = vmatprep.mubr.bf16.mxu0 %v6868_v57  ;;  %2841 = vmatprep.mubr.bf16.mxu1 %v6868_v57  ;;  %7170 = vst [vmem:[#allocation34_spill] sm:$0xff] %v6144_v43 }
 0x761   : > { %v2577_v39 = vadd.f32 0.5, %v2576_v48  ;;  %v6147_v48 = vld [vmem:[#allocation7 + $0x64] ss:$16 sps:$4 sm:$0xff]  }
 0x762   : > { %2771 = vmatpush1.bf16.msra.mxu0 %v5658_v40  ;;  %2812 = vmatpush1.bf16.msra.mxu1 %v5661_v29  ;;  %7171 = vst [vmem:[#allocation35_spill] sm:$0xff] %v6147_v48 }
 0x763   : > { %2772 = vmatprep.subr.bf16.mxu0 %v5664_v50  ;;  %2813 = vmatprep.subr.bf16.mxu1 %v5667_v42  ;;  %v6031_v40 = vmul.f32 %v4201_v37, %v2577_v39  ;;  %v7136_v50 = vld [vmem:[#allocation15_spill] sm:$0xff]  ;;  %v7137_v42 = vld [vmem:[#allocation16_spill] sm:$0xff] }
 0x764   : > { %v6150_v37 = vld [vmem:[#allocation7 + $0x6c] ss:$16 sps:$4 sm:$0xff]   ;;  %v6153_v39 = vld [vmem:[#allocation7 + $0x60] ss:$16 sps:$4 sm:$0xff]  }
 0x765   : > { %7135 = vst [vmem:[#allocation18_spill] sm:$0xff] %v6031_v40  ;;  %v2583_v29 = vpack.c.bf16 %v6031_v40, %v6031_v40  ;;  %7172 = vst [vmem:[#allocation36_spill] sm:$0xff] %v6150_v37  ;;  %v6159_v40 = vld [vmem:[#allocation7 + $0x44] ss:$16 sps:$4 sm:$0xff]  }
 0x766   : > { %2773 = vmatpush1.bf16.msra.mxu0 %v5670_v58  ;;  %2814 = vmatpush1.bf16.msra.mxu1 %v5673_v56  ;;  %v7138_v58 = vld [vmem:[#allocation17_spill] sm:$0xff]  ;;  %v7139_v56 = vld [vmem:[#allocation46_spill] sm:$0xff]  ;;  %7173 = vst [vmem:[#allocation37_spill] sm:$0xff] %v6153_v39  ;;  %7175 = vst [vmem:[#allocation40_spill] sm:$0xff] %v6159_v40 }
 0x767   : > { %2774 = vmatprep.subr.bf16.mxu0 %v5677_v41  ;;  %2815 = vmatprep.subr.bf16.mxu1 %v7072_v35  ;;  %v7140_v41 = vld [vmem:[#allocation47_spill] sm:$0xff]  ;;  %v7146_v35 = vld [vmem:[#allocation54_spill] sm:$0xff] }
 0x76a   : > { %2775 = vmatpush1.bf16.msra.mxu0 %v7073_v6  ;;  %2816 = vmatpush1.bf16.msra.mxu1 %v7074_v62  ;;  %v6060_v6 = vld [vmem:[#allocation5 + $0x88] ss:$16 sps:$4 sm:$0xff]   ;;  %v7147_v62 = vld [vmem:[#allocation55_spill] sm:$0xff] }
 0x76b   : > { %2776 = vmatprep.subr.bf16.mxu0 %v7075_v27  ;;  %2817 = vmatprep.subr.bf16.mxu1 %v7076_v46  ;;  %v6064_v27 = vld [vmem:[#allocation5 + $0x6c] ss:$16 sps:$4 sm:$0xff]  }
 0x76c   : > { %v7148_v46 = vld [vmem:[#allocation58_spill] sm:$0xff] }
 0x76e   : > { %2777 = vmatpush1.bf16.msra.mxu0 %v7077_v11  ;;  %2818 = vmatpush1.bf16.msra.mxu1 %v7078_v33  ;;  %v6068_v11 = vld [vmem:[#allocation5 + $0x68] ss:$16 sps:$4 sm:$0xff]   ;;  %v7149_v33 = vld [vmem:[#allocation59_spill] sm:$0xff] }
 0x76f   : > { %2778 = vmatprep.subr.bf16.mxu0 %v7079_v54  ;;  %2819 = vmatprep.subr.bf16.mxu1 %v7080_v31  ;;  %v6072_v54 = vld [vmem:[#allocation5 + $0x4c] ss:$16 sps:$4 sm:$0xff]  }
 0x770   : > { %v7150_v31 = vld [vmem:[#allocation60_spill] sm:$0xff] }
 0x772   : > { %2779 = vmatpush1.bf16.msra.mxu0 %v7081_v1  ;;  %2820 = vmatpush1.bf16.msra.mxu1 %v7082_v13  ;;  %v6076_v1 = vld [vmem:[#allocation5 + $0x48] ss:$16 sps:$4 sm:$0xff]   ;;  %v7151_v13 = vld [vmem:[#allocation61_spill] sm:$0xff] }
 0x773   : > { %2780 = vmatprep.subr.bf16.mxu0 %v7083_v15  ;;  %2821 = vmatprep.subr.bf16.mxu1 %v7084_v14  ;;  %v6080_v15 = vld [vmem:[#allocation5 + $0x2c] ss:$16 sps:$4 sm:$0xff]   ;;  %v7152_v14 = vld [vmem:[#allocation63_spill] sm:$0xff] }
 0x776   : > { %2781 = vmatpush1.bf16.msra.mxu0 %v5719_v0  ;;  %2822 = vmatpush1.bf16.msra.mxu1 %v5722_v36  ;;  %v7141_v0 = vld [vmem:[#allocation48_spill] sm:$0xff] }
 0x777   : > { %2782 = vmatprep.subr.bf16.mxu0 %v5727_v4  ;;  %2823 = vmatprep.subr.bf16.mxu1 %v5730_v61  ;;  %v7142_v4 = vld [vmem:[#allocation49_spill] sm:$0xff]  ;;  %v7143_v61 = vld [vmem:[#allocation50_spill] sm:$0xff] }
 0x778   : > { %v6052_v36 = vld [vmem:[#allocation5 + $0xa8] ss:$16 sps:$4 sm:$0xff]  }
 0x77a   : > { %2783 = vmatpush1.bf16.msra.mxu0 %v5733_v16  ;;  %2824 = vmatpush1.bf16.msra.mxu1 %v5736_v63  ;;  %v7144_v16 = vld [vmem:[#allocation51_spill] sm:$0xff]  ;;  %v7145_v63 = vld [vmem:[#allocation53_spill] sm:$0xff] }
 0x77b   : > { %2870 = vmatprep.subr.bf16.mxu0 %v5869_v26  ;;  %2911 = vmatprep.subr.bf16.mxu1 %v7136_v50 }
 0x77d   : > { %2801 = vmatmul.mubr.bf16.vlgmr.msra.gmra.mxu0 %v2583_v29  ;;  %2842 = vmatmul.mubr.bf16.vlgmr.msra.gmra.mxu1 %v2583_v29  ;;  %v6156_v29 = vld [vmem:[#allocation7 + $0x68] ss:$16 sps:$4 sm:$0xff]  }
 0x77e   : > { %2871 = vmatpush1.bf16.msra.mxu0 %v7137_v42  ;;  %2912 = vmatpush1.bf16.msra.mxu1 %v7138_v58  ;;  %7174 = vst [vmem:[#allocation38_spill] sm:$0xff] %v6156_v29 }
 0x77f   : > { %2872 = vmatprep.subr.bf16.mxu0 %v7139_v56  ;;  %2913 = vmatprep.subr.bf16.mxu1 %v7140_v41 }
 0x780   : > { %2902 = vmatprep.mubr.bf16.mxu0 %v6868_v57  ;;  %2943 = vmatprep.mubr.bf16.mxu1 %v6868_v57 }
 0x782   : > { %2873 = vmatpush1.bf16.msra.mxu0 %v5889_v52  ;;  %2914 = vmatpush1.bf16.msra.mxu1 %v7141_v0 }
 0x783   : > { %2874 = vmatprep.subr.bf16.mxu0 %v7142_v4  ;;  %2915 = vmatprep.subr.bf16.mxu1 %v7143_v61 }
 0x786   : > { %2875 = vmatpush1.bf16.msra.mxu0 %v7144_v16  ;;  %2916 = vmatpush1.bf16.msra.mxu1 %v6052_v36 }
 0x787   : > { %2876 = vmatprep.subr.bf16.mxu0 %v7145_v63  ;;  %2917 = vmatprep.subr.bf16.mxu1 %v6056_v8 }
 0x78a   : > { %2877 = vmatpush1.bf16.msra.mxu0 %v7146_v35  ;;  %2918 = vmatpush1.bf16.msra.mxu1 %v6060_v6 }
 0x78b   : > { %2878 = vmatprep.subr.bf16.mxu0 %v7147_v62  ;;  %2919 = vmatprep.subr.bf16.mxu1 %v6064_v27 }
 0x78e   : > { %2879 = vmatpush1.bf16.msra.mxu0 %v7148_v46  ;;  %2920 = vmatpush1.bf16.msra.mxu1 %v6068_v11 }
 0x78f   : > { %2880 = vmatprep.subr.bf16.mxu0 %v7149_v33  ;;  %2921 = vmatprep.subr.bf16.mxu1 %v6072_v54 }
 0x792   : > { %2881 = vmatpush1.bf16.msra.mxu0 %v7150_v31  ;;  %2922 = vmatpush1.bf16.msra.mxu1 %v6076_v1 }
 0x793   : > { %2882 = vmatprep.subr.bf16.mxu0 %v7151_v13  ;;  %2923 = vmatprep.subr.bf16.mxu1 %v6080_v15 }
 0x796   : > { %2883 = vmatpush1.bf16.msra.mxu0 %v7152_v14  ;;  %2924 = vmatpush1.bf16.msra.mxu1 %v6084_v59 }
 0x797   : > { %2884 = vmatprep.subr.bf16.mxu0 %v7153_v22  ;;  %2925 = vmatprep.subr.bf16.mxu1 %v6088_v28 }
 0x79a   : > { %2885 = vmatpush1.bf16.msra.mxu0 %v7154_v18  ;;  %2926 = vmatpush1.bf16.msra.mxu1 %v6092_v32 }
 0x79b   : > { %2972 = vmatprep.subr.bf16.mxu0 %v6095_v30  ;;  %3013 = vmatprep.subr.bf16.mxu1 %v6098_v25 }
 0x79d   : > { %2903 = vmatmul.mubr.bf16.vlgmr.msra.gmra.mxu0 %v5997_v17  ;;  %2944 = vmatmul.mubr.bf16.vlgmr.msra.gmra.mxu1 %v5997_v17  ;;  %v6138_v17 = vld [vmem:[#allocation7 + $0x8c] ss:$16 sps:$4 sm:$0xff]  }
 0x79e   : > { %2973 = vmatpush1.bf16.msra.mxu0 %v6103_v55  ;;  %3014 = vmatpush1.bf16.msra.mxu1 %v6106_v7  ;;  %7168 = vst [vmem:[#allocation32_spill] sm:$0xff] %v6138_v17 }
 0x79f   : > { %2974 = vmatprep.subr.bf16.mxu0 %v6109_v9  ;;  %3015 = vmatprep.subr.bf16.mxu1 %v6112_v44 }
 0x7a0   : > { %3004 = vmatprep.mubr.bf16.mxu0 %v6868_v57  ;;  %3045 = vmatprep.mubr.bf16.mxu1 %v6868_v57 }
 0x7a2   : > { %2975 = vmatpush1.bf16.msra.mxu0 %v6117_v2  ;;  %3016 = vmatpush1.bf16.msra.mxu1 %v6120_v24 }
 0x7a3   : > { %2976 = vmatprep.subr.bf16.mxu0 %v6123_v51  ;;  %3017 = vmatprep.subr.bf16.mxu1 %v6126_v45 }
 0x7a6   : > { %2977 = vmatpush1.bf16.msra.mxu0 %v6129_v3  ;;  %3018 = vmatpush1.bf16.msra.mxu1 %v6132_v23 }
 0x7a7   : > { %2978 = vmatprep.subr.bf16.mxu0 %v6135_v12  ;;  %3019 = vmatprep.subr.bf16.mxu1 %v6138_v17 }
 0x7aa   : > { %2979 = vmatpush1.bf16.msra.mxu0 %v6141_v49  ;;  %3020 = vmatpush1.bf16.msra.mxu1 %v6144_v43  ;;  %v6162_v43 = vld [vmem:[#allocation7 + $0x4c] ss:$16 sps:$4 sm:$0xff]  }
 0x7ab   : > { %2980 = vmatprep.subr.bf16.mxu0 %v6147_v48  ;;  %3021 = vmatprep.subr.bf16.mxu1 %v6150_v37  ;;  %7176 = vst [vmem:[#allocation52_spill] sm:$0xff] %v6162_v43  ;;  %v6165_v48 = vld [vmem:[#allocation7 + $0x40] ss:$16 sps:$4 sm:$0xff]   ;;  %v6168_v37 = vld [vmem:[#allocation7 + $0x48] ss:$16 sps:$4 sm:$0xff]  }
 0x7ac   : > { %7177 = vst [vmem:[#allocation56_spill] sm:$0xff] %v6165_v48  ;;  %7178 = vst [vmem:[#allocation57_spill] sm:$0xff] %v6168_v37 }
 0x7ae   : > { %2981 = vmatpush1.bf16.msra.mxu0 %v6153_v39  ;;  %3022 = vmatpush1.bf16.msra.mxu1 %v6156_v29  ;;  %v6171_v39 = vld [vmem:[#allocation7 + $0x24] ss:$16 sps:$4 sm:$0xff]   ;;  %v6174_v29 = vld [vmem:[#allocation7 + $0x2c] ss:$16 sps:$4 sm:$0xff]  }
 0x7af   : > { %2982 = vmatprep.subr.bf16.mxu0 %v6159_v40  ;;  %3023 = vmatprep.subr.bf16.mxu1 %v6162_v43  ;;  %7179 = vst [vmem:[#allocation41_spill] sm:$0xff] %v6171_v39  ;;  %7180 = vst [vmem:[#allocation42_spill] sm:$0xff] %v6174_v29  ;;  %v6177_v40 = vld [vmem:[#allocation7 + $0x20] ss:$16 sps:$4 sm:$0xff]   ;;  %v6180_v43 = vld [vmem:[#allocation7 + $0x28] ss:$16 sps:$4 sm:$0xff]  }
 0x7b0   : > { %7181 = vst [vmem:[#allocation43_spill] sm:$0xff] %v6177_v40  ;;  %7182 = vst [vmem:[#allocation44_spill] sm:$0xff] %v6180_v43 }
 0x7b2   : > { %2983 = vmatpush1.bf16.msra.mxu0 %v6165_v48  ;;  %3024 = vmatpush1.bf16.msra.mxu1 %v6168_v37  ;;  %v6183_v48 = vld [vmem:[#allocation7 + $0x4] ss:$16 sps:$4 sm:$0xff]   ;;  %v6186_v37 = vld [vmem:[#allocation7 + $0xc] ss:$16 sps:$4 sm:$0xff]  }
 0x7b3   : > { %2984 = vmatprep.subr.bf16.mxu0 %v6171_v39  ;;  %3025 = vmatprep.subr.bf16.mxu1 %v6174_v29  ;;  %7183 = vst [vmem:[#allocation45_spill] sm:$0xff] %v6183_v48  ;;  %7184 = vst [vmem:[#allocation15_spill] sm:$0xff] %v6186_v37  ;;  %v6189_v39 = vld [vmem:[#allocation7] ss:$16 sps:$4 sm:$0xff]   ;;  %v6192_v29 = vld [vmem:[#allocation7 + $0x8] ss:$16 sps:$4 sm:$0xff]  }
 0x7b4   : > { %7185 = vst [vmem:[#allocation16_spill] sm:$0xff] %v6189_v39  ;;  %7186 = vst [vmem:[#allocation17_spill] sm:$0xff] %v6192_v29 }
 0x7b6   : > { %2985 = vmatpush1.bf16.msra.mxu0 %v6177_v40  ;;  %3026 = vmatpush1.bf16.msra.mxu1 %v6180_v43  ;;  %v6195_v40 = vld [vmem:[#allocation8 + $0xe4] ss:$16 sps:$4 sm:$0xff]   ;;  %v6198_v43 = vld [vmem:[#allocation8 + $0xec] ss:$16 sps:$4 sm:$0xff]  }
 0x7b7   : > { %2986 = vmatprep.subr.bf16.mxu0 %v6183_v48  ;;  %3027 = vmatprep.subr.bf16.mxu1 %v6186_v37  ;;  %7187 = vst [vmem:[#allocation46_spill] sm:$0xff] %v6195_v40  ;;  %7188 = vst [vmem:[#allocation47_spill] sm:$0xff] %v6198_v43 }
 0x7ba   : > { %2987 = vmatpush1.bf16.msra.mxu0 %v6189_v39  ;;  %3028 = vmatpush1.bf16.msra.mxu1 %v6192_v29 }
 0x7bb   : > { %3054 = vmatprep.subr.bf16.mxu0 %v6195_v40  ;;  %3095 = vmatprep.subr.bf16.mxu1 %v6198_v43 }
 0x81d   : > { %v2720_v48 = vpop.f32.mrf.mxu0  ;;  %v2761_v49 = vpop.f32.mrf.mxu1 }
 0x81f   : > { %v2722_v17 = vpop.f32.mrf.mxu0  ;;  %v2763_v37 = vpop.f32.mrf.mxu1 }
 0x821   : > { %v2724_v12 = vpop.f32.mrf.mxu0  ;;  %v2765_v23 = vpop.f32.mrf.mxu1 }
 0x823   : > { %v2725_v3 = vpop.f32.mrf.mxu0  ;;  %v2766_v39 = vpop.f32.mrf.mxu1 }
 0x83d   : > { %v2802_v45 = vpop.f32.mrf.mxu0  ;;  %v2843_v51 = vpop.f32.mrf.mxu1 }
 0x83e   : > { %v2803_v24 = vadd.f32 %v2802_v45, %v2720_v48  ;;  %v2844_v29 = vadd.f32 %v2843_v51, %v2761_v49 }
 0x83f   : > { %v2804_v2 = vpop.f32.mrf.mxu0  ;;  %v2845_v44 = vpop.f32.mrf.mxu1 }
 0x840   : > { %v2850_v40 = vadd.f32 %v2803_v24, %v5221_v34  ;;  %v2805_v9 = vadd.f32 %v2804_v2, %v2722_v17  ;;  %v2846_v7 = vadd.f32 %v2845_v44, %v2763_v37  ;;  %v2852_v25 = vadd.f32 %v2844_v29, %v5231_v21 }
 0x841   : > { %v2806_v55 = vpop.f32.mrf.mxu0  ;;  %v2847_v43 = vpop.f32.mrf.mxu1 }
 0x842   : > { %4202 = vtanh.f32 %v2850_v40  ;;  %v2851_v12 = vadd.f32 %v2805_v9, %v5226_v19 }
 0x843   : > { %v2807_v23 = vpop.f32.mrf.mxu0  ;;  %v2848_v3 = vpop.f32.mrf.mxu1 }
 0x844   : > { %4204 = vtanh.f32 %v2851_v12 }
 0x845   : > { %4206 = vtanh.f32 %v2852_v25 }
 0x84f   : > { %v4203_v39 = vpop.eup %4202 }
 0x850   : > { %v2858_v45 = vmul.f32 0.5, %v4203_v39 }
 0x851   : > { %v4205_v51 = vpop.eup %4204 }
 0x852   : > { %v2859_v49 = vadd.f32 0.5, %v2858_v45  ;;  %v2860_v48 = vmul.f32 0.5, %v4205_v51  ;;  %v4207_v30 = vpop.eup %4206 }
 0x854   : > { %v2861_v24 = vadd.f32 0.5, %v2860_v48  ;;  %v2865_v2 = vmul.f32 %v4207_v30, %v2859_v49 }
 0x856   : > { %v2864_v55 = vmul.f32 %v2861_v24, %v5987_v5 }
 0x858   : > { %v6205_v44 = vadd.f32 %v2865_v2, %v2864_v55 }
 0x85d   : > { %v2904_v40 = vpop.f32.mrf.mxu0  ;;  %v2945_v17 = vpop.f32.mrf.mxu1 }
 0x85e   : > { %v2952_v9 = vadd.f32 %v2904_v40, %v6970_v47  ;;  %v2954_v23 = vadd.f32 %v2945_v17, %v6912_v20 }
 0x85f   : > { %v2906_v43 = vpop.f32.mrf.mxu0  ;;  %v2947_v37 = vpop.f32.mrf.mxu1 }
 0x860   : > { %4208 = vtanh.f32 %v2952_v9  ;;  %v2953_v25 = vadd.f32 %v2906_v43, %v6911_v53  ;;  %v2955_v5 = vadd.f32 %v2947_v37, %v5037_v60 }
 0x861   : > { %v2908_v29 = vpop.f32.mrf.mxu0  ;;  %v2949_v12 = vpop.f32.mrf.mxu1 }
 0x862   : > { %4210 = vtanh.f32 %v2953_v25 }
 0x863   : > { %v2909_v3 = vpop.f32.mrf.mxu0  ;;  %v2950_v30 = vpop.f32.mrf.mxu1  ;;  %4212 = vtanh.f32 %v2954_v23  ;;  %v2853_v23 = vadd.f32 %v2846_v7, %v5249_v10  ;;  %v6234_v7 = vld [vmem:[#allocation8 + $0xc0] ss:$16 sps:$4 sm:$0xff]  }
 0x864   : > { %4214 = vtanh.f32 %v2955_v5  ;;  %v6220_v3 = vld [vmem:[#allocation8 + $0xe0] ss:$16 sps:$4 sm:$0xff]   ;;  %v6226_v30 = vld [vmem:[#allocation8 + $0xc4] ss:$16 sps:$4 sm:$0xff]   ;;  %v6229_v5 = vld [vmem:[#allocation8 + $0xcc] ss:$16 sps:$4 sm:$0xff]  }
 0x86d   : > { %v4209_v39 = vpop.eup %4208 }
 0x86e   : > { %v2960_v45 = vmul.f32 0.5, %v4209_v39  ;;  %v6237_v39 = vld [vmem:[#allocation8 + $0xc8] ss:$16 sps:$4 sm:$0xff]  }
 0x86f   : > { %v4211_v51 = vpop.eup %4210 }
 0x870   : > { %v2961_v49 = vadd.f32 0.5, %v2960_v45  ;;  %v2962_v48 = vmul.f32 0.5, %v4211_v51  ;;  %v4213_v2 = vpop.eup %4212  ;;  %v6240_v45 = vld [vmem:[#allocation8 + $0xa4] ss:$16 sps:$4 sm:$0xff]   ;;  %v6243_v51 = vld [vmem:[#allocation8 + $0xac] ss:$16 sps:$4 sm:$0xff]  }
 0x871   : > { %v4215_v17 = vpop.eup %4214 }
 0x872   : > { %v2963_v24 = vadd.f32 0.5, %v2962_v48  ;;  %v2967_v40 = vmul.f32 %v4213_v2, %v2961_v49  ;;  %v2964_v43 = vmul.f32 0.5, %v4215_v17  ;;  %v6246_v49 = vld [vmem:[#allocation8 + $0xa0] ss:$16 sps:$4 sm:$0xff]   ;;  %v6249_v48 = vld [vmem:[#allocation8 + $0xa8] ss:$16 sps:$4 sm:$0xff]  }
 0x873   : > { %v6256_v2 = vld [vmem:[#allocation8 + $0x8c] ss:$16 sps:$4 sm:$0xff]   ;;  %v6265_v17 = vld [vmem:[#allocation8 + $0x64] ss:$16 sps:$4 sm:$0xff]  }
 0x874   : > { %v2966_v55 = vmul.f32 %v2963_v24, %v5994_v38  ;;  %v2965_v25 = vadd.f32 0.5, %v2964_v43  ;;  %v6223_v38 = vld [vmem:[#allocation8 + $0xe8] ss:$16 sps:$4 sm:$0xff]   ;;  %v6253_v24 = vld [vmem:[#allocation8 + $0x84] ss:$16 sps:$4 sm:$0xff]   ;;  %7189 = vst [vmem:[#allocation48_spill] sm:$0xff] %v6256_v2 }
 0x875   : > { %7192 = vst [vmem:[#allocation51_spill] sm:$0xff] %v6265_v17  ;;  %v6268_v43 = vld [vmem:[#allocation8 + $0x6c] ss:$16 sps:$4 sm:$0xff]  }
 0x876   : > { %v6212_v9 = vadd.f32 %v2967_v40, %v2966_v55  ;;  %v6259_v55 = vld [vmem:[#allocation8 + $0x80] ss:$16 sps:$4 sm:$0xff]   ;;  %v6262_v40 = vld [vmem:[#allocation8 + $0x88] ss:$16 sps:$4 sm:$0xff]   ;;  %7193 = vst [vmem:[#allocation53_spill] sm:$0xff] %v6268_v43 }
 0x877   : > { %7190 = vst [vmem:[#allocation49_spill] sm:$0xff] %v6259_v55  ;;  %7191 = vst [vmem:[#allocation50_spill] sm:$0xff] %v6262_v40 }
 0x878   : > { %4216 = vtanh.f32 %v6212_v9 }
 0x879   : > { %4218 = vtanh.f32 %v2853_v23  ;;  %v6277_v23 = vld [vmem:[#allocation8 + $0x44] ss:$16 sps:$4 sm:$0xff]  }
 0x87a   : > { %4220 = vtanh.f32 %v6205_v44  ;;  %7196 = vst [vmem:[#allocation58_spill] sm:$0xff] %v6277_v23 }
 0x885   : > { %v4217_v29 = vpop.eup %4216 }
 0x886   : > { %v2970_v37 = vmul.f32 %v4217_v29, %v2965_v25  ;;  %v4219_v25 = vpop.eup %4218  ;;  %v6271_v29 = vld [vmem:[#allocation8 + $0x60] ss:$16 sps:$4 sm:$0xff]  }
 0x887   : > { %7194 = vst [vmem:[#allocation54_spill] sm:$0xff] %v6271_v29 }
 0x888   : > { %v6215_v12 = vpack.c.bf16 %v2970_v37, %v2970_v37  ;;  %v6274_v37 = vld [vmem:[#allocation8 + $0x68] ss:$16 sps:$4 sm:$0xff]  }
 0x889   : > { %7195 = vst [vmem:[#allocation55_spill] sm:$0xff] %v6274_v37 }
 0x88a   : > { %3005 = vmatmul.mubr.bf16.vlgmr.msra.gmra.mxu0 %v6215_v12  ;;  %3046 = vmatmul.mubr.bf16.vlgmr.msra.gmra.mxu1 %v6215_v12 }
 0x88b   : > { %3055 = vmatpush1.bf16.msra.mxu0 %v6220_v3  ;;  %3096 = vmatpush1.bf16.msra.mxu1 %v6223_v38 }
 0x88c   : > { %3056 = vmatprep.subr.bf16.mxu0 %v6226_v30  ;;  %3097 = vmatprep.subr.bf16.mxu1 %v6229_v5 }
 0x88d   : > { %3086 = vmatprep.mubr.bf16.mxu0 %v6868_v57  ;;  %3127 = vmatprep.mubr.bf16.mxu1 %v6868_v57 }
 0x88f   : > { %3057 = vmatpush1.bf16.msra.mxu0 %v6234_v7  ;;  %3098 = vmatpush1.bf16.msra.mxu1 %v6237_v39 }
 0x890   : > { %3058 = vmatprep.subr.bf16.mxu0 %v6240_v45  ;;  %3099 = vmatprep.subr.bf16.mxu1 %v6243_v51 }
 0x893   : > { %3059 = vmatpush1.bf16.msra.mxu0 %v6246_v49  ;;  %3100 = vmatpush1.bf16.msra.mxu1 %v6249_v48 }
 0x894   : > { %3060 = vmatprep.subr.bf16.mxu0 %v6253_v24  ;;  %3101 = vmatprep.subr.bf16.mxu1 %v6256_v2 }
 0x897   : > { %3061 = vmatpush1.bf16.msra.mxu0 %v6259_v55  ;;  %3102 = vmatpush1.bf16.msra.mxu1 %v6262_v40  ;;  %v6280_v40 = vld [vmem:[#allocation8 + $0x4c] ss:$16 sps:$4 sm:$0xff]   ;;  %v6283_v55 = vld [vmem:[#allocation8 + $0x40] ss:$16 sps:$4 sm:$0xff]  }
 0x898   : > { %3062 = vmatprep.subr.bf16.mxu0 %v6265_v17  ;;  %3103 = vmatprep.subr.bf16.mxu1 %v6268_v43  ;;  %7197 = vst [vmem:[#allocation59_spill] sm:$0xff] %v6280_v40  ;;  %v2862_v17 = vmul.f32 0.5, %v4219_v25  ;;  %7198 = vst [vmem:[#allocation60_spill] sm:$0xff] %v6283_v55  ;;  %v6286_v43 = vld [vmem:[#allocation8 + $0x48] ss:$16 sps:$4 sm:$0xff]  }
 0x899   : > { %7199 = vst [vmem:[#allocation61_spill] sm:$0xff] %v6286_v43  ;;  %v6298_v25 = vld [vmem:[#allocation8 + $0x28] ss:$16 sps:$4 sm:$0xff]  }
 0x89a   : > { %v2863_v2 = vadd.f32 0.5, %v2862_v17  ;;  %v6312_v17 = vld [vmem:[#allocation8 + $0x8] ss:$16 sps:$4 sm:$0xff]  }
 0x89b   : > { %3063 = vmatpush1.bf16.msra.mxu0 %v6271_v29  ;;  %3104 = vmatpush1.bf16.msra.mxu1 %v6274_v37  ;;  %v6289_v29 = vld [vmem:[#allocation8 + $0x24] ss:$16 sps:$4 sm:$0xff]   ;;  %v6292_v37 = vld [vmem:[#allocation8 + $0x2c] ss:$16 sps:$4 sm:$0xff]  }
 0x89c   : > { %3064 = vmatprep.subr.bf16.mxu0 %v6277_v23  ;;  %3105 = vmatprep.subr.bf16.mxu1 %v6280_v40  ;;  %7200 = vst [vmem:[#allocation63_spill] sm:$0xff] %v6289_v29  ;;  %7201 = vst [vmem:[#allocation64_spill] sm:$0xff] %v6292_v37  ;;  %v4221_v23 = vpop.eup %4220  ;;  %v6295_v40 = vld [vmem:[#allocation8 + $0x20] ss:$16 sps:$4 sm:$0xff]  }
 0x89f   : > { %3065 = vmatpush1.bf16.msra.mxu0 %v6283_v55  ;;  %3106 = vmatpush1.bf16.msra.mxu1 %v6286_v43  ;;  %v6301_v55 = vmul.f32 %v4221_v23, %v2863_v2  ;;  %v6303_v43 = vld [vmem:[#allocation8 + $0x4] ss:$16 sps:$4 sm:$0xff]  }
 0x8a0   : > { %3066 = vmatprep.subr.bf16.mxu0 %v6289_v29  ;;  %3107 = vmatprep.subr.bf16.mxu1 %v6292_v37  ;;  %v6306_v29 = vld [vmem:[#allocation8 + $0xc] ss:$16 sps:$4 sm:$0xff]   ;;  %v6309_v37 = vld [vmem:[#allocation8] ss:$16 sps:$4 sm:$0xff]  }
 0x8a1   : > { %v2869_v2 = vpack.c.bf16 %v6301_v55, %v6301_v55  ;;  %v7235_v23 = vld [vmem:[#allocation47_spill] sm:$0xff] }
 0x8a3   : > { %3067 = vmatpush1.bf16.msra.mxu0 %v6295_v40  ;;  %3108 = vmatpush1.bf16.msra.mxu1 %v6298_v25 }
 0x8a4   : > { %3068 = vmatprep.subr.bf16.mxu0 %v6303_v43  ;;  %3109 = vmatprep.subr.bf16.mxu1 %v6306_v29 }
 0x8a7   : > { %3069 = vmatpush1.bf16.msra.mxu0 %v6309_v37  ;;  %3110 = vmatpush1.bf16.msra.mxu1 %v6312_v17 }
 0x8a8   : > { %3156 = vmatprep.subr.bf16.mxu0 %v5869_v26  ;;  %3197 = vmatprep.subr.bf16.mxu1 %v7136_v50  ;;  %v7202_v26 = vld [vmem:[#allocation19_spill] sm:$0xff]  ;;  %v7204_v50 = vld [vmem:[#allocation21_spill] sm:$0xff] }
 0x8aa   : > { %3087 = vmatmul.mubr.bf16.vlgmr.msra.gmra.mxu0 %v2869_v2  ;;  %3128 = vmatmul.mubr.bf16.vlgmr.msra.gmra.mxu1 %v2869_v2 }
 0x8ab   : > { %3157 = vmatpush1.bf16.msra.mxu0 %v7137_v42  ;;  %3198 = vmatpush1.bf16.msra.mxu1 %v7138_v58  ;;  %v7205_v42 = vld [vmem:[#allocation22_spill] sm:$0xff]  ;;  %v7206_v58 = vld [vmem:[#allocation23_spill] sm:$0xff] }
 0x8ac   : > { %3158 = vmatprep.subr.bf16.mxu0 %v7139_v56  ;;  %3199 = vmatprep.subr.bf16.mxu1 %v7140_v41  ;;  %v7207_v56 = vld [vmem:[#allocation24_spill] sm:$0xff]  ;;  %v7208_v41 = vld [vmem:[#allocation25_spill] sm:$0xff] }
 0x8ad   : > { %3188 = vmatprep.mubr.bf16.mxu0 %v6868_v57  ;;  %3229 = vmatprep.mubr.bf16.mxu1 %v6868_v57 }
 0x8af   : > { %3159 = vmatpush1.bf16.msra.mxu0 %v5889_v52  ;;  %3200 = vmatpush1.bf16.msra.mxu1 %v7141_v0  ;;  %v7203_v52 = vld [vmem:[#allocation20_spill] sm:$0xff]  ;;  %v7209_v0 = vld [vmem:[#allocation26_spill] sm:$0xff] }
 0x8b0   : > { %3160 = vmatprep.subr.bf16.mxu0 %v7142_v4  ;;  %3201 = vmatprep.subr.bf16.mxu1 %v7143_v61  ;;  %v7210_v4 = vld [vmem:[#allocation27_spill] sm:$0xff]  ;;  %v7211_v61 = vld [vmem:[#allocation28_spill] sm:$0xff] }
 0x8b3   : > { %3161 = vmatpush1.bf16.msra.mxu0 %v7144_v16  ;;  %3202 = vmatpush1.bf16.msra.mxu1 %v6052_v36  ;;  %v7212_v16 = vld [vmem:[#allocation29_spill] sm:$0xff]  ;;  %v7213_v36 = vld [vmem:[#allocation30_spill] sm:$0xff] }
 0x8b4   : > { %3162 = vmatprep.subr.bf16.mxu0 %v7145_v63  ;;  %3203 = vmatprep.subr.bf16.mxu1 %v6056_v8  ;;  %v7214_v63 = vld [vmem:[#allocation31_spill] sm:$0xff]  ;;  %v7215_v8 = vld [vmem:[#allocation32_spill] sm:$0xff] }
 0x8b7   : > { %3163 = vmatpush1.bf16.msra.mxu0 %v7146_v35  ;;  %3204 = vmatpush1.bf16.msra.mxu1 %v6060_v6  ;;  %v7216_v35 = vld [vmem:[#allocation33_spill] sm:$0xff]  ;;  %v7217_v6 = vld [vmem:[#allocation34_spill] sm:$0xff] }
 0x8b8   : > { %3164 = vmatprep.subr.bf16.mxu0 %v7147_v62  ;;  %3205 = vmatprep.subr.bf16.mxu1 %v6064_v27  ;;  %v7218_v62 = vld [vmem:[#allocation35_spill] sm:$0xff]  ;;  %v7219_v27 = vld [vmem:[#allocation36_spill] sm:$0xff] }
 0x8bb   : > { %3165 = vmatpush1.bf16.msra.mxu0 %v7148_v46  ;;  %3206 = vmatpush1.bf16.msra.mxu1 %v6068_v11  ;;  %v7220_v46 = vld [vmem:[#allocation37_spill] sm:$0xff]  ;;  %v7221_v11 = vld [vmem:[#allocation38_spill] sm:$0xff] }
 0x8bc   : > { %3166 = vmatprep.subr.bf16.mxu0 %v7149_v33  ;;  %3207 = vmatprep.subr.bf16.mxu1 %v6072_v54  ;;  %v7222_v33 = vld [vmem:[#allocation40_spill] sm:$0xff] }
 0x8bd   : > { %v7223_v54 = vld [vmem:[#allocation52_spill] sm:$0xff] }
 0x8bf   : > { %3167 = vmatpush1.bf16.msra.mxu0 %v7150_v31  ;;  %3208 = vmatpush1.bf16.msra.mxu1 %v6076_v1  ;;  %v7224_v31 = vld [vmem:[#allocation56_spill] sm:$0xff]  ;;  %v7225_v1 = vld [vmem:[#allocation57_spill] sm:$0xff] }
 0x8c0   : > { %3168 = vmatprep.subr.bf16.mxu0 %v7151_v13  ;;  %3209 = vmatprep.subr.bf16.mxu1 %v6080_v15  ;;  %v7226_v13 = vld [vmem:[#allocation41_spill] sm:$0xff]  ;;  %v7227_v15 = vld [vmem:[#allocation42_spill] sm:$0xff] }
 0x8c3   : > { %3169 = vmatpush1.bf16.msra.mxu0 %v7152_v14  ;;  %3210 = vmatpush1.bf16.msra.mxu1 %v6084_v59  ;;  %v7228_v14 = vld [vmem:[#allocation43_spill] sm:$0xff]  ;;  %v7229_v59 = vld [vmem:[#allocation44_spill] sm:$0xff] }
 0x8c4   : > { %3170 = vmatprep.subr.bf16.mxu0 %v7153_v22  ;;  %3211 = vmatprep.subr.bf16.mxu1 %v6088_v28  ;;  %v7230_v22 = vld [vmem:[#allocation45_spill] sm:$0xff]  ;;  %v7231_v28 = vld [vmem:[#allocation15_spill] sm:$0xff] }
 0x8c7   : > { %3171 = vmatpush1.bf16.msra.mxu0 %v7154_v18  ;;  %3212 = vmatpush1.bf16.msra.mxu1 %v6092_v32  ;;  %v7232_v18 = vld [vmem:[#allocation16_spill] sm:$0xff]  ;;  %v7233_v32 = vld [vmem:[#allocation17_spill] sm:$0xff] }
 0x8c8   : > { %3258 = vmatprep.subr.bf16.mxu0 %v7202_v26  ;;  %3299 = vmatprep.subr.bf16.mxu1 %v7203_v52 }
 0x8ca   : > { %3189 = vmatmul.mubr.bf16.vlgmr.msra.gmra.mxu0 %v6215_v12  ;;  %3230 = vmatmul.mubr.bf16.vlgmr.msra.gmra.mxu1 %v6215_v12  ;;  %v7234_v12 = vld [vmem:[#allocation46_spill] sm:$0xff] }
 0x8cb   : > { %3259 = vmatpush1.bf16.msra.mxu0 %v7204_v50  ;;  %3300 = vmatpush1.bf16.msra.mxu1 %v7205_v42 }
 0x8cc   : > { %3260 = vmatprep.subr.bf16.mxu0 %v7206_v58  ;;  %3301 = vmatprep.subr.bf16.mxu1 %v7207_v56 }
 0x8cd   : > { %3290 = vmatprep.mubr.bf16.mxu0 %v6868_v57  ;;  %3331 = vmatprep.mubr.bf16.mxu1 %v6868_v57 }
 0x8cf   : > { %3261 = vmatpush1.bf16.msra.mxu0 %v7208_v41  ;;  %3302 = vmatpush1.bf16.msra.mxu1 %v7209_v0 }
 0x8d0   : > { %3262 = vmatprep.subr.bf16.mxu0 %v7210_v4  ;;  %3303 = vmatprep.subr.bf16.mxu1 %v7211_v61 }
 0x8d3   : > { %3263 = vmatpush1.bf16.msra.mxu0 %v7212_v16  ;;  %3304 = vmatpush1.bf16.msra.mxu1 %v7213_v36 }
 0x8d4   : > { %3264 = vmatprep.subr.bf16.mxu0 %v7214_v63  ;;  %3305 = vmatprep.subr.bf16.mxu1 %v7215_v8 }
 0x8d7   : > { %3265 = vmatpush1.bf16.msra.mxu0 %v7216_v35  ;;  %3306 = vmatpush1.bf16.msra.mxu1 %v7217_v6 }
 0x8d8   : > { %3266 = vmatprep.subr.bf16.mxu0 %v7218_v62  ;;  %3307 = vmatprep.subr.bf16.mxu1 %v7219_v27 }
 0x8db   : > { %3267 = vmatpush1.bf16.msra.mxu0 %v7220_v46  ;;  %3308 = vmatpush1.bf16.msra.mxu1 %v7221_v11 }
 0x8dc   : > { %3268 = vmatprep.subr.bf16.mxu0 %v7222_v33  ;;  %3309 = vmatprep.subr.bf16.mxu1 %v7223_v54 }
 0x8df   : > { %3269 = vmatpush1.bf16.msra.mxu0 %v7224_v31  ;;  %3310 = vmatpush1.bf16.msra.mxu1 %v7225_v1 }
 0x8e0   : > { %3270 = vmatprep.subr.bf16.mxu0 %v7226_v13  ;;  %3311 = vmatprep.subr.bf16.mxu1 %v7227_v15 }
 0x8e3   : > { %3271 = vmatpush1.bf16.msra.mxu0 %v7228_v14  ;;  %3312 = vmatpush1.bf16.msra.mxu1 %v7229_v59 }
 0x8e4   : > { %3272 = vmatprep.subr.bf16.mxu0 %v7230_v22  ;;  %3313 = vmatprep.subr.bf16.mxu1 %v7231_v28 }
 0x8e7   : > { %3273 = vmatpush1.bf16.msra.mxu0 %v7232_v18  ;;  %3314 = vmatpush1.bf16.msra.mxu1 %v7233_v32 }
 0x8e8   : > { %3340 = vmatprep.subr.bf16.mxu0 %v7234_v12  ;;  %3381 = vmatprep.subr.bf16.mxu1 %v7235_v23 }
 0x94a   : > { %v3006_v2 = vpop.f32.mrf.mxu0  ;;  %v3047_v26 = vpop.f32.mrf.mxu1 }
 0x94c   : > { %v3008_v52 = vpop.f32.mrf.mxu0  ;;  %v3049_v50 = vpop.f32.mrf.mxu1 }
 0x94e   : > { %v3010_v42 = vpop.f32.mrf.mxu0  ;;  %v3051_v58 = vpop.f32.mrf.mxu1 }
 0x950   : > { %v3011_v56 = vpop.f32.mrf.mxu0  ;;  %v3052_v41 = vpop.f32.mrf.mxu1 }
 0x96a   : > { %v3088_v0 = vpop.f32.mrf.mxu0  ;;  %v3129_v4 = vpop.f32.mrf.mxu1 }
 0x96b   : > { %v3089_v61 = vadd.f32 %v3088_v0, %v3006_v2  ;;  %v3130_v16 = vadd.f32 %v3129_v4, %v3047_v26 }
 0x96c   : > { %v3090_v36 = vpop.f32.mrf.mxu0  ;;  %v3131_v63 = vpop.f32.mrf.mxu1 }
 0x96d   : > { %v3136_v8 = vadd.f32 %v3089_v61, %v5221_v34  ;;  %v3091_v35 = vadd.f32 %v3090_v36, %v3008_v52  ;;  %v3132_v6 = vadd.f32 %v3131_v63, %v3049_v50  ;;  %v3138_v46 = vadd.f32 %v3130_v16, %v5231_v21 }
 0x96e   : > { %v3092_v62 = vpop.f32.mrf.mxu0  ;;  %v3133_v27 = vpop.f32.mrf.mxu1 }
 0x96f   : > { %4222 = vtanh.f32 %v3136_v8  ;;  %v3137_v11 = vadd.f32 %v3091_v35, %v5226_v19 }
 0x970   : > { %v3093_v33 = vpop.f32.mrf.mxu0  ;;  %v3134_v54 = vpop.f32.mrf.mxu1 }
 0x971   : > { %4224 = vtanh.f32 %v3137_v11 }
 0x972   : > { %4226 = vtanh.f32 %v3138_v46 }
 0x97c   : > { %v4223_v31 = vpop.eup %4222 }
 0x97d   : > { %v3144_v1 = vmul.f32 0.5, %v4223_v31  ;;  %v7248_v31 = vld [vmem:[#allocation64_spill] sm:$0xff] }
 0x97e   : > { %v4225_v13 = vpop.eup %4224 }
 0x97f   : > { %v3145_v15 = vadd.f32 0.5, %v3144_v1  ;;  %v3146_v14 = vmul.f32 0.5, %v4225_v13  ;;  %v4227_v59 = vpop.eup %4226 }
 0x981   : > { %v3147_v22 = vadd.f32 0.5, %v3146_v14  ;;  %v3151_v28 = vmul.f32 %v4227_v59, %v3145_v15  ;;  %v4084_v14 = vld [vmem:[%s6517_s7 + $0x38] sm:$0xff]  }
 0x983   : > { %v3150_v18 = vmul.f32 %v3147_v22, %v6205_v44 }
 0x985   : > { %v6393_v32 = vadd.f32 %v3151_v28, %v3150_v18  ;;  %v4089_v28 = vld [vmem:[%s6517_s7 + $0x10] sm:$0xff]   ;;  %v4090_v18 = vld [vmem:[%s6517_s7 + $0x8] sm:$0xff]  }
 0x98a   : > { %v3190_v12 = vpop.f32.mrf.mxu0  ;;  %v3231_v23 = vpop.f32.mrf.mxu1 }
 0x98b   : > { %v3238_v2 = vadd.f32 %v3190_v12, %v6970_v47  ;;  %v3240_v56 = vadd.f32 %v3231_v23, %v6912_v20  ;;  %v4091_v12 = vld [vmem:[%s6517_s7] sm:$0xff]  }
 0x98c   : > { %v3192_v26 = vpop.f32.mrf.mxu0  ;;  %v3233_v52 = vpop.f32.mrf.mxu1  ;;  %v7251_v23 = vld [vmem:[#allocation62_spill] sm:$0xff] }
 0x98d   : > { %4228 = vtanh.f32 %v3238_v2  ;;  %v3239_v50 = vadd.f32 %v3192_v26, %v6911_v53  ;;  %v3241_v44 = vadd.f32 %v3233_v52, %v5037_v60  ;;  %v3139_v60 = vadd.f32 %v3132_v6, %v5249_v10  ;;  %v7247_v6 = vld [vmem:[#allocation63_spill] sm:$0xff]  ;;  %v7252_v2 = vld [vmem:[#allocation14_spill] sm:$0xff] }
 0x98e   : > { %v3194_v42 = vpop.f32.mrf.mxu0  ;;  %v3235_v58 = vpop.f32.mrf.mxu1  ;;  %v3442_v26 = vpack.c.bf16 %v7252_v2, %v7251_v23  ;;  %v7253_v52 = vld [vmem:[#allocation18_spill] sm:$0xff] }
 0x98f   : > { %4230 = vtanh.f32 %v3239_v50  ;;  %v3443_v50 = vpack.c.bf16 %v6301_v55, %v7253_v52 }
 0x990   : > { %v3195_v41 = vpop.f32.mrf.mxu0  ;;  %v3236_v0 = vpop.f32.mrf.mxu1  ;;  %4232 = vtanh.f32 %v3240_v56 }
 0x991   : > { %4234 = vtanh.f32 %v3241_v44 }
 0x99a   : > { %v4229_v4 = vpop.eup %4228 }
 0x99b   : > { %v3246_v61 = vmul.f32 0.5, %v4229_v4 }
 0x99c   : > { %v4231_v16 = vpop.eup %4230 }
 0x99d   : > { %v3247_v36 = vadd.f32 0.5, %v3246_v61  ;;  %v3248_v47 = vmul.f32 0.5, %v4231_v16  ;;  %v4233_v8 = vpop.eup %4232 }
 0x99e   : > { %v4235_v20 = vpop.eup %4234 }
 0x99f   : > { %v3249_v63 = vadd.f32 0.5, %v3248_v47  ;;  %v3253_v35 = vmul.f32 %v4233_v8, %v3247_v36  ;;  %v3250_v27 = vmul.f32 0.5, %v4235_v20 }
 0x9a1   : > { %v3252_v53 = vmul.f32 %v3249_v63, %v6212_v9  ;;  %v3251_v46 = vadd.f32 0.5, %v3250_v27  ;;  %v7236_v9 = vld [vmem:[#allocation48_spill] sm:$0xff] }
 0x9a3   : > { %v3254_v62 = vadd.f32 %v3253_v35, %v3252_v53 }
 0x9a5   : > { %4236 = vtanh.f32 %v3254_v62 }
 0x9a6   : > { %4238 = vtanh.f32 %v3139_v60 }
 0x9a7   : > { %4240 = vtanh.f32 %v6393_v32 }
 0x9b2   : > { %v4237_v11 = vpop.eup %4236 }
 0x9b3   : > { %v3256_v33 = vmul.f32 %v4237_v11, %v3251_v46 }
 0x9b5   : > { %v3257_v54 = vpack.c.bf16 %v3256_v33, %v3256_v33 }
 0x9b7   : > { %3291 = vmatmul.mubr.bf16.vlgmr.msra.gmra.mxu0 %v3257_v54  ;;  %3332 = vmatmul.mubr.bf16.vlgmr.msra.gmra.mxu1 %v3257_v54 }
 0x9b8   : > { %3341 = vmatpush1.bf16.msra.mxu0 %v6220_v3  ;;  %3382 = vmatpush1.bf16.msra.mxu1 %v6223_v38  ;;  %v7238_v3 = vld [vmem:[#allocation50_spill] sm:$0xff]  ;;  %v7239_v38 = vld [vmem:[#allocation51_spill] sm:$0xff] }
 0x9b9   : > { %3342 = vmatprep.subr.bf16.mxu0 %v6226_v30  ;;  %3383 = vmatprep.subr.bf16.mxu1 %v6229_v5  ;;  %v7240_v30 = vld [vmem:[#allocation53_spill] sm:$0xff]  ;;  %v4239_v5 = vpop.eup %4238 }
 0x9ba   : > { %3372 = vmatprep.mubr.bf16.mxu0 %v6868_v57  ;;  %3413 = vmatprep.mubr.bf16.mxu1 %v6868_v57  ;;  %v7237_v57 = vld [vmem:[#allocation49_spill] sm:$0xff]  ;;  %v4241_v1 = vpop.eup %4240 }
 0x9bc   : > { %3343 = vmatpush1.bf16.msra.mxu0 %v6234_v7  ;;  %3384 = vmatpush1.bf16.msra.mxu1 %v6237_v39  ;;  %v7241_v7 = vld [vmem:[#allocation54_spill] sm:$0xff]  ;;  %v7242_v39 = vld [vmem:[#allocation55_spill] sm:$0xff] }
 0x9bd   : > { %3344 = vmatprep.subr.bf16.mxu0 %v6240_v45  ;;  %3385 = vmatprep.subr.bf16.mxu1 %v6243_v51  ;;  %v7243_v45 = vld [vmem:[#allocation58_spill] sm:$0xff]  ;;  %v7244_v51 = vld [vmem:[#allocation59_spill] sm:$0xff] }
 0x9c0   : > { %3345 = vmatpush1.bf16.msra.mxu0 %v6246_v49  ;;  %3386 = vmatpush1.bf16.msra.mxu1 %v6249_v48  ;;  %v3148_v49 = vmul.f32 0.5, %v4239_v5  ;;  %v7245_v48 = vld [vmem:[#allocation60_spill] sm:$0xff] }
 0x9c1   : > { %3346 = vmatprep.subr.bf16.mxu0 %v6253_v24  ;;  %3387 = vmatprep.subr.bf16.mxu1 %v7236_v9  ;;  %v7246_v24 = vld [vmem:[#allocation61_spill] sm:$0xff] }
 0x9c2   : > { %v3149_v13 = vadd.f32 0.5, %v3148_v49 }
 0x9c4   : > { %3347 = vmatpush1.bf16.msra.mxu0 %v7237_v57  ;;  %3388 = vmatpush1.bf16.msra.mxu1 %v7238_v3  ;;  %v6430_v15 = vmul.f32 %v4241_v1, %v3149_v13 }
 0x9c5   : > { %3348 = vmatprep.subr.bf16.mxu0 %v7239_v38  ;;  %3389 = vmatprep.subr.bf16.mxu1 %v7240_v30 }
 0x9c6   : > { %v3155_v59 = vpack.c.bf16 %v6430_v15, %v6430_v15 }
 0x9c8   : > { %3349 = vmatpush1.bf16.msra.mxu0 %v7241_v7  ;;  %3390 = vmatpush1.bf16.msra.mxu1 %v7242_v39  ;;  %v3808_v39 = vld [vmem:[#allocation2] ss:$0 sm:$0xff] }
 0x9c9   : > { %3350 = vmatprep.subr.bf16.mxu0 %v7243_v45  ;;  %3391 = vmatprep.subr.bf16.mxu1 %v7244_v51 }
 0x9cc   : > { %3351 = vmatpush1.bf16.msra.mxu0 %v7245_v48  ;;  %3392 = vmatpush1.bf16.msra.mxu1 %v7246_v24 }
 0x9cd   : > { %3352 = vmatprep.subr.bf16.mxu0 %v7247_v6  ;;  %3393 = vmatprep.subr.bf16.mxu1 %v7248_v31 }
 0x9d0   : > { %3353 = vmatpush1.bf16.msra.mxu0 %v6295_v40  ;;  %3394 = vmatpush1.bf16.msra.mxu1 %v6298_v25  ;;  %v4085_v40 = vld [vmem:[%s6517_s7 + $0x30] sm:$0xff]   ;;  %v7249_v25 = vld [vmem:[#allocation39_spill] sm:$0xff] }
 0x9d1   : > { %3354 = vmatprep.subr.bf16.mxu0 %v6303_v43  ;;  %3395 = vmatprep.subr.bf16.mxu1 %v6306_v29  ;;  %v7250_v43 = vld [vmem:[#allocation13_spill] sm:$0xff]  ;;  %v4086_v29 = vld [vmem:[%s6517_s7 + $0x28] sm:$0xff]  }
 0x9d2   : > { %v3441_v22 = vpack.c.bf16 %v7250_v43, %v7249_v25 }
 0x9d4   : > { %3355 = vmatpush1.bf16.msra.mxu0 %v6309_v37  ;;  %3396 = vmatpush1.bf16.msra.mxu1 %v6312_v17  ;;  %v4087_v37 = vld [vmem:[%s6517_s7 + $0x20] sm:$0xff]   ;;  %v4088_v17 = vld [vmem:[%s6517_s7 + $0x18] sm:$0xff]  }
 0x9d5   : > { %3831 = vmatprep.subr.bf16.mxu0 %v4084_v14 }
 0x9d7   : > { %3373 = vmatmul.mubr.bf16.vlgmr.msra.gmra.mxu0 %v3155_v59  ;;  %3414 = vmatmul.mubr.bf16.vlgmr.msra.gmra.mxu1 %v3155_v59 }
 0x9d8   : > { %3832 = vmatpush3.bf16.msra.mxu0 %v4084_v14  ;;  %3847 = vmatprep.mubr.bf16.mxu0 %v3441_v22 }
 0x9d9   : > { %3833 = vmatprep.subr.bf16.mxu0 %v4085_v40 }
 0x9dc   : > { %3834 = vmatpush3.bf16.msra.mxu0 %v4085_v40 }
 0x9dd   : > { %3835 = vmatprep.subr.bf16.mxu0 %v4086_v29 }
 0x9e0   : > { %3836 = vmatpush3.bf16.msra.mxu0 %v4086_v29 }
 0x9e1   : > { %3837 = vmatprep.subr.bf16.mxu0 %v4087_v37 }
 0x9e4   : > { %3838 = vmatpush3.bf16.msra.mxu0 %v4087_v37 }
 0x9e5   : > { %3839 = vmatprep.subr.bf16.mxu0 %v4088_v17 }
 0x9e8   : > { %3840 = vmatpush3.bf16.msra.mxu0 %v4088_v17 }
 0x9e9   : > { %3841 = vmatprep.subr.bf16.mxu0 %v4089_v28 }
 0x9ec   : > { %3842 = vmatpush3.bf16.msra.mxu0 %v4089_v28 }
 0x9ed   : > { %3843 = vmatprep.subr.bf16.mxu0 %v4090_v18 }
 0x9f0   : > { %3844 = vmatpush3.bf16.msra.mxu0 %v4090_v18 }
 0x9f1   : > { %3845 = vmatprep.subr.bf16.mxu0 %v4091_v12 }
 0x9f4   : > { %3846 = vmatpush3.bf16.msra.mxu0 %v4091_v12 }
 0x9f7   : > { %3848 = vmatmul.mubr.bf16.vlgmr.msra.gmra.mxu0 %v3442_v26 }
 0x9f8   : > { %3851 = vmatprep.mubr.bf16.mxu0 %v3443_v50 }
 0xa77   : > { %v3292_v42 = vpop.f32.mrf.mxu0  ;;  %v3333_v58 = vpop.f32.mrf.mxu1 }
 0xa79   : > { %v3294_v56 = vpop.f32.mrf.mxu0  ;;  %v3335_v41 = vpop.f32.mrf.mxu1 }
 0xa7b   : > { %v3296_v0 = vpop.f32.mrf.mxu0  ;;  %v3337_v44 = vpop.f32.mrf.mxu1 }
 0xa7d   : > { %v3297_v4 = vpop.f32.mrf.mxu0  ;;  %v3338_v61 = vpop.f32.mrf.mxu1 }
 0xa97   : > { %v3374_v16 = vpop.f32.mrf.mxu0  ;;  %v3415_v36 = vpop.f32.mrf.mxu1 }
 0xa98   : > { %v3375_v47 = vadd.f32 %v3374_v16, %v3292_v42  ;;  %v3416_v35 = vadd.f32 %v3415_v36, %v3333_v58 }
 0xa99   : > { %v3376_v63 = vpop.f32.mrf.mxu0  ;;  %v3417_v8 = vpop.f32.mrf.mxu1 }
 0xa9a   : > { %v3422_v53 = vadd.f32 %v3375_v47, %v5221_v34  ;;  %v3377_v55 = vadd.f32 %v3376_v63, %v3294_v56  ;;  %v3424_v33 = vadd.f32 %v3416_v35, %v5231_v21  ;;  %v3418_v54 = vadd.f32 %v3417_v8, %v3335_v41 }
 0xa9b   : > { %v3378_v62 = vpop.f32.mrf.mxu0  ;;  %v3419_v20 = vpop.f32.mrf.mxu1 }
 0xa9c   : > { %4242 = vtanh.f32 %v3422_v53  ;;  %v3423_v27 = vadd.f32 %v3377_v55, %v5226_v19  ;;  %v3425_v60 = vadd.f32 %v3418_v54, %v5249_v10 }
 0xa9d   : > { %v3379_v46 = vpop.f32.mrf.mxu0  ;;  %v3420_v11 = vpop.f32.mrf.mxu1 }
 0xa9e   : > { %4244 = vtanh.f32 %v3423_v27 }
 0xa9f   : > { %4246 = vtanh.f32 %v3424_v33 }
 0xaa0   : > { %4248 = vtanh.f32 %v3425_v60 }
 0xaa9   : > { %v4243_v9 = vpop.eup %4242 }
 0xaaa   : > { %v3430_v34 = vmul.f32 0.5, %v4243_v9 }
 0xaab   : > { %v4245_v57 = vpop.eup %4244 }
 0xaac   : > { %v3431_v3 = vadd.f32 0.5, %v3430_v34  ;;  %v3432_v38 = vmul.f32 0.5, %v4245_v57  ;;  %v4247_v19 = vpop.eup %4246 }
 0xaad   : > { %v4249_v51 = vpop.eup %4248 }
 0xaae   : > { %v3433_v30 = vadd.f32 0.5, %v3432_v38  ;;  %v3437_v7 = vmul.f32 %v4247_v19, %v3431_v3  ;;  %v3434_v24 = vmul.f32 0.5, %v4249_v51 }
 0xab0   : > { %v3436_v5 = vmul.f32 %v3433_v30, %v6393_v32  ;;  %v3435_v13 = vadd.f32 0.5, %v3434_v24 }
 0xab2   : > { %v3438_v21 = vadd.f32 %v3437_v7, %v3436_v5 }
 0xab4   : > { %4250 = vtanh.f32 %v3438_v21 }
 0xab7   : > { %v3849_v10 = vpop.f32.mrf.mxu0 }
 0xab8   : > { %v3559_v45 = vadd.f32 %v3849_v10, %v3808_v39 }
 0xab9   : > { %v3550_v32 = vpop.f32.mrf.mxu0 }
 0xaba   : > { %3584 = vst.msk [vmem:[%s6478_s14 + $0x10] sm:$0xff] %vm3581_vm1, %v3559_v45  ;;  %v3551_v49 = vadd.f32 %v3808_v39, %v3550_v32 }
 0xabb   : > { %v3850_v48 = vpop.f32.mrf.mxu0 }
 0xabc   : > { %3582 = vst.msk [vmem:[%s6478_s14] sm:$0xff] %vm3581_vm1, %v3551_v49  ;;  %v3562_v6 = vadd.f32 %v3850_v48, %v3808_v39 }
 0xabd   : > { %v3553_v31 = vpop.f32.mrf.mxu0 }
 0xabe   : > { %3585 = vst.msk [vmem:[%s6478_s14 + $0x18] sm:$0xff] %vm3581_vm1, %v3562_v6  ;;  %v3554_v1 = vadd.f32 %v3808_v39, %v3553_v31 }
 0xac0   : > { %3583 = vst.msk [vmem:[%s6478_s14 + $0x8] sm:$0xff] %vm3581_vm1, %v3554_v1 }
 0xac1   : > { %v4251_v14 = vpop.eup %4250 }
 0xac2   : > { %v3440_v59 = vmul.f32 %v4251_v14, %v3435_v13 }
 0xac4   : > { %v3444_v40 = vpack.c.bf16 %v3440_v59, %v6430_v15 }
 0xac6   : > { %3852 = vmatmul.mubr.bf16.gmra.mxu0 %v3444_v40 }
 0xb86   : > { %v3853_v25 = vpop.f32.mrf.mxu0 }
 0xb87   : > { %v3575_v43 = vadd.f32 %v3853_v25, %v3808_v39 }
 0xb88   : > { %v3566_v22 = vpop.f32.mrf.mxu0 }
 0xb89   : > { %3588 = vst.msk [vmem:[%s6478_s14 + $0x30] sm:$0xff] %vm3581_vm1, %v3575_v43  ;;  %v3567_v29 = vadd.f32 %v3808_v39, %v3566_v22 }
 0xb8a   : > { %v3854_v37 = vpop.f32.mrf.mxu0 }
 0xb8b   : > { %3586 = vst.msk [vmem:[%s6478_s14 + $0x20] sm:$0xff] %vm3581_vm1, %v3567_v29  ;;  %v3578_v17 = vadd.f32 %v3854_v37, %v3808_v39 }
 0xb8c   : > { %v3569_v28 = vpop.f32.mrf.mxu0 }
 0xb8d   : > { %3589 = vst.msk [vmem:[%s6478_s14 + $0x38] sm:$0xff] %vm3581_vm1, %v3578_v17  ;;  %v3570_v18 = vadd.f32 %v3808_v39, %v3569_v28 }
 0xb8f   : > { %3587 = vst.msk [vmem:[%s6478_s14 + $0x28] sm:$0xff] %vm3581_vm1, %v3570_v18 }
 0xb90 PF: > { %p23_p3 = scmp.ge.s32.totalorder %s4727_s22, 4   ;;  %s7255_s11 = smov %s4584_s12 }
 0xb91   : > { %s7256_s12 = smov %s4588_s13  ;;  %s7257_s13 = smov %s4737_s20 }
 0xb92   : > { %s7258_s14 = smov %s4727_s22  ;;  %25 = sbr.rel (!%p23_p3) target bundleno = 8 (0x8), region = 108 }
 0xb97   :  { %3612 = vsyncpa [#allocation4], 1 }
 0xb98   :  { %3614 = vsyncpa [#allocation4 + $0x1], 1 }
 0xb99   :  { %3615 = vsyncpa [#allocation6], 1 }
 0xb9a   :  { %3616 = vsyncpa [#allocation9], 1 }

</bundles_post_ra>
